<compile_context>
chip_gen: v7x
topology: tpu7x:2x2x1
jax: 0.10.0
libtpu: 0.0.40
codegen_flags: <defaults>
</compile_context>

<pallas_src>
import functools

import jax
import jax.numpy as jnp
from jax.experimental import pallas as pl
from jax.experimental.pallas import tpu as pltpu


_COMPILER_PARAMS = pltpu.CompilerParams(
    dimension_semantics=("parallel",),
    vmem_limit_bytes=32 * 1024 * 1024,
)


# ----------------------------------------------------------------------------
# Pallas kernels
# ----------------------------------------------------------------------------
def _gemm_bias_kernel(x_ref, w_ref, b_ref, o_ref):
    """One row tile: (TM, K) @ (K, Cout) + bias.  f32 accumulation, bf16 store."""
    acc = jnp.dot(x_ref[...], w_ref[...], preferred_element_type=jnp.float32)
    acc = acc + b_ref[...]                       # bias kept in f32 (cheap on all gens)
    o_ref[...] = acc.astype(o_ref.dtype)


def _fused_skip_gemm_kernel(x_ref, wx_ref, s_ref, ws_ref, b_ref, o_ref):
    """Fused decoder stage row tile: x @ Wfused + skip @ kron(I4, Wred_s) + bias."""
    acc = jnp.dot(x_ref[...], wx_ref[...], preferred_element_type=jnp.float32)
    acc = acc + jnp.dot(s_ref[...], ws_ref[...], preferred_element_type=jnp.float32)
    acc = acc + b_ref[...]
    o_ref[...] = acc.astype(o_ref.dtype)


# ----------------------------------------------------------------------------
# pallas_call wrappers
# ----------------------------------------------------------------------------
def _pick_row_tile(m, max_tile=512):
    if m <= max_tile:
        return m
    tm = max_tile
    while m % tm:
        tm //= 2
    return tm


def gemm_bias(x, w, b=None):
    """x: (M, K) @ w: (K, Cout) + b -> (M, Cout).  Single MXU dot per row tile."""
    M, K = x.shape
    Cout = w.shape[-1]
    if b is None:
        b = jnp.zeros((1, Cout), jnp.float32)
    else:
        b = b.reshape(1, Cout).astype(jnp.float32)
    tm = _pick_row_tile(M)
    return pl.pallas_call(
        _gemm_bias_kernel,
        out_shape=jax.ShapeDtypeStruct((M, Cout), x.dtype),
        grid=(M // tm,),
        in_specs=[
            pl.BlockSpec((tm, K), lambda m: (m, 0)),
            pl.BlockSpec((K, Cout), lambda m: (0, 0)),
            pl.BlockSpec((1, Cout), lambda m: (0, 0)),
        ],
        out_specs=pl.BlockSpec((tm, Cout), lambda m: (m, 0)),
        compiler_params=_COMPILER_PARAMS,
    )(x, w, b)


def fused_skip_gemm(x, wx, skip, wskip, b):
    """out = x @ wx + skip @ wskip + b in one pallas_call (two accumulated MXU dots)."""
    M, Kx = x.shape
    Ks = skip.shape[-1]
    Cout = wx.shape[-1]
    tm = _pick_row_tile(M)
    return pl.pallas_call(
        _fused_skip_gemm_kernel,
        out_shape=jax.ShapeDtypeStruct((M, Cout), x.dtype),
        grid=(M // tm,),
        in_specs=[
            pl.BlockSpec((tm, Kx), lambda m: (m, 0)),
            pl.BlockSpec((Kx, Cout), lambda m: (0, 0)),
            pl.BlockSpec((tm, Ks), lambda m: (m, 0)),
            pl.BlockSpec((Ks, Cout), lambda m: (0, 0)),
            pl.BlockSpec((1, Cout), lambda m: (0, 0)),
        ],
        out_specs=pl.BlockSpec((tm, Cout), lambda m: (m, 0)),
        compiler_params=_COMPILER_PARAMS,
    )(x, wx, skip, wskip, b)


def conv3x3(x, w, b=None, stride=1):
    """3x3 conv, pad=1, stride 1 or 2, as a single im2col GEMM (K = 9*Cin).

    x: (N, H, W, Cin) NHWC, w: (3, 3, Cin, Cout) HWIO, optional bias (Cout,).
    """
    N, H, W, Cin = x.shape
    Cout = w.shape[-1]
    Ho, Wo = H // stride, W // stride
    xpad = jnp.pad(x, ((0, 0), (1, 1), (1, 1), (0, 0)))
    taps = [xpad[:, dy:dy + stride * Ho:stride, dx:dx + stride * Wo:stride, :]
            for dy in range(3) for dx in range(3)]
    patches = jnp.stack(taps, axis=3).reshape(N * Ho * Wo, 9 * Cin)  # (dy,dx,ci) order
    y = gemm_bias(patches, w.reshape(9 * Cin, Cout), b)              # same flatten order
    return y.reshape(N, Ho, Wo, Cout)


def decoder_stage(x, skip, up_w, up_b, reduce_w):
    """Fused Upsample(1x1 conv + PixelShuffle(2)) + torch.cat + 1x1 reduce.

    x:    (N, H, W, d)       low-res decoder features (bf16)
    skip: (N, 2H, 2W, d//2)  encoder skip (bf16)
    up_w: (d, 2d), up_b: (2d,), reduce_w: (d, d//2)   -- f32 params
    Returns (N, 2H, 2W, d//2).
    """
    N, H, W, d = x.shape
    C = d // 2
    cdt = x.dtype

    # Constant-fold (in f32): up-conv, the pixel-shuffle channel->position permutation,
    # and the x-half of the 1x1 reduce into ONE (d, 4C) weight; the skip-half becomes a
    # block-diagonal kron(I4, Wred_s), so no concat and no in-kernel relayout is needed.
    wred_x, wred_s = reduce_w[:C], reduce_w[C:]
    wf = jnp.einsum("kcij,co->kijo", up_w.reshape(d, C, 2, 2), wred_x).reshape(d, 4 * C)
    bf = jnp.einsum("cij,co->ijo", up_b.reshape(C, 2, 2), wred_x).reshape(1, 4 * C)
    wsk = jnp.kron(jnp.eye(4, dtype=reduce_w.dtype), wred_s)            # (4C, 4C)

    # skip rows aligned to the (i, j, c) column order of the fused output.
    skip_wide = (skip.reshape(N, H, 2, W, 2, C)
                     .transpose(0, 1, 3, 2, 4, 5)
                     .reshape(N * H * W, 4 * C))

    out_wide = fused_skip_gemm(x.reshape(N * H * W, d), wf.astype(cdt),
                               skip_wide, wsk.astype(cdt),
                               bf.astype(jnp.float32))                  # (N*H*W, 2d)

    # un-blockify: (n, h, w, i, j, c) -> (n, 2h+i, 2w+j, c)  == PixelShuffle(2) placement
    return (out_wide.reshape(N, H, W, 2, 2, C)
                    .transpose(0, 1, 3, 2, 4, 5)
                    .reshape(N, 2 * H, 2 * W, C))


# ----------------------------------------------------------------------------
# Parameters (deterministic synthetic init) & forward pass
# ----------------------------------------------------------------------------
def init_params(key, in_ch=3, out_ch=3, base_dim=16, num_levels=4):
    def w_init(k, shape, fan_in):
        return jax.random.normal(k, shape, jnp.float32) / jnp.sqrt(float(fan_in))

    keys = iter(jax.random.split(key, 64))
    p = {"down_w": [], "down_b": [], "up_w": [], "up_b": [], "reduce_w": []}
    p["initial_w"] = w_init(next(keys), (3, 3, in_ch, base_dim), 9 * in_ch)

    dims = [base_dim * (2 ** i) for i in range(num_levels)]
    # encoder downsamples: Conv2d(d, 2d, 3, stride=2, pad=1), default bias=True
    for i in range(num_levels - 1):
        d = dims[i]
        p["down_w"].append(w_init(next(keys), (3, 3, d, 2 * d), 9 * d))
        p["down_b"].append(jnp.full((2 * d,), 0.01 * (i + 1), jnp.float32))

    # decoder: Upsample(d -> (d//2)*4 via 1x1 conv, bias=True) then 1x1 reduce (bias=False)
    d = dims[-1]
    for i in range(num_levels - 1):
        p["up_w"].append(w_init(next(keys), (d, (d // 2) * 4), d))
        p["up_b"].append(jnp.full(((d // 2) * 4,), 0.01, jnp.float32))
        d //= 2
        p["reduce_w"].append(w_init(next(keys), (2 * d, d), 2 * d))

    p["final_w"] = w_init(next(keys), (3, 3, base_dim, out_ch), 9 * base_dim)
    return p


def promptir_baseline_forward(params, x_nchw, num_levels=4):
    cdt = jnp.bfloat16                    # MXU dtype (v6e/v7x); f32 accumulation in-kernel
    x = jnp.transpose(x_nchw, (0, 2, 3, 1)).astype(cdt)        # NCHW -> NHWC
    x = conv3x3(x, params["initial_w"].astype(cdt))            # initial_conv (bias=False)

    skips = []
    for i in range(num_levels):
        # TODO(synk): encoder TransformerBlock stacks not defined in provided source; identity.
        if i < num_levels - 1:
            skips.append(x)
            x = conv3x3(x, params["down_w"][i].astype(cdt),
                        params["down_b"][i], stride=2)          # Downsample

    for i in range(num_levels - 1):
        skip = skips.pop()
        x = decoder_stage(x, skip, params["up_w"][i], params["up_b"][i],
                          params["reduce_w"][i])                # Upsample+cat+1x1 fused
        # TODO(synk): decoder TransformerBlock stack and PromptBlock not defined in
        # provided source; identity.

    x = conv3x3(x, params["final_w"].astype(cdt))               # final_conv (bias=False)
    return jnp.transpose(x, (0, 3, 1, 2)).astype(jnp.float32)   # NHWC -> NCHW


if __name__ == "__main__":
    key = jax.random.PRNGKey(0)
    k_x, k_p = jax.random.split(key)

    # small shapes consistent with the module (batch=2, in_channels=3, spatial=16,
    # base_dim=16, 4 encoder levels)
    x = jax.random.normal(k_x, (2, 3, 16, 16), jnp.float32)
    params = init_params(k_p, in_ch=3, out_ch=3, base_dim=16, num_levels=4)

    fwd = jax.jit(functools.partial(promptir_baseline_forward, num_levels=4))
    out = jax.block_until_ready(fwd(params, x))

    assert out.shape == (2, 3, 16, 16), out.shape
    assert bool(jnp.all(jnp.isfinite(out)))
    print("KERNEL_OK")
</pallas_src>

<mosaic_0001>
module attributes {stable_mosaic.version = 11 : i64} {
  func.func @_gemm_bias_kernel(%arg0: i32, %arg1: memref<512x27xbf16, #tpu.memory_space<vmem>>, %arg2: memref<27x16xbf16, #tpu.memory_space<vmem>>, %arg3: memref<1x16xf32, #tpu.memory_space<vmem>>, %arg4: memref<512x16xbf16, #tpu.memory_space<vmem>>) attributes {dimension_semantics = [#tpu.dimension_semantics<parallel>], iteration_bounds = array<i64: 1>, scalar_prefetch = 0 : i64, scratch_operands = 0 : i64, tpu.core_type = #tpu.core_type<tc>, window_params = [{transform_indices = @transform_0, window_bounds = array<i64: 512, 27>}, {pipeline_mode = #tpu.pipeline_mode<synchronous>, transform_indices = @transform_1, window_bounds = array<i64: 27, 16>}, {pipeline_mode = #tpu.pipeline_mode<synchronous>, transform_indices = @transform_2, window_bounds = array<i64: 1, 16>}, {transform_indices = @transform_3, window_bounds = array<i64: 512, 16>}]} {
    %c0 = arith.constant 0 : index
    %c0_0 = arith.constant 0 : index
    %0 = vector.load %arg1[%c0, %c0_0] : memref<512x27xbf16, #tpu.memory_space<vmem>>, vector<512x27xbf16>
    %c0_1 = arith.constant 0 : index
    %c0_2 = arith.constant 0 : index
    %1 = vector.load %arg2[%c0_1, %c0_2] : memref<27x16xbf16, #tpu.memory_space<vmem>>, vector<27x16xbf16>
    %cst = arith.constant dense<0.000000e+00> : vector<512x16xf32>
    %2 = tpu.matmul %0, %1, %cst {dimension_numbers = #tpu.dot_dimension_numbers<[1], [0], [0], [1], [0, 0, 1, 1], [], []>} : vector<512x27xbf16>, vector<27x16xbf16>, vector<512x16xf32> -> vector<512x16xf32>
    %c0_3 = arith.constant 0 : index
    %c0_4 = arith.constant 0 : index
    %3 = vector.load %arg3[%c0_3, %c0_4] : memref<1x16xf32, #tpu.memory_space<vmem>>, vector<1x16xf32>
    %4 = vector.broadcast %3 : vector<1x16xf32> to vector<512x16xf32>
    %5 = arith.addf %2, %4 : vector<512x16xf32>
    %6 = arith.truncf %5 : vector<512x16xf32> to vector<512x16xbf16>
    %c0_5 = arith.constant 0 : index
    %c0_6 = arith.constant 0 : index
    %7 = vector.load %arg4[%c0_5, %c0_6] : memref<512x16xbf16, #tpu.memory_space<vmem>>, vector<512x16xbf16>
    tpu.vector_store %arg4[%c0_5, %c0_6], %6 {strides = array<i32>} : memref<512x16xbf16, #tpu.memory_space<vmem>>, vector<512x16xbf16>,
    return
  }
  func.func @transform_0(%arg0: i32) -> (i32, i32) {
    %c0_i32 = arith.constant 0 : i32
    %c0_i32_0 = arith.constant 0 : i32
    return %arg0, %c0_i32 : i32, i32
  }
  func.func @transform_1(%arg0: i32) -> (i32, i32) {
    %c0_i32 = arith.constant 0 : i32
    %c0_i32_0 = arith.constant 0 : i32
    %c0_i32_1 = arith.constant 0 : i32
    return %c0_i32, %c0_i32_0 : i32, i32
  }
  func.func @transform_2(%arg0: i32) -> (i32, i32) {
    %c0_i32 = arith.constant 0 : i32
    %c0_i32_0 = arith.constant 0 : i32
    %c0_i32_1 = arith.constant 0 : i32
    return %c0_i32, %c0_i32_0 : i32, i32
  }
  func.func @transform_3(%arg0: i32) -> (i32, i32) {
    %c0_i32 = arith.constant 0 : i32
    %c0_i32_0 = arith.constant 0 : i32
    return %arg0, %c0_i32 : i32, i32
  }
}

module attributes {stable_mosaic.version = 11 : i64} {
  func.func @_gemm_bias_kernel(%arg0: i32, %arg1: memref<128x144xbf16, #tpu.memory_space<vmem>>, %arg2: memref<144x32xbf16, #tpu.memory_space<vmem>>, %arg3: memref<1x32xf32, #tpu.memory_space<vmem>>, %arg4: memref<128x32xbf16, #tpu.memory_space<vmem>>) attributes {dimension_semantics = [#tpu.dimension_semantics<parallel>], iteration_bounds = array<i64: 1>, scalar_prefetch = 0 : i64, scratch_operands = 0 : i64, tpu.core_type = #tpu.core_type<tc>, window_params = [{transform_indices = @transform_0, window_bounds = array<i64: 128, 144>}, {pipeline_mode = #tpu.pipeline_mode<synchronous>, transform_indices = @transform_1, window_bounds = array<i64: 144, 32>}, {pipeline_mode = #tpu.pipeline_mode<synchronous>, transform_indices = @transform_2, window_bounds = array<i64: 1, 32>}, {transform_indices = @transform_3, window_bounds = array<i64: 128, 32>}]} {
    %c0 = arith.constant 0 : index
    %c0_0 = arith.constant 0 : index
    %0 = vector.load %arg1[%c0, %c0_0] : memref<128x144xbf16, #tpu.memory_space<vmem>>, vector<128x144xbf16>
    %c0_1 = arith.constant 0 : index
    %c0_2 = arith.constant 0 : index
    %1 = vector.load %arg2[%c0_1, %c0_2] : memref<144x32xbf16, #tpu.memory_space<vmem>>, vector<144x32xbf16>
    %cst = arith.constant dense<0.000000e+00> : vector<128x32xf32>
    %2 = tpu.matmul %0, %1, %cst {dimension_numbers = #tpu.dot_dimension_numbers<[1], [0], [0], [1], [0, 0, 1, 1], [], []>} : vector<128x144xbf16>, vector<144x32xbf16>, vector<128x32xf32> -> vector<128x32xf32>
    %c0_3 = arith.constant 0 : index
    %c0_4 = arith.constant 0 : index
    %3 = vector.load %arg3[%c0_3, %c0_4] : memref<1x32xf32, #tpu.memory_space<vmem>>, vector<1x32xf32>
    %4 = vector.broadcast %3 : vector<1x32xf32> to vector<128x32xf32>
    %5 = arith.addf %2, %4 : vector<128x32xf32>
    %6 = arith.truncf %5 : vector<128x32xf32> to vector<128x32xbf16>
    %c0_5 = arith.constant 0 : index
    %c0_6 = arith.constant 0 : index
    %7 = vector.load %arg4[%c0_5, %c0_6] : memref<128x32xbf16, #tpu.memory_space<vmem>>, vector<128x32xbf16>
    tpu.vector_store %arg4[%c0_5, %c0_6], %6 {strides = array<i32>} : memref<128x32xbf16, #tpu.memory_space<vmem>>, vector<128x32xbf16>,
    return
  }
  func.func @transform_0(%arg0: i32) -> (i32, i32) {
    %c0_i32 = arith.constant 0 : i32
    %c0_i32_0 = arith.constant 0 : i32
    return %arg0, %c0_i32 : i32, i32
  }
  func.func @transform_1(%arg0: i32) -> (i32, i32) {
    %c0_i32 = arith.constant 0 : i32
    %c0_i32_0 = arith.constant 0 : i32
    %c0_i32_1 = arith.constant 0 : i32
    return %c0_i32, %c0_i32_0 : i32, i32
  }
  func.func @transform_2(%arg0: i32) -> (i32, i32) {
    %c0_i32 = arith.constant 0 : i32
    %c0_i32_0 = arith.constant 0 : i32
    %c0_i32_1 = arith.constant 0 : i32
    return %c0_i32, %c0_i32_0 : i32, i32
  }
  func.func @transform_3(%arg0: i32) -> (i32, i32) {
    %c0_i32 = arith.constant 0 : i32
    %c0_i32_0 = arith.constant 0 : i32
    return %arg0, %c0_i32 : i32, i32
  }
}

module attributes {stable_mosaic.version = 11 : i64} {
  func.func @_gemm_bias_kernel(%arg0: i32, %arg1: memref<32x288xbf16, #tpu.memory_space<vmem>>, %arg2: memref<288x64xbf16, #tpu.memory_space<vmem>>, %arg3: memref<1x64xf32, #tpu.memory_space<vmem>>, %arg4: memref<32x64xbf16, #tpu.memory_space<vmem>>) attributes {dimension_semantics = [#tpu.dimension_semantics<parallel>], iteration_bounds = array<i64: 1>, scalar_prefetch = 0 : i64, scratch_operands = 0 : i64, tpu.core_type = #tpu.core_type<tc>, window_params = [{transform_indices = @transform_0, window_bounds = array<i64: 32, 288>}, {pipeline_mode = #tpu.pipeline_mode<synchronous>, transform_indices = @transform_1, window_bounds = array<i64: 288, 64>}, {pipeline_mode = #tpu.pipeline_mode<synchronous>, transform_indices = @transform_2, window_bounds = array<i64: 1, 64>}, {transform_indices = @transform_3, window_bounds = array<i64: 32, 64>}]} {
    %c0 = arith.constant 0 : index
    %c0_0 = arith.constant 0 : index
    %0 = vector.load %arg1[%c0, %c0_0] : memref<32x288xbf16, #tpu.memory_space<vmem>>, vector<32x288xbf16>
    %c0_1 = arith.constant 0 : index
    %c0_2 = arith.constant 0 : index
    %1 = vector.load %arg2[%c0_1, %c0_2] : memref<288x64xbf16, #tpu.memory_space<vmem>>, vector<288x64xbf16>
    %cst = arith.constant dense<0.000000e+00> : vector<32x64xf32>
    %2 = tpu.matmul %0, %1, %cst {dimension_numbers = #tpu.dot_dimension_numbers<[1], [0], [0], [1], [0, 0, 1, 1], [], []>} : vector<32x288xbf16>, vector<288x64xbf16>, vector<32x64xf32> -> vector<32x64xf32>
    %c0_3 = arith.constant 0 : index
    %c0_4 = arith.constant 0 : index
    %3 = vector.load %arg3[%c0_3, %c0_4] : memref<1x64xf32, #tpu.memory_space<vmem>>, vector<1x64xf32>
    %4 = vector.broadcast %3 : vector<1x64xf32> to vector<32x64xf32>
    %5 = arith.addf %2, %4 : vector<32x64xf32>
    %6 = arith.truncf %5 : vector<32x64xf32> to vector<32x64xbf16>
    %c0_5 = arith.constant 0 : index
    %c0_6 = arith.constant 0 : index
    %7 = vector.load %arg4[%c0_5, %c0_6] : memref<32x64xbf16, #tpu.memory_space<vmem>>, vector<32x64xbf16>
    tpu.vector_store %arg4[%c0_5, %c0_6], %6 {strides = array<i32>} : memref<32x64xbf16, #tpu.memory_space<vmem>>, vector<32x64xbf16>,
    return
  }
  func.func @transform_0(%arg0: i32) -> (i32, i32) {
    %c0_i32 = arith.constant 0 : i32
    %c0_i32_0 = arith.constant 0 : i32
    return %arg0, %c0_i32 : i32, i32
  }
  func.func @transform_1(%arg0: i32) -> (i32, i32) {
    %c0_i32 = arith.constant 0 : i32
    %c0_i32_0 = arith.constant 0 : i32
    %c0_i32_1 = arith.constant 0 : i32
    return %c0_i32, %c0_i32_0 : i32, i32
  }
  func.func @transform_2(%arg0: i32) -> (i32, i32) {
    %c0_i32 = arith.constant 0 : i32
    %c0_i32_0 = arith.constant 0 : i32
    %c0_i32_1 = arith.constant 0 : i32
    return %c0_i32, %c0_i32_0 : i32, i32
  }
  func.func @transform_3(%arg0: i32) -> (i32, i32) {
    %c0_i32 = arith.constant 0 : i32
    %c0_i32_0 = arith.constant 0 : i32
    return %arg0, %c0_i32 : i32, i32
  }
}

module attributes {stable_mosaic.version = 11 : i64} {
  func.func @_gemm_bias_kernel(%arg0: i32, %arg1: memref<8x576xbf16, #tpu.memory_space<vmem>>, %arg2: memref<576x128xbf16, #tpu.memory_space<vmem>>, %arg3: memref<1x128xf32, #tpu.memory_space<vmem>>, %arg4: memref<8x128xbf16, #tpu.memory_space<vmem>>) attributes {dimension_semantics = [#tpu.dimension_semantics<parallel>], iteration_bounds = array<i64: 1>, scalar_prefetch = 0 : i64, scratch_operands = 0 : i64, tpu.core_type = #tpu.core_type<tc>, window_params = [{transform_indices = @transform_0, window_bounds = array<i64: 8, 576>}, {pipeline_mode = #tpu.pipeline_mode<synchronous>, transform_indices = @transform_1, window_bounds = array<i64: 576, 128>}, {pipeline_mode = #tpu.pipeline_mode<synchronous>, transform_indices = @transform_2, window_bounds = array<i64: 1, 128>}, {transform_indices = @transform_3, window_bounds = array<i64: 8, 128>}]} {
    %c0 = arith.constant 0 : index
    %c0_0 = arith.constant 0 : index
    %0 = vector.load %arg1[%c0, %c0_0] : memref<8x576xbf16, #tpu.memory_space<vmem>>, vector<8x576xbf16>
    %c0_1 = arith.constant 0 : index
    %c0_2 = arith.constant 0 : index
    %1 = vector.load %arg2[%c0_1, %c0_2] : memref<576x128xbf16, #tpu.memory_space<vmem>>, vector<576x128xbf16>
    %cst = arith.constant dense<0.000000e+00> : vector<8x128xf32>
    %2 = tpu.matmul %0, %1, %cst {dimension_numbers = #tpu.dot_dimension_numbers<[1], [0], [0], [1], [0, 0, 1, 1], [], []>} : vector<8x576xbf16>, vector<576x128xbf16>, vector<8x128xf32> -> vector<8x128xf32>
    %c0_3 = arith.constant 0 : index
    %c0_4 = arith.constant 0 : index
    %3 = vector.load %arg3[%c0_3, %c0_4] : memref<1x128xf32, #tpu.memory_space<vmem>>, vector<1x128xf32>
    %4 = vector.broadcast %3 : vector<1x128xf32> to vector<8x128xf32>
    %5 = arith.addf %2, %4 : vector<8x128xf32>
    %6 = arith.truncf %5 : vector<8x128xf32> to vector<8x128xbf16>
    %c0_5 = arith.constant 0 : index
    %c0_6 = arith.constant 0 : index
    %7 = vector.load %arg4[%c0_5, %c0_6] : memref<8x128xbf16, #tpu.memory_space<vmem>>, vector<8x128xbf16>
    tpu.vector_store %arg4[%c0_5, %c0_6], %6 {strides = array<i32>} : memref<8x128xbf16, #tpu.memory_space<vmem>>, vector<8x128xbf16>,
    return
  }
  func.func @transform_0(%arg0: i32) -> (i32, i32) {
    %c0_i32 = arith.constant 0 : i32
    %c0_i32_0 = arith.constant 0 : i32
    return %arg0, %c0_i32 : i32, i32
  }
  func.func @transform_1(%arg0: i32) -> (i32, i32) {
    %c0_i32 = arith.constant 0 : i32
    %c0_i32_0 = arith.constant 0 : i32
    %c0_i32_1 = arith.constant 0 : i32
    return %c0_i32, %c0_i32_0 : i32, i32
  }
  func.func @transform_2(%arg0: i32) -> (i32, i32) {
    %c0_i32 = arith.constant 0 : i32
    %c0_i32_0 = arith.constant 0 : i32
    %c0_i32_1 = arith.constant 0 : i32
    return %c0_i32, %c0_i32_0 : i32, i32
  }
  func.func @transform_3(%arg0: i32) -> (i32, i32) {
    %c0_i32 = arith.constant 0 : i32
    %c0_i32_0 = arith.constant 0 : i32
    return %arg0, %c0_i32 : i32, i32
  }
}

module attributes {stable_mosaic.version = 11 : i64} {
  func.func @_fused_skip_gemm_kernel(%arg0: i32, %arg1: memref<8x128xbf16, #tpu.memory_space<vmem>>, %arg2: memref<128x256xbf16, #tpu.memory_space<vmem>>, %arg3: memref<8x256xbf16, #tpu.memory_space<vmem>>, %arg4: memref<256x256xbf16, #tpu.memory_space<vmem>>, %arg5: memref<1x256xf32, #tpu.memory_space<vmem>>, %arg6: memref<8x256xbf16, #tpu.memory_space<vmem>>) attributes {dimension_semantics = [#tpu.dimension_semantics<parallel>], iteration_bounds = array<i64: 1>, scalar_prefetch = 0 : i64, scratch_operands = 0 : i64, tpu.core_type = #tpu.core_type<tc>, window_params = [{transform_indices = @transform_0, window_bounds = array<i64: 8, 128>}, {pipeline_mode = #tpu.pipeline_mode<synchronous>, transform_indices = @transform_1, window_bounds = array<i64: 128, 256>}, {transform_indices = @transform_2, window_bounds = array<i64: 8, 256>}, {pipeline_mode = #tpu.pipeline_mode<synchronous>, transform_indices = @transform_3, window_bounds = array<i64: 256, 256>}, {pipeline_mode = #tpu.pipeline_mode<synchronous>, transform_indices = @transform_4, window_bounds = array<i64: 1, 256>}, {transform_indices = @transform_5, window_bounds = array<i64: 8, 256>}]} {
    %c0 = arith.constant 0 : index
    %c0_0 = arith.constant 0 : index
    %0 = vector.load %arg1[%c0, %c0_0] : memref<8x128xbf16, #tpu.memory_space<vmem>>, vector<8x128xbf16>
    %c0_1 = arith.constant 0 : index
    %c0_2 = arith.constant 0 : index
    %1 = vector.load %arg2[%c0_1, %c0_2] : memref<128x256xbf16, #tpu.memory_space<vmem>>, vector<128x256xbf16>
    %cst = arith.constant dense<0.000000e+00> : vector<8x256xf32>
    %2 = tpu.matmul %0, %1, %cst {dimension_numbers = #tpu.dot_dimension_numbers<[1], [0], [0], [1], [0, 0, 1, 1], [], []>} : vector<8x128xbf16>, vector<128x256xbf16>, vector<8x256xf32> -> vector<8x256xf32>
    %c0_3 = arith.constant 0 : index
    %c0_4 = arith.constant 0 : index
    %3 = vector.load %arg3[%c0_3, %c0_4] : memref<8x256xbf16, #tpu.memory_space<vmem>>, vector<8x256xbf16>
    %c0_5 = arith.constant 0 : index
    %c0_6 = arith.constant 0 : index
    %4 = vector.load %arg4[%c0_5, %c0_6] : memref<256x256xbf16, #tpu.memory_space<vmem>>, vector<256x256xbf16>
    %cst_7 = arith.constant dense<0.000000e+00> : vector<8x256xf32>
    %5 = tpu.matmul %3, %4, %cst_7 {dimension_numbers = #tpu.dot_dimension_numbers<[1], [0], [0], [1], [0, 0, 1, 1], [], []>} : vector<8x256xbf16>, vector<256x256xbf16>, vector<8x256xf32> -> vector<8x256xf32>
    %6 = arith.addf %2, %5 : vector<8x256xf32>
    %c0_8 = arith.constant 0 : index
    %c0_9 = arith.constant 0 : index
    %7 = vector.load %arg5[%c0_8, %c0_9] : memref<1x256xf32, #tpu.memory_space<vmem>>, vector<1x256xf32>
    %8 = vector.broadcast %7 : vector<1x256xf32> to vector<8x256xf32>
    %9 = arith.addf %6, %8 : vector<8x256xf32>
    %10 = arith.truncf %9 : vector<8x256xf32> to vector<8x256xbf16>
    %c0_10 = arith.constant 0 : index
    %c0_11 = arith.constant 0 : index
    %11 = vector.load %arg6[%c0_10, %c0_11] : memref<8x256xbf16, #tpu.memory_space<vmem>>, vector<8x256xbf16>
    tpu.vector_store %arg6[%c0_10, %c0_11], %10 {strides = array<i32>} : memref<8x256xbf16, #tpu.memory_space<vmem>>, vector<8x256xbf16>,
    return
  }
  func.func @transform_0(%arg0: i32) -> (i32, i32) {
    %c0_i32 = arith.constant 0 : i32
    %c0_i32_0 = arith.constant 0 : i32
    return %arg0, %c0_i32 : i32, i32
  }
  func.func @transform_1(%arg0: i32) -> (i32, i32) {
    %c0_i32 = arith.constant 0 : i32
    %c0_i32_0 = arith.constant 0 : i32
    %c0_i32_1 = arith.constant 0 : i32
    return %c0_i32, %c0_i32_0 : i32, i32
  }
  func.func @transform_2(%arg0: i32) -> (i32, i32) {
    %c0_i32 = arith.constant 0 : i32
    %c0_i32_0 = arith.constant 0 : i32
    return %arg0, %c0_i32 : i32, i32
  }
  func.func @transform_3(%arg0: i32) -> (i32, i32) {
    %c0_i32 = arith.constant 0 : i32
    %c0_i32_0 = arith.constant 0 : i32
    %c0_i32_1 = arith.constant 0 : i32
    return %c0_i32, %c0_i32_0 : i32, i32
  }
  func.func @transform_4(%arg0: i32) -> (i32, i32) {
    %c0_i32 = arith.constant 0 : i32
    %c0_i32_0 = arith.constant 0 : i32
    %c0_i32_1 = arith.constant 0 : i32
    return %c0_i32, %c0_i32_0 : i32, i32
  }
  func.func @transform_5(%arg0: i32) -> (i32, i32) {
    %c0_i32 = arith.constant 0 : i32
    %c0_i32_0 = arith.constant 0 : i32
    return %arg0, %c0_i32 : i32, i32
  }
}

module attributes {stable_mosaic.version = 11 : i64} {
  func.func @_fused_skip_gemm_kernel(%arg0: i32, %arg1: memref<32x64xbf16, #tpu.memory_space<vmem>>, %arg2: memref<64x128xbf16, #tpu.memory_space<vmem>>, %arg3: memref<32x128xbf16, #tpu.memory_space<vmem>>, %arg4: memref<128x128xbf16, #tpu.memory_space<vmem>>, %arg5: memref<1x128xf32, #tpu.memory_space<vmem>>, %arg6: memref<32x128xbf16, #tpu.memory_space<vmem>>) attributes {dimension_semantics = [#tpu.dimension_semantics<parallel>], iteration_bounds = array<i64: 1>, scalar_prefetch = 0 : i64, scratch_operands = 0 : i64, tpu.core_type = #tpu.core_type<tc>, window_params = [{transform_indices = @transform_0, window_bounds = array<i64: 32, 64>}, {pipeline_mode = #tpu.pipeline_mode<synchronous>, transform_indices = @transform_1, window_bounds = array<i64: 64, 128>}, {transform_indices = @transform_2, window_bounds = array<i64: 32, 128>}, {pipeline_mode = #tpu.pipeline_mode<synchronous>, transform_indices = @transform_3, window_bounds = array<i64: 128, 128>}, {pipeline_mode = #tpu.pipeline_mode<synchronous>, transform_indices = @transform_4, window_bounds = array<i64: 1, 128>}, {transform_indices = @transform_5, window_bounds = array<i64: 32, 128>}]} {
    %c0 = arith.constant 0 : index
    %c0_0 = arith.constant 0 : index
    %0 = vector.load %arg1[%c0, %c0_0] : memref<32x64xbf16, #tpu.memory_space<vmem>>, vector<32x64xbf16>
    %c0_1 = arith.constant 0 : index
    %c0_2 = arith.constant 0 : index
    %1 = vector.load %arg2[%c0_1, %c0_2] : memref<64x128xbf16, #tpu.memory_space<vmem>>, vector<64x128xbf16>
    %cst = arith.constant dense<0.000000e+00> : vector<32x128xf32>
    %2 = tpu.matmul %0, %1, %cst {dimension_numbers = #tpu.dot_dimension_numbers<[1], [0], [0], [1], [0, 0, 1, 1], [], []>} : vector<32x64xbf16>, vector<64x128xbf16>, vector<32x128xf32> -> vector<32x128xf32>
    %c0_3 = arith.constant 0 : index
    %c0_4 = arith.constant 0 : index
    %3 = vector.load %arg3[%c0_3, %c0_4] : memref<32x128xbf16, #tpu.memory_space<vmem>>, vector<32x128xbf16>
    %c0_5 = arith.constant 0 : index
    %c0_6 = arith.constant 0 : index
    %4 = vector.load %arg4[%c0_5, %c0_6] : memref<128x128xbf16, #tpu.memory_space<vmem>>, vector<128x128xbf16>
    %cst_7 = arith.constant dense<0.000000e+00> : vector<32x128xf32>
    %5 = tpu.matmul %3, %4, %cst_7 {dimension_numbers = #tpu.dot_dimension_numbers<[1], [0], [0], [1], [0, 0, 1, 1], [], []>} : vector<32x128xbf16>, vector<128x128xbf16>, vector<32x128xf32> -> vector<32x128xf32>
    %6 = arith.addf %2, %5 : vector<32x128xf32>
    %c0_8 = arith.constant 0 : index
    %c0_9 = arith.constant 0 : index
    %7 = vector.load %arg5[%c0_8, %c0_9] : memref<1x128xf32, #tpu.memory_space<vmem>>, vector<1x128xf32>
    %8 = vector.broadcast %7 : vector<1x128xf32> to vector<32x128xf32>
    %9 = arith.addf %6, %8 : vector<32x128xf32>
    %10 = arith.truncf %9 : vector<32x128xf32> to vector<32x128xbf16>
    %c0_10 = arith.constant 0 : index
    %c0_11 = arith.constant 0 : index
    %11 = vector.load %arg6[%c0_10, %c0_11] : memref<32x128xbf16, #tpu.memory_space<vmem>>, vector<32x128xbf16>
    tpu.vector_store %arg6[%c0_10, %c0_11], %10 {strides = array<i32>} : memref<32x128xbf16, #tpu.memory_space<vmem>>, vector<32x128xbf16>,
    return
  }
  func.func @transform_0(%arg0: i32) -> (i32, i32) {
    %c0_i32 = arith.constant 0 : i32
    %c0_i32_0 = arith.constant 0 : i32
    return %arg0, %c0_i32 : i32, i32
  }
  func.func @transform_1(%arg0: i32) -> (i32, i32) {
    %c0_i32 = arith.constant 0 : i32
    %c0_i32_0 = arith.constant 0 : i32
    %c0_i32_1 = arith.constant 0 : i32
    return %c0_i32, %c0_i32_0 : i32, i32
  }
  func.func @transform_2(%arg0: i32) -> (i32, i32) {
    %c0_i32 = arith.constant 0 : i32
    %c0_i32_0 = arith.constant 0 : i32
    return %arg0, %c0_i32 : i32, i32
  }
  func.func @transform_3(%arg0: i32) -> (i32, i32) {
    %c0_i32 = arith.constant 0 : i32
    %c0_i32_0 = arith.constant 0 : i32
    %c0_i32_1 = arith.constant 0 : i32
    return %c0_i32, %c0_i32_0 : i32, i32
  }
  func.func @transform_4(%arg0: i32) -> (i32, i32) {
    %c0_i32 = arith.constant 0 : i32
    %c0_i32_0 = arith.constant 0 : i32
    %c0_i32_1 = arith.constant 0 : i32
    return %c0_i32, %c0_i32_0 : i32, i32
  }
  func.func @transform_5(%arg0: i32) -> (i32, i32) {
    %c0_i32 = arith.constant 0 : i32
    %c0_i32_0 = arith.constant 0 : i32
    return %arg0, %c0_i32 : i32, i32
  }
}

module attributes {stable_mosaic.version = 11 : i64} {
  func.func @_fused_skip_gemm_kernel(%arg0: i32, %arg1: memref<128x32xbf16, #tpu.memory_space<vmem>>, %arg2: memref<32x64xbf16, #tpu.memory_space<vmem>>, %arg3: memref<128x64xbf16, #tpu.memory_space<vmem>>, %arg4: memref<64x64xbf16, #tpu.memory_space<vmem>>, %arg5: memref<1x64xf32, #tpu.memory_space<vmem>>, %arg6: memref<128x64xbf16, #tpu.memory_space<vmem>>) attributes {dimension_semantics = [#tpu.dimension_semantics<parallel>], iteration_bounds = array<i64: 1>, scalar_prefetch = 0 : i64, scratch_operands = 0 : i64, tpu.core_type = #tpu.core_type<tc>, window_params = [{transform_indices = @transform_0, window_bounds = array<i64: 128, 32>}, {pipeline_mode = #tpu.pipeline_mode<synchronous>, transform_indices = @transform_1, window_bounds = array<i64: 32, 64>}, {transform_indices = @transform_2, window_bounds = array<i64: 128, 64>}, {pipeline_mode = #tpu.pipeline_mode<synchronous>, transform_indices = @transform_3, window_bounds = array<i64: 64, 64>}, {pipeline_mode = #tpu.pipeline_mode<synchronous>, transform_indices = @transform_4, window_bounds = array<i64: 1, 64>}, {transform_indices = @transform_5, window_bounds = array<i64: 128, 64>}]} {
    %c0 = arith.constant 0 : index
    %c0_0 = arith.constant 0 : index
    %0 = vector.load %arg1[%c0, %c0_0] : memref<128x32xbf16, #tpu.memory_space<vmem>>, vector<128x32xbf16>
    %c0_1 = arith.constant 0 : index
    %c0_2 = arith.constant 0 : index
    %1 = vector.load %arg2[%c0_1, %c0_2] : memref<32x64xbf16, #tpu.memory_space<vmem>>, vector<32x64xbf16>
    %cst = arith.constant dense<0.000000e+00> : vector<128x64xf32>
    %2 = tpu.matmul %0, %1, %cst {dimension_numbers = #tpu.dot_dimension_numbers<[1], [0], [0], [1], [0, 0, 1, 1], [], []>} : vector<128x32xbf16>, vector<32x64xbf16>, vector<128x64xf32> -> vector<128x64xf32>
    %c0_3 = arith.constant 0 : index
    %c0_4 = arith.constant 0 : index
    %3 = vector.load %arg3[%c0_3, %c0_4] : memref<128x64xbf16, #tpu.memory_space<vmem>>, vector<128x64xbf16>
    %c0_5 = arith.constant 0 : index
    %c0_6 = arith.constant 0 : index
    %4 = vector.load %arg4[%c0_5, %c0_6] : memref<64x64xbf16, #tpu.memory_space<vmem>>, vector<64x64xbf16>
    %cst_7 = arith.constant dense<0.000000e+00> : vector<128x64xf32>
    %5 = tpu.matmul %3, %4, %cst_7 {dimension_numbers = #tpu.dot_dimension_numbers<[1], [0], [0], [1], [0, 0, 1, 1], [], []>} : vector<128x64xbf16>, vector<64x64xbf16>, vector<128x64xf32> -> vector<128x64xf32>
    %6 = arith.addf %2, %5 : vector<128x64xf32>
    %c0_8 = arith.constant 0 : index
    %c0_9 = arith.constant 0 : index
    %7 = vector.load %arg5[%c0_8, %c0_9] : memref<1x64xf32, #tpu.memory_space<vmem>>, vector<1x64xf32>
    %8 = vector.broadcast %7 : vector<1x64xf32> to vector<128x64xf32>
    %9 = arith.addf %6, %8 : vector<128x64xf32>
    %10 = arith.truncf %9 : vector<128x64xf32> to vector<128x64xbf16>
    %c0_10 = arith.constant 0 : index
    %c0_11 = arith.constant 0 : index
    %11 = vector.load %arg6[%c0_10, %c0_11] : memref<128x64xbf16, #tpu.memory_space<vmem>>, vector<128x64xbf16>
    tpu.vector_store %arg6[%c0_10, %c0_11], %10 {strides = array<i32>} : memref<128x64xbf16, #tpu.memory_space<vmem>>, vector<128x64xbf16>,
    return
  }
  func.func @transform_0(%arg0: i32) -> (i32, i32) {
    %c0_i32 = arith.constant 0 : i32
    %c0_i32_0 = arith.constant 0 : i32
    return %arg0, %c0_i32 : i32, i32
  }
  func.func @transform_1(%arg0: i32) -> (i32, i32) {
    %c0_i32 = arith.constant 0 : i32
    %c0_i32_0 = arith.constant 0 : i32
    %c0_i32_1 = arith.constant 0 : i32
    return %c0_i32, %c0_i32_0 : i32, i32
  }
  func.func @transform_2(%arg0: i32) -> (i32, i32) {
    %c0_i32 = arith.constant 0 : i32
    %c0_i32_0 = arith.constant 0 : i32
    return %arg0, %c0_i32 : i32, i32
  }
  func.func @transform_3(%arg0: i32) -> (i32, i32) {
    %c0_i32 = arith.constant 0 : i32
    %c0_i32_0 = arith.constant 0 : i32
    %c0_i32_1 = arith.constant 0 : i32
    return %c0_i32, %c0_i32_0 : i32, i32
  }
  func.func @transform_4(%arg0: i32) -> (i32, i32) {
    %c0_i32 = arith.constant 0 : i32
    %c0_i32_0 = arith.constant 0 : i32
    %c0_i32_1 = arith.constant 0 : i32
    return %c0_i32, %c0_i32_0 : i32, i32
  }
  func.func @transform_5(%arg0: i32) -> (i32, i32) {
    %c0_i32 = arith.constant 0 : i32
    %c0_i32_0 = arith.constant 0 : i32
    return %arg0, %c0_i32 : i32, i32
  }
}

module attributes {stable_mosaic.version = 11 : i64} {
  func.func @_gemm_bias_kernel(%arg0: i32, %arg1: memref<512x144xbf16, #tpu.memory_space<vmem>>, %arg2: memref<144x3xbf16, #tpu.memory_space<vmem>>, %arg3: memref<1x3xf32, #tpu.memory_space<vmem>>, %arg4: memref<512x3xbf16, #tpu.memory_space<vmem>>) attributes {dimension_semantics = [#tpu.dimension_semantics<parallel>], iteration_bounds = array<i64: 1>, scalar_prefetch = 0 : i64, scratch_operands = 0 : i64, tpu.core_type = #tpu.core_type<tc>, window_params = [{transform_indices = @transform_0, window_bounds = array<i64: 512, 144>}, {pipeline_mode = #tpu.pipeline_mode<synchronous>, transform_indices = @transform_1, window_bounds = array<i64: 144, 3>}, {pipeline_mode = #tpu.pipeline_mode<synchronous>, transform_indices = @transform_2, window_bounds = array<i64: 1, 3>}, {transform_indices = @transform_3, window_bounds = array<i64: 512, 3>}]} {
    %c0 = arith.constant 0 : index
    %c0_0 = arith.constant 0 : index
    %0 = vector.load %arg1[%c0, %c0_0] : memref<512x144xbf16, #tpu.memory_space<vmem>>, vector<512x144xbf16>
    %c0_1 = arith.constant 0 : index
    %c0_2 = arith.constant 0 : index
    %1 = vector.load %arg2[%c0_1, %c0_2] : memref<144x3xbf16, #tpu.memory_space<vmem>>, vector<144x3xbf16>
    %cst = arith.constant dense<0.000000e+00> : vector<512x3xf32>
    %2 = tpu.matmul %0, %1, %cst {dimension_numbers = #tpu.dot_dimension_numbers<[1], [0], [0], [1], [0, 0, 1, 1], [], []>} : vector<512x144xbf16>, vector<144x3xbf16>, vector<512x3xf32> -> vector<512x3xf32>
    %c0_3 = arith.constant 0 : index
    %c0_4 = arith.constant 0 : index
    %3 = vector.load %arg3[%c0_3, %c0_4] : memref<1x3xf32, #tpu.memory_space<vmem>>, vector<1x3xf32>
    %4 = vector.broadcast %3 : vector<1x3xf32> to vector<512x3xf32>
    %5 = arith.addf %2, %4 : vector<512x3xf32>
    %6 = arith.truncf %5 : vector<512x3xf32> to vector<512x3xbf16>
    %c0_5 = arith.constant 0 : index
    %c0_6 = arith.constant 0 : index
    %7 = vector.load %arg4[%c0_5, %c0_6] : memref<512x3xbf16, #tpu.memory_space<vmem>>, vector<512x3xbf16>
    tpu.vector_store %arg4[%c0_5, %c0_6], %6 {strides = array<i32>} : memref<512x3xbf16, #tpu.memory_space<vmem>>, vector<512x3xbf16>,
    return
  }
  func.func @transform_0(%arg0: i32) -> (i32, i32) {
    %c0_i32 = arith.constant 0 : i32
    %c0_i32_0 = arith.constant 0 : i32
    return %arg0, %c0_i32 : i32, i32
  }
  func.func @transform_1(%arg0: i32) -> (i32, i32) {
    %c0_i32 = arith.constant 0 : i32
    %c0_i32_0 = arith.constant 0 : i32
    %c0_i32_1 = arith.constant 0 : i32
    return %c0_i32, %c0_i32_0 : i32, i32
  }
  func.func @transform_2(%arg0: i32) -> (i32, i32) {
    %c0_i32 = arith.constant 0 : i32
    %c0_i32_0 = arith.constant 0 : i32
    %c0_i32_1 = arith.constant 0 : i32
    return %c0_i32, %c0_i32_0 : i32, i32
  }
  func.func @transform_3(%arg0: i32) -> (i32, i32) {
    %c0_i32 = arith.constant 0 : i32
    %c0_i32_0 = arith.constant 0 : i32
    return %arg0, %c0_i32 : i32, i32
  }
}

</mosaic_0001>

<bundles_post_ra>
// kernel: promptir_baseline_forward.8
= control target key start
LH: loop header
LB: loop body
LE: loop exit
PB: predicated region body
PF: predicated region fallthrough
CT: control target
= control target key end

     0   :  { %vm358_vm0 = vcmask 1044480   ;;  %vm359_vm1 = vcmask 1045504   ;;  %vm261_vm2 = vcmask 220160   ;;  %v1315_v1 = vmov 65535   ;;  %s1795_s1 = inlined_call_operand.vmem [shape: bf16[27,16], index: 1, kind: input, shape index: {}]   ;;  %s1796_s0 = inlined_call_operand.vmem [shape: bf16[512,27], index: 0, kind: input, shape index: {}]   ;;  %s1797_s2 = inlined_call_operand.vmem [shape: f32[1,16], index: 2, kind: input, shape index: {}]   ;;  %s1798_s3 = inlined_call_operand.vmem [shape: bf16[512,16], index: 3, kind: output, shape index: {}]  }
   0x1   :  { %v1281_v0 = vld [vmem:[%s1795_s1] sm:$0xff]   ;;  %v360_v2 = vsel %vm358_vm0, 4294967295, %v1315_v1  ;;  %v1282_v3 = vld [vmem:[%s1795_s1 + $0x8] sm:$0x3f]   ;;  %v1287_v10 = vld [vmem:[%s1796_s0 + $0x10] sm:$0xff]   ;;  %vm910_vm3 = vcmask 125952  }
   0x2   :  { %1208 = vmatprep.subr.bf16.mxu0 %v1281_v0  ;;  %1276 = vmatprep.subr.bf16.mxu1 %v1281_v0  ;;  %v361_v4 = vsel %vm359_vm1, %v360_v2, 0  ;;  %v1283_v5 = vld [vmem:[%s1796_s0] sm:$0xff]   ;;  %v1285_v8 = vld [vmem:[%s1796_s0 + $0x8] sm:$0xff]   ;;  %v1288_v11 = vld [vmem:[%s1796_s0 + $0x90] sm:$0xff]  }
   0x3   :  { %1209 = vmatpush3.bf16.msra.mxu0 %v1281_v0  ;;  %1278 = vmatpush3.bf16.msra.mxu1 %v1281_v0  ;;  %v363_v6 = vand.u32 %v1282_v3, %v361_v4  ;;  %v1284_v7 = vld [vmem:[%s1796_s0 + $0x80] sm:$0xff]   ;;  %v1286_v9 = vld [vmem:[%s1796_s0 + $0x88] sm:$0xff]   ;;  %v1289_v12 = vld [vmem:[%s1796_s0 + $0x18] sm:$0xff]  }
   0x4   :  { %1212 = vmatprep.mubr.msk.bf16.mxu0 %vm261_vm2, %v1283_v5  ;;  %1244 = vmatprep.mubr.msk.bf16.mxu1 %vm261_vm2, %v1284_v7  ;;  %v1290_v13 = vld [vmem:[%s1796_s0 + $0x98] sm:$0xff]   ;;  %v1291_v14 = vld [vmem:[%s1796_s0 + $0x20] sm:$0xff]   ;;  %v1293_v16 = vld [vmem:[%s1796_s0 + $0x28] sm:$0xff]  }
   0x5   :  { %1210 = vmatprep.subr.bf16.mxu0 %v363_v6  ;;  %1277 = vmatprep.subr.bf16.mxu1 %v363_v6  ;;  %v1292_v15 = vld [vmem:[%s1796_s0 + $0xa0] sm:$0xff]   ;;  %v1294_v17 = vld [vmem:[%s1796_s0 + $0xa8] sm:$0xff]   ;;  %v1295_v18 = vld [vmem:[%s1796_s0 + $0x30] sm:$0xff]  }
   0x6   :  { %v1296_v19 = vld [vmem:[%s1796_s0 + $0xb0] sm:$0xff]   ;;  %v1297_v20 = vld [vmem:[%s1796_s0 + $0x38] sm:$0xff]   ;;  %v1299_v22 = vld [vmem:[%s1796_s0 + $0x40] sm:$0xff]  }
   0x7   :  { %1211 = vmatpush3.bf16.msra.mxu0 %v363_v6  ;;  %1279 = vmatpush3.bf16.msra.mxu1 %v363_v6  ;;  %v1298_v21 = vld [vmem:[%s1796_s0 + $0xb8] sm:$0xff]   ;;  %v1300_v23 = vld [vmem:[%s1796_s0 + $0xc0] sm:$0xff]   ;;  %v1301_v24 = vld [vmem:[%s1796_s0 + $0x48] sm:$0xff]  }
   0x8   :  { %v1302_v25 = vld [vmem:[%s1796_s0 + $0xc8] sm:$0xff]   ;;  %v1303_v26 = vld [vmem:[%s1796_s0 + $0x50] sm:$0xff]   ;;  %v1305_v28 = vld [vmem:[%s1796_s0 + $0x58] sm:$0xff]  }
   0x9   :  { %v1304_v27 = vld [vmem:[%s1796_s0 + $0xd0] sm:$0xff]   ;;  %v1306_v29 = vld [vmem:[%s1796_s0 + $0xd8] sm:$0xff]   ;;  %v1307_v30 = vld [vmem:[%s1796_s0 + $0x60] sm:$0xff]  }
   0xa   :  { %1213 = vmatmul.mubr.msk.bf16.vlgmr.msra.gmra.mrb[0].mxu0 %vm261_vm2, %v1285_v8  ;;  %1245 = vmatmul.mubr.msk.bf16.vlgmr.msra.gmra.mrb[0].mxu1 %vm261_vm2, %v1286_v9  ;;  %v1308_v31 = vld [vmem:[%s1796_s0 + $0xe0] sm:$0xff]   ;;  %v1309_v32 = vld [vmem:[%s1796_s0 + $0x68] sm:$0xff]   ;;  %v1311_v34 = vld [vmem:[%s1796_s0 + $0x70] sm:$0xff]  }
   0xb   :  { %1216 = vmatprep.mubr.msk.bf16.mxu0 %vm261_vm2, %v1287_v10  ;;  %1248 = vmatprep.mubr.msk.bf16.mxu1 %vm261_vm2, %v1288_v11  ;;  %v1310_v33 = vld [vmem:[%s1796_s0 + $0xe8] sm:$0xff]   ;;  %v1312_v35 = vld [vmem:[%s1796_s0 + $0xf0] sm:$0xff]   ;;  %v1313_v36 = vld [vmem:[%s1796_s0 + $0x78] sm:$0xff]  }
   0xc   :  { %v1314_v37 = vld [vmem:[%s1796_s0 + $0xf8] sm:$0xff]   ;;  %v1473_v38 = vld [vmem:[%s1797_s2] ss:$0 sm:$0xff] }
  0x12   :  { %1217 = vmatmul.mubr.msk.bf16.gmra.mrb[4].mxu0 %vm261_vm2, %v1289_v12  ;;  %1249 = vmatmul.mubr.msk.bf16.gmra.mrb[4].mxu1 %vm261_vm2, %v1290_v13 }
  0x13   :  { %1220 = vmatprep.mubr.msk.bf16.mxu0 %vm261_vm2, %v1291_v14  ;;  %1252 = vmatprep.mubr.msk.bf16.mxu1 %vm261_vm2, %v1292_v15 }
  0x1a   :  { %1221 = vmatmul.mubr.msk.bf16.gmra.mrb[8].mxu0 %vm261_vm2, %v1293_v16  ;;  %1253 = vmatmul.mubr.msk.bf16.gmra.mrb[8].mxu1 %vm261_vm2, %v1294_v17 }
  0x1b   :  { %1224 = vmatprep.mubr.msk.bf16.mxu0 %vm261_vm2, %v1295_v18  ;;  %1256 = vmatprep.mubr.msk.bf16.mxu1 %vm261_vm2, %v1296_v19 }
  0x22   :  { %1225 = vmatmul.mubr.msk.bf16.gmra.mrb[12].mxu0 %vm261_vm2, %v1297_v20  ;;  %1257 = vmatmul.mubr.msk.bf16.gmra.mrb[12].mxu1 %vm261_vm2, %v1298_v21 }
  0x23   :  { %1228 = vmatprep.mubr.msk.bf16.mxu0 %vm261_vm2, %v1299_v22  ;;  %1260 = vmatprep.mubr.msk.bf16.mxu1 %vm261_vm2, %v1300_v23 }
  0x2a   :  { %1229 = vmatmul.mubr.msk.bf16.gmra.mrb[16].mxu0 %vm261_vm2, %v1301_v24  ;;  %1261 = vmatmul.mubr.msk.bf16.gmra.mrb[16].mxu1 %vm261_vm2, %v1302_v25 }
  0x2b   :  { %1232 = vmatprep.mubr.msk.bf16.mxu0 %vm261_vm2, %v1303_v26  ;;  %1264 = vmatprep.mubr.msk.bf16.mxu1 %vm261_vm2, %v1304_v27 }
  0x32   :  { %1233 = vmatmul.mubr.msk.bf16.gmra.mrb[20].mxu0 %vm261_vm2, %v1305_v28  ;;  %1265 = vmatmul.mubr.msk.bf16.gmra.mrb[20].mxu1 %vm261_vm2, %v1306_v29 }
  0x33   :  { %1236 = vmatprep.mubr.msk.bf16.mxu0 %vm261_vm2, %v1307_v30  ;;  %1268 = vmatprep.mubr.msk.bf16.mxu1 %vm261_vm2, %v1308_v31 }
  0x3a   :  { %1237 = vmatmul.mubr.msk.bf16.gmra.mrb[24].mxu0 %vm261_vm2, %v1309_v32  ;;  %1269 = vmatmul.mubr.msk.bf16.gmra.mrb[24].mxu1 %vm261_vm2, %v1310_v33 }
  0x3b   :  { %1240 = vmatprep.mubr.msk.bf16.mxu0 %vm261_vm2, %v1311_v34  ;;  %1272 = vmatprep.mubr.msk.bf16.mxu1 %vm261_vm2, %v1312_v35 }
  0x42   :  { %1241 = vmatmul.mubr.msk.bf16.gmra.mrb[28].mxu0 %vm261_vm2, %v1313_v36  ;;  %1273 = vmatmul.mubr.msk.bf16.gmra.mrb[28].mxu1 %vm261_vm2, %v1314_v37 }
  0xdd   :  { %v1214_v39 = vpop.f32.mrb[0].mxu0  ;;  %v1246_v40 = vpop.f32.mrb[0].mxu1 }
  0xde   :  { %v408_v41 = vadd.f32 %v1214_v39, %v1473_v38  ;;  %v536_v42 = vadd.f32 %v1246_v40, %v1473_v38  ;;  %v399_v43 = vpop.f32.mrb[1].mxu0  ;;  %v527_v44 = vpop.f32.mrb[1].mxu1 }
  0xdf   :  { %v400_v45 = vadd.f32 %v1473_v38, %v399_v43  ;;  %v528_v46 = vadd.f32 %v1473_v38, %v527_v44  ;;  %v1215_v47 = vpop.f32.mrb[2].mxu0  ;;  %v1247_v48 = vpop.f32.mrb[2].mxu1 }
  0xe0   :  { %v1112_v49 = vpack.c.bf16 %v408_v41, %v408_v41  ;;  %v1144_v50 = vpack.c.bf16 %v536_v42, %v536_v42  ;;  %v411_v51 = vadd.f32 %v1215_v47, %v1473_v38  ;;  %v539_v52 = vadd.f32 %v1247_v48, %v1473_v38  ;;  %v402_v53 = vpop.f32.mrb[3].mxu0  ;;  %v530_v54 = vpop.f32.mrb[3].mxu1 }
  0xe1   :  { %v1110_v55 = vpack.c.bf16 %v400_v45, %v400_v45  ;;  %v1142_v56 = vpack.c.bf16 %v528_v46, %v528_v46  ;;  %v403_v57 = vadd.f32 %v1473_v38, %v402_v53  ;;  %v531_v58 = vadd.f32 %v1473_v38, %v530_v54 }
  0xe2   :  { %913 = vst.msk [vmem:[%s1798_s3 + $0x8] sm:$0xf] %vm910_vm3, %v1112_v49  ;;  %945 = vst.msk [vmem:[%s1798_s3 + $0x88] sm:$0xf] %vm910_vm3, %v1144_v50  ;;  %v1113_v59 = vpack.c.bf16 %v411_v51, %v411_v51  ;;  %v1145_v60 = vpack.c.bf16 %v539_v52, %v539_v52 }
  0xe3   :  { %911 = vst.msk [vmem:[%s1798_s3] sm:$0xf] %vm910_vm3, %v1110_v55  ;;  %943 = vst.msk [vmem:[%s1798_s3 + $0x80] sm:$0xf] %vm910_vm3, %v1142_v56  ;;  %v1111_v61 = vpack.c.bf16 %v403_v57, %v403_v57  ;;  %v1143_v62 = vpack.c.bf16 %v531_v58, %v531_v58 }
  0xe4   :  { %914 = vst.msk [vmem:[%s1798_s3 + $0xc] sm:$0xf] %vm910_vm3, %v1113_v59  ;;  %946 = vst.msk [vmem:[%s1798_s3 + $0x8c] sm:$0xf] %vm910_vm3, %v1145_v60 }
  0xe5   :  { %912 = vst.msk [vmem:[%s1798_s3 + $0x4] sm:$0xf] %vm910_vm3, %v1111_v61  ;;  %944 = vst.msk [vmem:[%s1798_s3 + $0x84] sm:$0xf] %vm910_vm3, %v1143_v62  ;;  %v1218_v63 = vpop.f32.mrb[4].mxu0  ;;  %v1250_v0 = vpop.f32.mrb[4].mxu1 }
  0xe6   :  { %v424_v1 = vadd.f32 %v1218_v63, %v1473_v38  ;;  %v552_v2 = vadd.f32 %v1250_v0, %v1473_v38  ;;  %v415_v3 = vpop.f32.mrb[5].mxu0  ;;  %v543_v4 = vpop.f32.mrb[5].mxu1 }
  0xe7   :  { %v416_v5 = vadd.f32 %v1473_v38, %v415_v3  ;;  %v544_v6 = vadd.f32 %v1473_v38, %v543_v4  ;;  %v1219_v7 = vpop.f32.mrb[6].mxu0  ;;  %v1251_v8 = vpop.f32.mrb[6].mxu1 }
  0xe8   :  { %v1116_v9 = vpack.c.bf16 %v424_v1, %v424_v1  ;;  %v1148_v10 = vpack.c.bf16 %v552_v2, %v552_v2  ;;  %v427_v11 = vadd.f32 %v1219_v7, %v1473_v38  ;;  %v555_v12 = vadd.f32 %v1251_v8, %v1473_v38  ;;  %v418_v13 = vpop.f32.mrb[7].mxu0  ;;  %v546_v14 = vpop.f32.mrb[7].mxu1 }
  0xe9   :  { %v1114_v15 = vpack.c.bf16 %v416_v5, %v416_v5  ;;  %v1146_v16 = vpack.c.bf16 %v544_v6, %v544_v6  ;;  %v419_v17 = vadd.f32 %v1473_v38, %v418_v13  ;;  %v547_v18 = vadd.f32 %v1473_v38, %v546_v14 }
  0xea   :  { %917 = vst.msk [vmem:[%s1798_s3 + $0x18] sm:$0xf] %vm910_vm3, %v1116_v9  ;;  %949 = vst.msk [vmem:[%s1798_s3 + $0x98] sm:$0xf] %vm910_vm3, %v1148_v10  ;;  %v1117_v19 = vpack.c.bf16 %v427_v11, %v427_v11  ;;  %v1149_v20 = vpack.c.bf16 %v555_v12, %v555_v12 }
  0xeb   :  { %915 = vst.msk [vmem:[%s1798_s3 + $0x10] sm:$0xf] %vm910_vm3, %v1114_v15  ;;  %947 = vst.msk [vmem:[%s1798_s3 + $0x90] sm:$0xf] %vm910_vm3, %v1146_v16  ;;  %v1115_v21 = vpack.c.bf16 %v419_v17, %v419_v17  ;;  %v1147_v22 = vpack.c.bf16 %v547_v18, %v547_v18 }
  0xec   :  { %918 = vst.msk [vmem:[%s1798_s3 + $0x1c] sm:$0xf] %vm910_vm3, %v1117_v19  ;;  %950 = vst.msk [vmem:[%s1798_s3 + $0x9c] sm:$0xf] %vm910_vm3, %v1149_v20 }
  0xed   :  { %916 = vst.msk [vmem:[%s1798_s3 + $0x14] sm:$0xf] %vm910_vm3, %v1115_v21  ;;  %948 = vst.msk [vmem:[%s1798_s3 + $0x94] sm:$0xf] %vm910_vm3, %v1147_v22  ;;  %v1222_v23 = vpop.f32.mrb[8].mxu0  ;;  %v1254_v24 = vpop.f32.mrb[8].mxu1 }
  0xee   :  { %v440_v25 = vadd.f32 %v1222_v23, %v1473_v38  ;;  %v568_v26 = vadd.f32 %v1254_v24, %v1473_v38  ;;  %v431_v27 = vpop.f32.mrb[9].mxu0  ;;  %v559_v28 = vpop.f32.mrb[9].mxu1 }
  0xef   :  { %v432_v29 = vadd.f32 %v1473_v38, %v431_v27  ;;  %v560_v30 = vadd.f32 %v1473_v38, %v559_v28  ;;  %v1223_v31 = vpop.f32.mrb[10].mxu0  ;;  %v1255_v32 = vpop.f32.mrb[10].mxu1 }
  0xf0   :  { %v1120_v33 = vpack.c.bf16 %v440_v25, %v440_v25  ;;  %v1152_v34 = vpack.c.bf16 %v568_v26, %v568_v26  ;;  %v443_v35 = vadd.f32 %v1223_v31, %v1473_v38  ;;  %v571_v36 = vadd.f32 %v1255_v32, %v1473_v38  ;;  %v434_v37 = vpop.f32.mrb[11].mxu0  ;;  %v562_v39 = vpop.f32.mrb[11].mxu1 }
  0xf1   :  { %v1118_v40 = vpack.c.bf16 %v432_v29, %v432_v29  ;;  %v1150_v41 = vpack.c.bf16 %v560_v30, %v560_v30  ;;  %v435_v42 = vadd.f32 %v1473_v38, %v434_v37  ;;  %v563_v43 = vadd.f32 %v1473_v38, %v562_v39 }
  0xf2   :  { %921 = vst.msk [vmem:[%s1798_s3 + $0x28] sm:$0xf] %vm910_vm3, %v1120_v33  ;;  %953 = vst.msk [vmem:[%s1798_s3 + $0xa8] sm:$0xf] %vm910_vm3, %v1152_v34  ;;  %v1121_v44 = vpack.c.bf16 %v443_v35, %v443_v35  ;;  %v1153_v45 = vpack.c.bf16 %v571_v36, %v571_v36 }
  0xf3   :  { %919 = vst.msk [vmem:[%s1798_s3 + $0x20] sm:$0xf] %vm910_vm3, %v1118_v40  ;;  %951 = vst.msk [vmem:[%s1798_s3 + $0xa0] sm:$0xf] %vm910_vm3, %v1150_v41  ;;  %v1119_v46 = vpack.c.bf16 %v435_v42, %v435_v42  ;;  %v1151_v47 = vpack.c.bf16 %v563_v43, %v563_v43 }
  0xf4   :  { %922 = vst.msk [vmem:[%s1798_s3 + $0x2c] sm:$0xf] %vm910_vm3, %v1121_v44  ;;  %954 = vst.msk [vmem:[%s1798_s3 + $0xac] sm:$0xf] %vm910_vm3, %v1153_v45 }
  0xf5   :  { %920 = vst.msk [vmem:[%s1798_s3 + $0x24] sm:$0xf] %vm910_vm3, %v1119_v46  ;;  %952 = vst.msk [vmem:[%s1798_s3 + $0xa4] sm:$0xf] %vm910_vm3, %v1151_v47  ;;  %v1226_v48 = vpop.f32.mrb[12].mxu0  ;;  %v1258_v49 = vpop.f32.mrb[12].mxu1 }
  0xf6   :  { %v456_v50 = vadd.f32 %v1226_v48, %v1473_v38  ;;  %v584_v51 = vadd.f32 %v1258_v49, %v1473_v38  ;;  %v447_v52 = vpop.f32.mrb[13].mxu0  ;;  %v575_v53 = vpop.f32.mrb[13].mxu1 }
  0xf7   :  { %v448_v54 = vadd.f32 %v1473_v38, %v447_v52  ;;  %v576_v55 = vadd.f32 %v1473_v38, %v575_v53  ;;  %v1227_v56 = vpop.f32.mrb[14].mxu0  ;;  %v1259_v57 = vpop.f32.mrb[14].mxu1 }
  0xf8   :  { %v1124_v58 = vpack.c.bf16 %v456_v50, %v456_v50  ;;  %v1156_v59 = vpack.c.bf16 %v584_v51, %v584_v51  ;;  %v459_v60 = vadd.f32 %v1227_v56, %v1473_v38  ;;  %v587_v61 = vadd.f32 %v1259_v57, %v1473_v38  ;;  %v450_v62 = vpop.f32.mrb[15].mxu0  ;;  %v578_v63 = vpop.f32.mrb[15].mxu1 }
  0xf9   :  { %v1122_v0 = vpack.c.bf16 %v448_v54, %v448_v54  ;;  %v1154_v1 = vpack.c.bf16 %v576_v55, %v576_v55  ;;  %v451_v2 = vadd.f32 %v1473_v38, %v450_v62  ;;  %v579_v3 = vadd.f32 %v1473_v38, %v578_v63 }
  0xfa   :  { %925 = vst.msk [vmem:[%s1798_s3 + $0x38] sm:$0xf] %vm910_vm3, %v1124_v58  ;;  %957 = vst.msk [vmem:[%s1798_s3 + $0xb8] sm:$0xf] %vm910_vm3, %v1156_v59  ;;  %v1125_v4 = vpack.c.bf16 %v459_v60, %v459_v60  ;;  %v1157_v5 = vpack.c.bf16 %v587_v61, %v587_v61 }
  0xfb   :  { %923 = vst.msk [vmem:[%s1798_s3 + $0x30] sm:$0xf] %vm910_vm3, %v1122_v0  ;;  %955 = vst.msk [vmem:[%s1798_s3 + $0xb0] sm:$0xf] %vm910_vm3, %v1154_v1  ;;  %v1123_v6 = vpack.c.bf16 %v451_v2, %v451_v2  ;;  %v1155_v7 = vpack.c.bf16 %v579_v3, %v579_v3 }
  0xfc   :  { %926 = vst.msk [vmem:[%s1798_s3 + $0x3c] sm:$0xf] %vm910_vm3, %v1125_v4  ;;  %958 = vst.msk [vmem:[%s1798_s3 + $0xbc] sm:$0xf] %vm910_vm3, %v1157_v5 }
  0xfd   :  { %924 = vst.msk [vmem:[%s1798_s3 + $0x34] sm:$0xf] %vm910_vm3, %v1123_v6  ;;  %956 = vst.msk [vmem:[%s1798_s3 + $0xb4] sm:$0xf] %vm910_vm3, %v1155_v7  ;;  %v1230_v8 = vpop.f32.mrb[16].mxu0  ;;  %v1262_v9 = vpop.f32.mrb[16].mxu1 }
  0xfe   :  { %v472_v10 = vadd.f32 %v1230_v8, %v1473_v38  ;;  %v600_v11 = vadd.f32 %v1262_v9, %v1473_v38  ;;  %v463_v12 = vpop.f32.mrb[17].mxu0  ;;  %v591_v13 = vpop.f32.mrb[17].mxu1 }
  0xff   :  { %v464_v14 = vadd.f32 %v1473_v38, %v463_v12  ;;  %v592_v15 = vadd.f32 %v1473_v38, %v591_v13  ;;  %v1231_v16 = vpop.f32.mrb[18].mxu0  ;;  %v1263_v17 = vpop.f32.mrb[18].mxu1 }
 0x100   :  { %v1128_v18 = vpack.c.bf16 %v472_v10, %v472_v10  ;;  %v1160_v19 = vpack.c.bf16 %v600_v11, %v600_v11  ;;  %v475_v20 = vadd.f32 %v1231_v16, %v1473_v38  ;;  %v603_v21 = vadd.f32 %v1263_v17, %v1473_v38  ;;  %v466_v22 = vpop.f32.mrb[19].mxu0  ;;  %v594_v23 = vpop.f32.mrb[19].mxu1 }
 0x101   :  { %v1126_v24 = vpack.c.bf16 %v464_v14, %v464_v14  ;;  %v1158_v25 = vpack.c.bf16 %v592_v15, %v592_v15  ;;  %v467_v26 = vadd.f32 %v1473_v38, %v466_v22  ;;  %v595_v27 = vadd.f32 %v1473_v38, %v594_v23 }
 0x102   :  { %929 = vst.msk [vmem:[%s1798_s3 + $0x48] sm:$0xf] %vm910_vm3, %v1128_v18  ;;  %961 = vst.msk [vmem:[%s1798_s3 + $0xc8] sm:$0xf] %vm910_vm3, %v1160_v19  ;;  %v1129_v28 = vpack.c.bf16 %v475_v20, %v475_v20  ;;  %v1161_v29 = vpack.c.bf16 %v603_v21, %v603_v21 }
 0x103   :  { %927 = vst.msk [vmem:[%s1798_s3 + $0x40] sm:$0xf] %vm910_vm3, %v1126_v24  ;;  %959 = vst.msk [vmem:[%s1798_s3 + $0xc0] sm:$0xf] %vm910_vm3, %v1158_v25  ;;  %v1127_v30 = vpack.c.bf16 %v467_v26, %v467_v26  ;;  %v1159_v31 = vpack.c.bf16 %v595_v27, %v595_v27 }
 0x104   :  { %930 = vst.msk [vmem:[%s1798_s3 + $0x4c] sm:$0xf] %vm910_vm3, %v1129_v28  ;;  %962 = vst.msk [vmem:[%s1798_s3 + $0xcc] sm:$0xf] %vm910_vm3, %v1161_v29 }
 0x105   :  { %928 = vst.msk [vmem:[%s1798_s3 + $0x44] sm:$0xf] %vm910_vm3, %v1127_v30  ;;  %960 = vst.msk [vmem:[%s1798_s3 + $0xc4] sm:$0xf] %vm910_vm3, %v1159_v31  ;;  %v1234_v32 = vpop.f32.mrb[20].mxu0  ;;  %v1266_v33 = vpop.f32.mrb[20].mxu1 }
 0x106   :  { %v488_v34 = vadd.f32 %v1234_v32, %v1473_v38  ;;  %v616_v35 = vadd.f32 %v1266_v33, %v1473_v38  ;;  %v479_v36 = vpop.f32.mrb[21].mxu0  ;;  %v607_v37 = vpop.f32.mrb[21].mxu1 }
 0x107   :  { %v480_v39 = vadd.f32 %v1473_v38, %v479_v36  ;;  %v608_v40 = vadd.f32 %v1473_v38, %v607_v37  ;;  %v1235_v41 = vpop.f32.mrb[22].mxu0  ;;  %v1267_v42 = vpop.f32.mrb[22].mxu1 }
 0x108   :  { %v1132_v43 = vpack.c.bf16 %v488_v34, %v488_v34  ;;  %v1164_v44 = vpack.c.bf16 %v616_v35, %v616_v35  ;;  %v491_v45 = vadd.f32 %v1235_v41, %v1473_v38  ;;  %v619_v46 = vadd.f32 %v1267_v42, %v1473_v38  ;;  %v482_v47 = vpop.f32.mrb[23].mxu0  ;;  %v610_v48 = vpop.f32.mrb[23].mxu1 }
 0x109   :  { %v1130_v49 = vpack.c.bf16 %v480_v39, %v480_v39  ;;  %v1162_v50 = vpack.c.bf16 %v608_v40, %v608_v40  ;;  %v483_v51 = vadd.f32 %v1473_v38, %v482_v47  ;;  %v611_v52 = vadd.f32 %v1473_v38, %v610_v48 }
 0x10a   :  { %933 = vst.msk [vmem:[%s1798_s3 + $0x58] sm:$0xf] %vm910_vm3, %v1132_v43  ;;  %965 = vst.msk [vmem:[%s1798_s3 + $0xd8] sm:$0xf] %vm910_vm3, %v1164_v44  ;;  %v1133_v53 = vpack.c.bf16 %v491_v45, %v491_v45  ;;  %v1165_v54 = vpack.c.bf16 %v619_v46, %v619_v46 }
 0x10b   :  { %931 = vst.msk [vmem:[%s1798_s3 + $0x50] sm:$0xf] %vm910_vm3, %v1130_v49  ;;  %963 = vst.msk [vmem:[%s1798_s3 + $0xd0] sm:$0xf] %vm910_vm3, %v1162_v50  ;;  %v1131_v55 = vpack.c.bf16 %v483_v51, %v483_v51  ;;  %v1163_v56 = vpack.c.bf16 %v611_v52, %v611_v52 }
 0x10c   :  { %934 = vst.msk [vmem:[%s1798_s3 + $0x5c] sm:$0xf] %vm910_vm3, %v1133_v53  ;;  %966 = vst.msk [vmem:[%s1798_s3 + $0xdc] sm:$0xf] %vm910_vm3, %v1165_v54 }
 0x10d   :  { %932 = vst.msk [vmem:[%s1798_s3 + $0x54] sm:$0xf] %vm910_vm3, %v1131_v55  ;;  %964 = vst.msk [vmem:[%s1798_s3 + $0xd4] sm:$0xf] %vm910_vm3, %v1163_v56  ;;  %v1238_v57 = vpop.f32.mrb[24].mxu0  ;;  %v1270_v58 = vpop.f32.mrb[24].mxu1 }
 0x10e   :  { %v504_v59 = vadd.f32 %v1238_v57, %v1473_v38  ;;  %v632_v60 = vadd.f32 %v1270_v58, %v1473_v38  ;;  %v495_v61 = vpop.f32.mrb[25].mxu0  ;;  %v623_v62 = vpop.f32.mrb[25].mxu1 }
 0x10f   :  { %v496_v63 = vadd.f32 %v1473_v38, %v495_v61  ;;  %v624_v0 = vadd.f32 %v1473_v38, %v623_v62  ;;  %v1239_v1 = vpop.f32.mrb[26].mxu0  ;;  %v1271_v2 = vpop.f32.mrb[26].mxu1 }
 0x110   :  { %v1136_v3 = vpack.c.bf16 %v504_v59, %v504_v59  ;;  %v1168_v4 = vpack.c.bf16 %v632_v60, %v632_v60  ;;  %v507_v5 = vadd.f32 %v1239_v1, %v1473_v38  ;;  %v635_v6 = vadd.f32 %v1271_v2, %v1473_v38  ;;  %v498_v7 = vpop.f32.mrb[27].mxu0  ;;  %v626_v8 = vpop.f32.mrb[27].mxu1 }
 0x111   :  { %v1134_v9 = vpack.c.bf16 %v496_v63, %v496_v63  ;;  %v1166_v10 = vpack.c.bf16 %v624_v0, %v624_v0  ;;  %v499_v11 = vadd.f32 %v1473_v38, %v498_v7  ;;  %v627_v12 = vadd.f32 %v1473_v38, %v626_v8 }
 0x112   :  { %937 = vst.msk [vmem:[%s1798_s3 + $0x68] sm:$0xf] %vm910_vm3, %v1136_v3  ;;  %969 = vst.msk [vmem:[%s1798_s3 + $0xe8] sm:$0xf] %vm910_vm3, %v1168_v4  ;;  %v1137_v13 = vpack.c.bf16 %v507_v5, %v507_v5  ;;  %v1169_v14 = vpack.c.bf16 %v635_v6, %v635_v6 }
 0x113   :  { %935 = vst.msk [vmem:[%s1798_s3 + $0x60] sm:$0xf] %vm910_vm3, %v1134_v9  ;;  %967 = vst.msk [vmem:[%s1798_s3 + $0xe0] sm:$0xf] %vm910_vm3, %v1166_v10  ;;  %v1135_v15 = vpack.c.bf16 %v499_v11, %v499_v11  ;;  %v1167_v16 = vpack.c.bf16 %v627_v12, %v627_v12 }
 0x114   :  { %938 = vst.msk [vmem:[%s1798_s3 + $0x6c] sm:$0xf] %vm910_vm3, %v1137_v13  ;;  %970 = vst.msk [vmem:[%s1798_s3 + $0xec] sm:$0xf] %vm910_vm3, %v1169_v14 }
 0x115   :  { %936 = vst.msk [vmem:[%s1798_s3 + $0x64] sm:$0xf] %vm910_vm3, %v1135_v15  ;;  %968 = vst.msk [vmem:[%s1798_s3 + $0xe4] sm:$0xf] %vm910_vm3, %v1167_v16  ;;  %v1242_v17 = vpop.f32.mrb[28].mxu0  ;;  %v1274_v18 = vpop.f32.mrb[28].mxu1 }
 0x116   :  { %v520_v19 = vadd.f32 %v1242_v17, %v1473_v38  ;;  %v648_v20 = vadd.f32 %v1274_v18, %v1473_v38  ;;  %v511_v21 = vpop.f32.mrb[29].mxu0  ;;  %v639_v22 = vpop.f32.mrb[29].mxu1 }
 0x117   :  { %v512_v23 = vadd.f32 %v1473_v38, %v511_v21  ;;  %v640_v24 = vadd.f32 %v1473_v38, %v639_v22  ;;  %v1243_v25 = vpop.f32.mrb[30].mxu0  ;;  %v1275_v26 = vpop.f32.mrb[30].mxu1 }
 0x118   :  { %v1140_v27 = vpack.c.bf16 %v520_v19, %v520_v19  ;;  %v1172_v28 = vpack.c.bf16 %v648_v20, %v648_v20  ;;  %v523_v29 = vadd.f32 %v1243_v25, %v1473_v38  ;;  %v651_v30 = vadd.f32 %v1275_v26, %v1473_v38  ;;  %v514_v31 = vpop.f32.mrb[31].mxu0  ;;  %v642_v32 = vpop.f32.mrb[31].mxu1 }
 0x119   :  { %v1138_v33 = vpack.c.bf16 %v512_v23, %v512_v23  ;;  %v1170_v34 = vpack.c.bf16 %v640_v24, %v640_v24  ;;  %v515_v35 = vadd.f32 %v1473_v38, %v514_v31  ;;  %v643_v36 = vadd.f32 %v1473_v38, %v642_v32 }
 0x11a   :  { %941 = vst.msk [vmem:[%s1798_s3 + $0x78] sm:$0xf] %vm910_vm3, %v1140_v27  ;;  %973 = vst.msk [vmem:[%s1798_s3 + $0xf8] sm:$0xf] %vm910_vm3, %v1172_v28  ;;  %v1141_v37 = vpack.c.bf16 %v523_v29, %v523_v29  ;;  %v1173_v39 = vpack.c.bf16 %v651_v30, %v651_v30 }
 0x11b   :  { %939 = vst.msk [vmem:[%s1798_s3 + $0x70] sm:$0xf] %vm910_vm3, %v1138_v33  ;;  %971 = vst.msk [vmem:[%s1798_s3 + $0xf0] sm:$0xf] %vm910_vm3, %v1170_v34  ;;  %v1139_v38 = vpack.c.bf16 %v515_v35, %v515_v35  ;;  %v1171_v40 = vpack.c.bf16 %v643_v36, %v643_v36 }
 0x11c   :  { %942 = vst.msk [vmem:[%s1798_s3 + $0x7c] sm:$0xf] %vm910_vm3, %v1141_v37  ;;  %974 = vst.msk [vmem:[%s1798_s3 + $0xfc] sm:$0xf] %vm910_vm3, %v1173_v39 }
 0x11d   :  { %940 = vst.msk [vmem:[%s1798_s3 + $0x74] sm:$0xf] %vm910_vm3, %v1139_v38  ;;  %972 = vst.msk [vmem:[%s1798_s3 + $0xf4] sm:$0xf] %vm910_vm3, %v1171_v40 }

// kernel: promptir_baseline_forward.9
= control target key start
LH: loop header
LB: loop body
LE: loop exit
PB: predicated region body
PF: predicated region fallthrough
CT: control target
= control target key end

     0   :  { %v507_v0 = vmov 0   ;;  %vm182_vm0 = vcmask 130048   ;;  %vm368_vm1 = vcmask 257024   ;;  %s696_s1 = inlined_call_operand.vmem [shape: bf16[144,32], index: 1, kind: input, shape index: {}]   ;;  %s697_s0 = inlined_call_operand.vmem [shape: bf16[128,144], index: 0, kind: input, shape index: {}]   ;;  %s698_s2 = inlined_call_operand.vmem [shape: f32[1,32], index: 2, kind: input, shape index: {}]   ;;  %s699_s3 = inlined_call_operand.vmem [shape: bf16[128,32], index: 3, kind: output, shape index: {}]  }
   0x1   :  { %207 = vmatprep.subr.bf16.mxu0 %v507_v0  ;;  %455 = vmatprep.subr.bf16.mxu1 %v507_v0  ;;  %v474_v1 = vld [vmem:[%s696_s1] sm:$0xff]   ;;  %v475_v2 = vld [vmem:[%s696_s1 + $0x8] sm:$0xff]   ;;  %v476_v3 = vld [vmem:[%s696_s1 + $0x10] sm:$0xff]  }
   0x2   :  { %208 = vmatpush1.bf16.msra.mxu0 %v474_v1  ;;  %464 = vmatpush1.bf16.msra.mxu1 %v474_v1  ;;  %v477_v4 = vld [vmem:[%s696_s1 + $0x18] sm:$0xff]   ;;  %v485_v5 = vld [vmem:[%s697_s0 + $0x4] ss:$8 sps:$4 sm:$0xff]   ;;  %v480_v9 = vld [vmem:[%s696_s1 + $0x30] sm:$0xff]  }
   0x3   :  { %209 = vmatprep.subr.bf16.mxu0 %v507_v0  ;;  %456 = vmatprep.subr.bf16.mxu1 %v507_v0  ;;  %v488_v6 = vld [vmem:[%s697_s0 + $0x44] ss:$8 sps:$4 sm:$0xff]   ;;  %v481_v10 = vld [vmem:[%s696_s1 + $0x38] sm:$0xff]   ;;  %v483_v12 = vld [vmem:[%s697_s0] ss:$8 sps:$4 sm:$0xff]  }
   0x4   :  { %415 = vmatprep.mubr.msk.bf16.mxu0 %vm182_vm0, %v485_v5  ;;  %419 = vmatprep.mubr.msk.bf16.mxu1 %vm182_vm0, %v488_v6  ;;  %v478_v7 = vld [vmem:[%s696_s1 + $0x20] sm:$0xff]   ;;  %v479_v8 = vld [vmem:[%s696_s1 + $0x28] sm:$0xff]   ;;  %v489_v14 = vld [vmem:[%s697_s0 + $0x14] ss:$8 sps:$4 sm:$0xff]  }
   0x5   :  { %v482_v11 = vld [vmem:[%s696_s1 + $0x40] sm:$0xff]   ;;  %v491_v15 = vld [vmem:[%s697_s0 + $0x54] ss:$8 sps:$4 sm:$0xff]   ;;  %v493_v16 = vld [vmem:[%s697_s0 + $0x10] ss:$8 sps:$4 sm:$0xff]  }
   0x6   :  { %210 = vmatpush1.bf16.msra.mxu0 %v475_v2  ;;  %465 = vmatpush1.bf16.msra.mxu1 %v475_v2  ;;  %v486_v13 = vld [vmem:[%s697_s0 + $0x40] ss:$8 sps:$4 sm:$0xff]   ;;  %v494_v17 = vld [vmem:[%s697_s0 + $0x50] ss:$8 sps:$4 sm:$0xff]   ;;  %v495_v18 = vld [vmem:[%s697_s0 + $0x24] ss:$8 sps:$4 sm:$0xff]  }
   0x7   :  { %211 = vmatprep.subr.bf16.mxu0 %v507_v0  ;;  %457 = vmatprep.subr.bf16.mxu1 %v507_v0  ;;  %v497_v19 = vld [vmem:[%s697_s0 + $0x64] ss:$8 sps:$4 sm:$0xff]   ;;  %v499_v20 = vld [vmem:[%s697_s0 + $0x20] ss:$8 sps:$4 sm:$0xff]   ;;  %v501_v22 = vld [vmem:[%s697_s0 + $0x34] ss:$8 sps:$4 sm:$0xff]  }
   0x8   :  { %v500_v21 = vld [vmem:[%s697_s0 + $0x60] ss:$8 sps:$4 sm:$0xff]   ;;  %v503_v23 = vld [vmem:[%s697_s0 + $0x74] ss:$8 sps:$4 sm:$0xff]   ;;  %v505_v24 = vld [vmem:[%s697_s0 + $0x30] ss:$8 sps:$4 sm:$0xff]  }
   0x9   :  { %v506_v25 = vld [vmem:[%s697_s0 + $0x70] ss:$8 sps:$4 sm:$0xff]   ;;  %v614_v26 = vld [vmem:[%s698_s2] ss:$0 sm:$0xff] }
   0xa   :  { %212 = vmatpush1.bf16.msra.mxu0 %v476_v3  ;;  %466 = vmatpush1.bf16.msra.mxu1 %v476_v3 }
   0xb   :  { %213 = vmatprep.subr.bf16.mxu0 %v507_v0  ;;  %458 = vmatprep.subr.bf16.mxu1 %v507_v0 }
   0xe   :  { %214 = vmatpush1.bf16.msra.mxu0 %v477_v4  ;;  %467 = vmatpush1.bf16.msra.mxu1 %v477_v4 }
   0xf   :  { %215 = vmatprep.subr.bf16.mxu0 %v507_v0  ;;  %459 = vmatprep.subr.bf16.mxu1 %v507_v0 }
  0x12   :  { %216 = vmatpush1.bf16.msra.mxu0 %v478_v7  ;;  %468 = vmatpush1.bf16.msra.mxu1 %v478_v7 }
  0x13   :  { %217 = vmatprep.subr.bf16.mxu0 %v507_v0  ;;  %460 = vmatprep.subr.bf16.mxu1 %v507_v0 }
  0x16   :  { %218 = vmatpush1.bf16.msra.mxu0 %v479_v8  ;;  %469 = vmatpush1.bf16.msra.mxu1 %v479_v8 }
  0x17   :  { %219 = vmatprep.subr.bf16.mxu0 %v507_v0  ;;  %461 = vmatprep.subr.bf16.mxu1 %v507_v0 }
  0x1a   :  { %220 = vmatpush1.bf16.msra.mxu0 %v480_v9  ;;  %470 = vmatpush1.bf16.msra.mxu1 %v480_v9 }
  0x1b   :  { %221 = vmatprep.subr.bf16.mxu0 %v507_v0  ;;  %462 = vmatprep.subr.bf16.mxu1 %v507_v0 }
  0x1e   :  { %222 = vmatpush1.bf16.msra.mxu0 %v481_v10  ;;  %471 = vmatpush1.bf16.msra.mxu1 %v481_v10 }
  0x1f   :  { %223 = vmatprep.subr.bf16.mxu0 %v507_v0  ;;  %463 = vmatprep.subr.bf16.mxu1 %v507_v0 }
  0x22   :  { %224 = vmatpush1.bf16.msra.mxu0 %v482_v11  ;;  %472 = vmatpush1.bf16.msra.mxu1 %v482_v11 }
  0x25   :  { %240 = vmatmul.mubr.bf16.vlgmr.msra.gmra.mrb[0].mxu0 %v483_v12  ;;  %272 = vmatmul.mubr.bf16.vlgmr.msra.gmra.mrb[0].mxu1 %v486_v13 }
  0x26   :  { %416 = vmatprep.mubr.msk.bf16.mxu0 %vm182_vm0, %v489_v14  ;;  %420 = vmatprep.mubr.msk.bf16.mxu1 %vm182_vm0, %v491_v15 }
  0x2d   :  { %248 = vmatmul.mubr.bf16.gmra.mrb[4].mxu0 %v493_v16  ;;  %280 = vmatmul.mubr.bf16.gmra.mrb[4].mxu1 %v494_v17 }
  0x2e   :  { %417 = vmatprep.mubr.msk.bf16.mxu0 %vm182_vm0, %v495_v18  ;;  %421 = vmatprep.mubr.msk.bf16.mxu1 %vm182_vm0, %v497_v19 }
  0x35   :  { %256 = vmatmul.mubr.bf16.gmra.mrb[8].mxu0 %v499_v20  ;;  %288 = vmatmul.mubr.bf16.gmra.mrb[8].mxu1 %v500_v21 }
  0x36   :  { %418 = vmatprep.mubr.msk.bf16.mxu0 %vm182_vm0, %v501_v22  ;;  %422 = vmatprep.mubr.msk.bf16.mxu1 %vm182_vm0, %v503_v23 }
  0x3d   :  { %264 = vmatmul.mubr.bf16.gmra.mrb[12].mxu0 %v505_v24  ;;  %296 = vmatmul.mubr.bf16.gmra.mrb[12].mxu1 %v506_v25 }
  0xf8   :  { %v241_v27 = vpop.f32.mrb[0].mxu0  ;;  %v273_v28 = vpop.f32.mrb[0].mxu1 }
  0xf9   :  { %v242_v29 = vadd.f32 %v614_v26, %v241_v27  ;;  %v274_v30 = vadd.f32 %v614_v26, %v273_v28  ;;  %v243_v31 = vpop.f32.mrb[1].mxu0  ;;  %v275_v32 = vpop.f32.mrb[1].mxu1 }
  0xfa   :  { %v244_v33 = vpop.f32.mrb[2].mxu0  ;;  %v276_v34 = vpop.f32.mrb[2].mxu1 }
  0xfb   :  { %v439_v35 = vpack.c.bf16 %v242_v29, %v242_v29  ;;  %v447_v36 = vpack.c.bf16 %v274_v30, %v274_v30  ;;  %v245_v37 = vadd.f32 %v614_v26, %v244_v33  ;;  %v277_v38 = vadd.f32 %v614_v26, %v276_v34  ;;  %v246_v39 = vpop.f32.mrb[3].mxu0  ;;  %v278_v40 = vpop.f32.mrb[3].mxu1 }
  0xfd   :  { %369 = vst.msk [vmem:[%s699_s3] sm:$0xf] %vm368_vm1, %v439_v35  ;;  %377 = vst.msk [vmem:[%s699_s3 + $0x20] sm:$0xf] %vm368_vm1, %v447_v36  ;;  %v440_v41 = vpack.c.bf16 %v245_v37, %v245_v37  ;;  %v448_v42 = vpack.c.bf16 %v277_v38, %v277_v38 }
  0xff   :  { %370 = vst.msk [vmem:[%s699_s3 + $0x4] sm:$0xf] %vm368_vm1, %v440_v41  ;;  %378 = vst.msk [vmem:[%s699_s3 + $0x24] sm:$0xf] %vm368_vm1, %v448_v42 }
 0x100   :  { %v249_v43 = vpop.f32.mrb[4].mxu0  ;;  %v281_v44 = vpop.f32.mrb[4].mxu1 }
 0x101   :  { %v250_v45 = vadd.f32 %v614_v26, %v249_v43  ;;  %v282_v46 = vadd.f32 %v614_v26, %v281_v44  ;;  %v251_v47 = vpop.f32.mrb[5].mxu0  ;;  %v283_v48 = vpop.f32.mrb[5].mxu1 }
 0x102   :  { %v252_v49 = vpop.f32.mrb[6].mxu0  ;;  %v284_v50 = vpop.f32.mrb[6].mxu1 }
 0x103   :  { %v441_v51 = vpack.c.bf16 %v250_v45, %v250_v45  ;;  %v449_v52 = vpack.c.bf16 %v282_v46, %v282_v46  ;;  %v253_v53 = vadd.f32 %v614_v26, %v252_v49  ;;  %v285_v54 = vadd.f32 %v614_v26, %v284_v50  ;;  %v254_v55 = vpop.f32.mrb[7].mxu0  ;;  %v286_v56 = vpop.f32.mrb[7].mxu1 }
 0x105   :  { %371 = vst.msk [vmem:[%s699_s3 + $0x8] sm:$0xf] %vm368_vm1, %v441_v51  ;;  %379 = vst.msk [vmem:[%s699_s3 + $0x28] sm:$0xf] %vm368_vm1, %v449_v52  ;;  %v442_v57 = vpack.c.bf16 %v253_v53, %v253_v53  ;;  %v450_v58 = vpack.c.bf16 %v285_v54, %v285_v54 }
 0x107   :  { %372 = vst.msk [vmem:[%s699_s3 + $0xc] sm:$0xf] %vm368_vm1, %v442_v57  ;;  %380 = vst.msk [vmem:[%s699_s3 + $0x2c] sm:$0xf] %vm368_vm1, %v450_v58 }
 0x108   :  { %v257_v59 = vpop.f32.mrb[8].mxu0  ;;  %v289_v60 = vpop.f32.mrb[8].mxu1 }
 0x109   :  { %v258_v61 = vadd.f32 %v614_v26, %v257_v59  ;;  %v290_v62 = vadd.f32 %v614_v26, %v289_v60  ;;  %v259_v63 = vpop.f32.mrb[9].mxu0  ;;  %v291_v0 = vpop.f32.mrb[9].mxu1 }
 0x10a   :  { %v260_v1 = vpop.f32.mrb[10].mxu0  ;;  %v292_v2 = vpop.f32.mrb[10].mxu1 }
 0x10b   :  { %v443_v3 = vpack.c.bf16 %v258_v61, %v258_v61  ;;  %v451_v4 = vpack.c.bf16 %v290_v62, %v290_v62  ;;  %v261_v5 = vadd.f32 %v614_v26, %v260_v1  ;;  %v293_v6 = vadd.f32 %v614_v26, %v292_v2  ;;  %v262_v7 = vpop.f32.mrb[11].mxu0  ;;  %v294_v8 = vpop.f32.mrb[11].mxu1 }
 0x10d   :  { %373 = vst.msk [vmem:[%s699_s3 + $0x10] sm:$0xf] %vm368_vm1, %v443_v3  ;;  %381 = vst.msk [vmem:[%s699_s3 + $0x30] sm:$0xf] %vm368_vm1, %v451_v4  ;;  %v444_v9 = vpack.c.bf16 %v261_v5, %v261_v5  ;;  %v452_v10 = vpack.c.bf16 %v293_v6, %v293_v6 }
 0x10f   :  { %374 = vst.msk [vmem:[%s699_s3 + $0x14] sm:$0xf] %vm368_vm1, %v444_v9  ;;  %382 = vst.msk [vmem:[%s699_s3 + $0x34] sm:$0xf] %vm368_vm1, %v452_v10 }
 0x110   :  { %v265_v11 = vpop.f32.mrb[12].mxu0  ;;  %v297_v12 = vpop.f32.mrb[12].mxu1 }
 0x111   :  { %v266_v13 = vadd.f32 %v614_v26, %v265_v11  ;;  %v298_v14 = vadd.f32 %v614_v26, %v297_v12  ;;  %v267_v15 = vpop.f32.mrb[13].mxu0  ;;  %v299_v16 = vpop.f32.mrb[13].mxu1 }
 0x112   :  { %v268_v17 = vpop.f32.mrb[14].mxu0  ;;  %v300_v18 = vpop.f32.mrb[14].mxu1 }
 0x113   :  { %v445_v19 = vpack.c.bf16 %v266_v13, %v266_v13  ;;  %v453_v20 = vpack.c.bf16 %v298_v14, %v298_v14  ;;  %v269_v21 = vadd.f32 %v614_v26, %v268_v17  ;;  %v301_v22 = vadd.f32 %v614_v26, %v300_v18  ;;  %v270_v23 = vpop.f32.mrb[15].mxu0  ;;  %v302_v24 = vpop.f32.mrb[15].mxu1 }
 0x115   :  { %375 = vst.msk [vmem:[%s699_s3 + $0x18] sm:$0xf] %vm368_vm1, %v445_v19  ;;  %383 = vst.msk [vmem:[%s699_s3 + $0x38] sm:$0xf] %vm368_vm1, %v453_v20  ;;  %v446_v25 = vpack.c.bf16 %v269_v21, %v269_v21  ;;  %v454_v27 = vpack.c.bf16 %v301_v22, %v301_v22 }
 0x117   :  { %376 = vst.msk [vmem:[%s699_s3 + $0x1c] sm:$0xf] %vm368_vm1, %v446_v25  ;;  %384 = vst.msk [vmem:[%s699_s3 + $0x3c] sm:$0xf] %vm368_vm1, %v454_v27 }

// kernel: promptir_baseline_forward.10
= control target key start
LH: loop header
LB: loop body
LE: loop exit
PB: predicated region body
PF: predicated region fallthrough
CT: control target
= control target key end

     0   :  { %vm204_vm0 = vcmask 261120   ;;  %vm325_vm1 = vcmask 519168   ;;  %s546_s1 = inlined_call_operand.vmem [shape: bf16[288,64], index: 1, kind: input, shape index: {}]   ;;  %s547_s0 = inlined_call_operand.vmem [shape: bf16[32,288], index: 0, kind: input, shape index: {}]   ;;  %s548_s2 = inlined_call_operand.vmem [shape: f32[1,64], index: 2, kind: input, shape index: {}]   ;;  %s549_s3 = inlined_call_operand.vmem [shape: bf16[32,64], index: 3, kind: output, shape index: {}]  }
   0x1   :  { %v409_v0 = vld [vmem:[%s546_s1 + $0x40] sm:$0xff]   ;;  %v411_v2 = vld [vmem:[%s546_s1 + $0x48] sm:$0xff]   ;;  %v413_v4 = vld [vmem:[%s546_s1 + $0x50] sm:$0xff]  }
   0x2   :  { %v410_v1 = vld [vmem:[%s546_s1] sm:$0xff]   ;;  %369 = vmatprep.subr.bf16.mxu0 %v409_v0  ;;  %v412_v3 = vld [vmem:[%s546_s1 + $0x8] sm:$0xff]   ;;  %v414_v5 = vld [vmem:[%s546_s1 + $0x10] sm:$0xff]  }
   0x3   :  { %370 = vmatpush3.bf16.msra.mxu0 %v410_v1  ;;  %v415_v6 = vld [vmem:[%s546_s1 + $0x58] sm:$0xff]   ;;  %v417_v8 = vld [vmem:[%s546_s1 + $0x60] sm:$0xff]   ;;  %v419_v11 = vld [vmem:[%s546_s1 + $0x68] sm:$0xff]  }
   0x4   :  { %371 = vmatprep.subr.bf16.mxu0 %v411_v2  ;;  %v416_v7 = vld [vmem:[%s546_s1 + $0x18] sm:$0xff]   ;;  %v418_v9 = vld [vmem:[%s546_s1 + $0x20] sm:$0xff]   ;;  %v420_v12 = vld [vmem:[%s546_s1 + $0x28] sm:$0xff]  }
   0x5   :  { %v424_v10 = vld [vmem:[%s546_s1 + $0x80] sm:$0xff]   ;;  %v421_v13 = vld [vmem:[%s546_s1 + $0x70] sm:$0xff]   ;;  %v429_v15 = vld [vmem:[%s546_s1 + $0x88] sm:$0xff]  }
   0x6   :  { %401 = vmatprep.subr.bf16.mxu1 %v424_v10  ;;  %v428_v14 = vld [vmem:[%s547_s0 + $0x4] ss:$12 sps:$4 sm:$0xff]   ;;  %v430_v16 = vld [vmem:[%s547_s0 + $0x8] ss:$12 sps:$4 sm:$0xff]   ;;  %v431_v17 = vld [vmem:[%s547_s0 + $0x20] ss:$12 sps:$4 sm:$0xff]  }
   0x7   :  { %372 = vmatpush3.bf16.msra.mxu0 %v412_v3  ;;  %402 = vmatpush3.bf16.msra.mxu1 %v424_v10  ;;  %v422_v18 = vld [vmem:[%s546_s1 + $0x30] sm:$0xff]   ;;  %v423_v19 = vld [vmem:[%s546_s1 + $0x78] sm:$0xff]   ;;  %v426_v21 = vld [vmem:[%s547_s0] ss:$12 sps:$4 sm:$0xff]  }
   0x8   :  { %373 = vmatprep.subr.bf16.mxu0 %v413_v4  ;;  %243 = vmatprep.mubr.bf16.mxu0 %v428_v14  ;;  %v425_v20 = vld [vmem:[%s546_s1 + $0x38] sm:$0xff]   ;;  %v334_v30 = vld [vmem:[%s548_s2] ss:$0 sm:$0xff] }
   0x9   :  { %403 = vmatprep.subr.bf16.mxu1 %v429_v15  ;;  %405 = vmatprep.mubr.msk.bf16.mxu1 %vm204_vm0, %v430_v16  ;;  %v432_v22 = vld [vmem:[%s547_s0 + $0x1c] ss:$12 sps:$4 sm:$0xff]   ;;  %v434_v23 = vld [vmem:[%s547_s0 + $0x18] ss:$12 sps:$4 sm:$0xff]  }
   0xb   :  { %374 = vmatpush3.bf16.msra.mxu0 %v414_v5  ;;  %404 = vmatpush3.bf16.msra.mxu1 %v429_v15 }
   0xc   :  { %375 = vmatprep.subr.bf16.mxu0 %v415_v6 }
   0xe   :  { %406 = vmatmul.mubr.msk.bf16.vlgmr.msra.gmra.mrb[0].mxu1 %vm204_vm0, %v431_v17 }
   0xf   :  { %376 = vmatpush3.bf16.msra.mxu0 %v416_v7 }
  0x10   :  { %377 = vmatprep.subr.bf16.mxu0 %v417_v8 }
  0x13   :  { %378 = vmatpush3.bf16.msra.mxu0 %v418_v9 }
  0x14   :  { %379 = vmatprep.subr.bf16.mxu0 %v419_v11 }
  0x17   :  { %380 = vmatpush3.bf16.msra.mxu0 %v420_v12 }
  0x18   :  { %381 = vmatprep.subr.bf16.mxu0 %v421_v13 }
  0x1b   :  { %382 = vmatpush3.bf16.msra.mxu0 %v422_v18 }
  0x1c   :  { %383 = vmatprep.subr.bf16.mxu0 %v423_v19 }
  0x1f   :  { %384 = vmatpush3.bf16.msra.mxu0 %v425_v20 }
  0x22   :  { %244 = vmatmul.mubr.bf16.vlgmr.msra.gmra.mrb[0].mxu0 %v426_v21 }
  0x23   :  { %251 = vmatprep.mubr.bf16.mxu0 %v432_v22 }
  0x2a   :  { %252 = vmatmul.mubr.bf16.gmra.mrb[4].mxu0 %v434_v23 }
  0xe1   :  { %v407_v24 = vpop.f32.mrb[0].mxu1 }
  0xe2   :  { %v294_v25 = vpop.f32.mrb[1].mxu1 }
  0xe3   :  { %v408_v26 = vpop.f32.mrb[2].mxu1 }
  0xe4   :  { %v297_v27 = vpop.f32.mrb[3].mxu1 }
  0xf5   :  { %v385_v28 = vpop.f32.mrb[0].mxu0 }
  0xf6   :  { %v386_v29 = vpop.f32.mrb[1].mxu0 }
  0xf7   :  { %v387_v31 = vadd.f32 %v386_v29, %v385_v28  ;;  %v388_v32 = vpop.f32.mrb[2].mxu0 }
  0xf8   :  { %v389_v33 = vpop.f32.mrb[3].mxu0 }
  0xf9   :  { %v390_v34 = vadd.f32 %v389_v33, %v388_v32  ;;  %v246_v35 = vadd.f32 %v387_v31, %v334_v30 }
  0xfb   :  { %v295_v36 = vadd.f32 %v294_v25, %v246_v35  ;;  %v249_v37 = vadd.f32 %v390_v34, %v334_v30 }
  0xfd   :  { %v365_v38 = vpack.c.bf16 %v295_v36, %v295_v36  ;;  %v298_v39 = vadd.f32 %v297_v27, %v249_v37  ;;  %v391_v40 = vpop.f32.mrb[4].mxu0 }
  0xfe   :  { %v392_v41 = vpop.f32.mrb[5].mxu0 }
  0xff   :  { %326 = vst.msk [vmem:[%s549_s3] sm:$0xf] %vm325_vm1, %v365_v38  ;;  %v366_v42 = vpack.c.bf16 %v298_v39, %v298_v39  ;;  %v393_v43 = vadd.f32 %v392_v41, %v391_v40  ;;  %v394_v44 = vpop.f32.mrb[6].mxu0 }
 0x100   :  { %v395_v45 = vpop.f32.mrb[7].mxu0 }
 0x101   :  { %327 = vst.msk [vmem:[%s549_s3 + $0x4] sm:$0xf] %vm325_vm1, %v366_v42  ;;  %v254_v46 = vadd.f32 %v393_v43, %v334_v30  ;;  %v396_v47 = vadd.f32 %v395_v45, %v394_v44 }
 0x103   :  { %v303_v48 = vadd.f32 %v407_v24, %v254_v46  ;;  %v257_v49 = vadd.f32 %v396_v47, %v334_v30 }
 0x105   :  { %v367_v50 = vpack.c.bf16 %v303_v48, %v303_v48  ;;  %v306_v51 = vadd.f32 %v408_v26, %v257_v49 }
 0x107   :  { %328 = vst.msk [vmem:[%s549_s3 + $0x8] sm:$0xf] %vm325_vm1, %v367_v50  ;;  %v368_v52 = vpack.c.bf16 %v306_v51, %v306_v51 }
 0x109   :  { %329 = vst.msk [vmem:[%s549_s3 + $0xc] sm:$0xf] %vm325_vm1, %v368_v52 }

// kernel: promptir_baseline_forward.11
= control target key start
LH: loop header
LB: loop body
LE: loop exit
PB: predicated region body
PF: predicated region fallthrough
CT: control target
= control target key end

     0   :  { %v607_v35 = vmov 0.0   ;;  %vm608_vm0 = vmmov 0   ;;  %vm330_vm1 = vcmask 523264   ;;  %s752_s1 = inlined_call_operand.vmem [shape: bf16[576,128], index: 1, kind: input, shape index: {}]   ;;  %s753_s0 = inlined_call_operand.vmem [shape: bf16[8,576], index: 0, kind: input, shape index: {}]   ;;  %s754_s2 = inlined_call_operand.vmem [shape: f32[1,128], index: 2, kind: input, shape index: {}]   ;;  %s755_s3 = inlined_call_operand.vmem [shape: bf16[8,128], index: 3, kind: output, shape index: {}]  }
   0x1   :  { %v566_v0 = vld [vmem:[%s752_s1 + $0x40] sm:$0xff]   ;;  %v570_v4 = vld [vmem:[%s752_s1 + $0x48] sm:$0xff]   ;;  %v574_v8 = vld [vmem:[%s752_s1 + $0x50] sm:$0xff]  }
   0x2   :  { %v567_v1 = vld [vmem:[%s752_s1] sm:$0xff]   ;;  %503 = vmatprep.subr.bf16.mxu0 %v566_v0  ;;  %v571_v5 = vld [vmem:[%s752_s1 + $0x8] sm:$0xff]   ;;  %v575_v9 = vld [vmem:[%s752_s1 + $0x10] sm:$0xff]  }
   0x3   :  { %v568_v2 = vld [vmem:[%s752_s1 + $0xc0] sm:$0xff]   ;;  %504 = vmatpush3.bf16.msra.mxu0 %v567_v1  ;;  %v572_v6 = vld [vmem:[%s752_s1 + $0xc8] sm:$0xff]   ;;  %v576_v10 = vld [vmem:[%s752_s1 + $0xd0] sm:$0xff]  }
   0x4   :  { %v569_v3 = vld [vmem:[%s752_s1 + $0x80] sm:$0xff]   ;;  %525 = vmatprep.subr.bf16.mxu1 %v568_v2  ;;  %505 = vmatprep.subr.bf16.mxu0 %v570_v4  ;;  %v573_v7 = vld [vmem:[%s752_s1 + $0x88] sm:$0xff]   ;;  %v577_v11 = vld [vmem:[%s752_s1 + $0x90] sm:$0xff]  }
   0x5   :  { %526 = vmatpush3.bf16.msra.mxu1 %v569_v3  ;;  %v578_v12 = vld [vmem:[%s752_s1 + $0x58] sm:$0xff]   ;;  %v582_v16 = vld [vmem:[%s752_s1 + $0x60] sm:$0xff]   ;;  %v586_v20 = vld [vmem:[%s752_s1 + $0x68] sm:$0xff]  }
   0x6   :  { %527 = vmatprep.subr.bf16.mxu1 %v572_v6  ;;  %v579_v13 = vld [vmem:[%s752_s1 + $0x18] sm:$0xff]   ;;  %v583_v17 = vld [vmem:[%s752_s1 + $0x20] sm:$0xff]   ;;  %v587_v21 = vld [vmem:[%s752_s1 + $0x28] sm:$0xff]  }
   0x7   :  { %506 = vmatpush3.bf16.msra.mxu0 %v571_v5  ;;  %v580_v14 = vld [vmem:[%s752_s1 + $0xd8] sm:$0xff]   ;;  %v584_v18 = vld [vmem:[%s752_s1 + $0xe0] sm:$0xff]   ;;  %v588_v22 = vld [vmem:[%s752_s1 + $0xe8] sm:$0xff]  }
   0x8   :  { %507 = vmatprep.subr.bf16.mxu0 %v574_v8  ;;  %v581_v15 = vld [vmem:[%s752_s1 + $0x98] sm:$0xff]   ;;  %v585_v19 = vld [vmem:[%s752_s1 + $0xa0] sm:$0xff]   ;;  %v589_v23 = vld [vmem:[%s752_s1 + $0xa8] sm:$0xff]  }
   0x9   :  { %528 = vmatpush3.bf16.msra.mxu1 %v573_v7  ;;  %v590_v24 = vld [vmem:[%s752_s1 + $0x70] sm:$0xff]   ;;  %v594_v28 = vld [vmem:[%s752_s1 + $0x78] sm:$0xff]   ;;  %v15_v31 = vld [vmem:[%s753_s0] sm:$0xff] }
   0xa   :  { %529 = vmatprep.subr.bf16.mxu1 %v576_v10  ;;  %v591_v25 = vld [vmem:[%s752_s1 + $0x30] sm:$0xff]   ;;  %v595_v29 = vld [vmem:[%s752_s1 + $0x38] sm:$0xff]   ;;  %v461_v32 = vcombine.low %v15_v31, %v15_v31  ;;  %v462_v33 = vcombine.high %v15_v31, %v15_v31  ;;  %v16_v36 = vld [vmem:[%s753_s0 + $0x8] sm:$0xff] }
   0xb   :  { %508 = vmatpush3.bf16.msra.mxu0 %v575_v9  ;;  %v592_v26 = vld [vmem:[%s752_s1 + $0xf0] sm:$0xff]   ;;  %v596_v30 = vld [vmem:[%s752_s1 + $0xf8] sm:$0xff]   ;;  %v463_v37 = vcombine.low %v16_v36, %v16_v36  ;;  %v464_v38 = vcombine.high %v16_v36, %v16_v36  ;;  %v603_v39 = vld [vmem:[%s752_s1 + $0x100] sm:$0xff]  }
   0xc   :  { %509 = vmatprep.subr.bf16.mxu0 %v578_v12  ;;  %v593_v27 = vld [vmem:[%s752_s1 + $0xb0] sm:$0xff]   ;;  %v600_v34 = vld [vmem:[%s752_s1 + $0xb8] sm:$0xff]   ;;  %366 = vmatprep.mubr.bf16.mxu0 %v462_v33  ;;  %v604_v40 = vld [vmem:[%s752_s1 + $0x108] sm:$0xff]  }
   0xd   :  { %530 = vmatpush3.bf16.msra.mxu1 %v577_v11  ;;  %406 = vmatprep.mubr.bf16.mxu1 %v464_v38  ;;  %v605_v41 = vld [vmem:[%s752_s1 + $0x110] sm:$0xff]   ;;  %v606_v42 = vld [vmem:[%s752_s1 + $0x118] sm:$0xff]   ;;  %v460_v45 = vld [vmem:[%s754_s2] ss:$0 sm:$0xff] }
   0xe   :  { %531 = vmatprep.subr.bf16.mxu1 %v580_v14  ;;  %v599_v43 = vld [vmem:[%s753_s0 + $0x10] ss:$0 sps:$4 sm:$0xff]  }
   0xf   :  { %510 = vmatpush3.bf16.msra.mxu0 %v579_v13 }
  0x10   :  { %511 = vmatprep.subr.bf16.mxu0 %v582_v16 }
  0x11   :  { %532 = vmatpush3.bf16.msra.mxu1 %v581_v15 }
  0x12   :  { %533 = vmatprep.subr.bf16.mxu1 %v584_v18 }
  0x13   :  { %512 = vmatpush3.bf16.msra.mxu0 %v583_v17 }
  0x14   :  { %513 = vmatprep.subr.bf16.mxu0 %v586_v20 }
  0x15   :  { %534 = vmatpush3.bf16.msra.mxu1 %v585_v19 }
  0x16   :  { %535 = vmatprep.subr.bf16.mxu1 %v588_v22 }
  0x17   :  { %514 = vmatpush3.bf16.msra.mxu0 %v587_v21 }
  0x18   :  { %515 = vmatprep.subr.bf16.mxu0 %v590_v24 }
  0x19   :  { %536 = vmatpush3.bf16.msra.mxu1 %v589_v23 }
  0x1a   :  { %537 = vmatprep.subr.bf16.mxu1 %v592_v26 }
  0x1b   :  { %516 = vmatpush3.bf16.msra.mxu0 %v591_v25 }
  0x1c   :  { %517 = vmatprep.subr.bf16.mxu0 %v594_v28 }
  0x1d   :  { %538 = vmatpush3.bf16.msra.mxu1 %v593_v27 }
  0x1e   :  { %539 = vmatprep.subr.bf16.mxu1 %v596_v30 }
  0x1f   :  { %518 = vmatpush3.bf16.msra.mxu0 %v595_v29 }
  0x20   :  { %552 = vmatprep.subr.bf16.mxu0 %v607_v35 }
  0x21   :  { %540 = vmatpush3.bf16.msra.mxu1 %v600_v34 }
  0x22   :  { %367 = vmatmul.mubr.bf16.vlgmr.msra.gmra.mrb[0].mxu0 %v461_v32 }
  0x23   :  { %553 = vmatpush3.bf16.msra.mxu0 %v603_v39  ;;  %560 = vmatprep.mubr.msk.bf16.mxu0 %vm608_vm0, %v607_v35 }
  0x24   :  { %407 = vmatmul.mubr.bf16.vlgmr.msra.gmra.mrb[0].mxu1 %v463_v37  ;;  %554 = vmatprep.subr.bf16.mxu0 %v607_v35 }
  0x27   :  { %555 = vmatpush3.bf16.msra.mxu0 %v604_v40 }
  0x28   :  { %556 = vmatprep.subr.bf16.mxu0 %v607_v35 }
  0x2b   :  { %557 = vmatpush3.bf16.msra.mxu0 %v605_v41 }
  0x2c   :  { %558 = vmatprep.subr.bf16.mxu0 %v607_v35 }
  0x2f   :  { %559 = vmatpush3.bf16.msra.mxu0 %v606_v42 }
  0x32   :  { %561 = vmatmul.mubr.msk.bf16.vlgmr.msra.gmra.mrb[4].mxu0 %vm330_vm1, %v599_v43 }
  0xf5   :  { %v519_v44 = vpop.f32.mrb[0].mxu0 }
  0xf6   :  { %v520_v46 = vpop.f32.mrb[1].mxu0 }
  0xf7   :  { %v521_v47 = vadd.f32 %v520_v46, %v519_v44  ;;  %v522_v48 = vpop.f32.mrb[2].mxu0  ;;  %v541_v49 = vpop.f32.mrb[0].mxu1 }
  0xf8   :  { %v523_v50 = vpop.f32.mrb[3].mxu0  ;;  %v542_v51 = vpop.f32.mrb[1].mxu1 }
  0xf9   :  { %v369_v52 = vadd.f32 %v521_v47, %v460_v45  ;;  %v543_v53 = vadd.f32 %v542_v51, %v541_v49  ;;  %v544_v54 = vpop.f32.mrb[2].mxu1 }
  0xfa   :  { %v545_v55 = vpop.f32.mrb[3].mxu1 }
  0xfb   :  { %v409_v56 = vadd.f32 %v543_v53, %v369_v52 }
 0x105   :  { %v448_v57 = vpop.f32.mrb[4].mxu0 }
 0x106   :  { %v449_v58 = vadd.f32 %v448_v57, %v409_v56  ;;  %v562_v59 = vpop.f32.mrb[5].mxu0 }
 0x107   :  { %v451_v60 = vpop.f32.mrb[6].mxu0 }
 0x108   :  { %v454_v61 = vpack.c.bf16 %v449_v58, %v449_v58  ;;  %v563_v62 = vpop.f32.mrb[7].mxu0 }
 0x10a   :  { %455 = vst [vmem:[%s755_s3] sm:$0xf] %v454_v61 }

// kernel: promptir_baseline_forward.12
= control target key start
LH: loop header
LB: loop body
LE: loop exit
PB: predicated region body
PF: predicated region fallthrough
CT: control target
= control target key end

     0   :  { %v554_v1 = vmov 0   ;;  %v402_v57 = vlaneseq  ;;  %s741_s3 = inlined_call_operand.vmem [shape: bf16[256,256], index: 3, kind: input, shape index: {}]   ;;  %s742_s1 = inlined_call_operand.vmem [shape: bf16[128,256], index: 1, kind: input, shape index: {}]   ;;  %s743_s2 = inlined_call_operand.vmem [shape: bf16[8,256], index: 2, kind: input, shape index: {}]   ;;  %s744_s0 = inlined_call_operand.vmem [shape: bf16[8,128], index: 0, kind: input, shape index: {}]   ;;  %s745_s4 = inlined_call_operand.vmem [shape: f32[1,256], index: 4, kind: input, shape index: {}]   ;;  %s746_s5 = inlined_call_operand.vmem [shape: bf16[8,256], index: 5, kind: output, shape index: {}]  }
   0x1   :  { %v480_v0 = vld [vmem:[%s741_s3 + $0x4] ss:$8 sps:$4 sm:$0xff]   ;;  %391 = vmatprep.mubr.bf16.mxu1 %v554_v1  ;;  %v482_v2 = vld [vmem:[%s741_s3] ss:$8 sps:$4 sm:$0xff]   ;;  %v483_v3 = vld [vmem:[%s741_s3 + $0x14] ss:$8 sps:$4 sm:$0xff]  }
   0x2   :  { %238 = vmatprep.subr.bf16.mxu0 %v480_v0  ;;  %v485_v4 = vld [vmem:[%s741_s3 + $0x10] ss:$8 sps:$4 sm:$0xff]   ;;  %v486_v5 = vld [vmem:[%s741_s3 + $0x24] ss:$8 sps:$4 sm:$0xff]   ;;  %v488_v6 = vld [vmem:[%s741_s3 + $0x20] ss:$8 sps:$4 sm:$0xff]  }
   0x3   :  { %239 = vmatpush1.bf16.msra.mxu0 %v482_v2  ;;  %v489_v7 = vld [vmem:[%s741_s3 + $0x34] ss:$8 sps:$4 sm:$0xff]   ;;  %v491_v8 = vld [vmem:[%s741_s3 + $0x30] ss:$8 sps:$4 sm:$0xff]   ;;  %v504_v9 = vld [vmem:[%s742_s1 + $0x4] ss:$8 sps:$4 sm:$0xff]  }
   0x4   :  { %240 = vmatprep.subr.bf16.mxu0 %v483_v3  ;;  %v506_v10 = vld [vmem:[%s742_s1] ss:$8 sps:$4 sm:$0xff]   ;;  %v492_v11 = vld [vmem:[%s741_s3 + $0x44] ss:$8 sps:$4 sm:$0xff]   ;;  %359 = vmatprep.subr.bf16.mxu1 %v504_v9  ;;  %v510_v12 = vld [vmem:[%s742_s1 + $0x14] ss:$8 sps:$4 sm:$0xff]  }
   0x5   :  { %360 = vmatpush1.bf16.msra.mxu1 %v506_v10  ;;  %v512_v13 = vld [vmem:[%s742_s1 + $0x10] ss:$8 sps:$4 sm:$0xff]   ;;  %v494_v14 = vld [vmem:[%s741_s3 + $0x40] ss:$8 sps:$4 sm:$0xff]   ;;  %v495_v15 = vld [vmem:[%s741_s3 + $0x54] ss:$8 sps:$4 sm:$0xff]  }
   0x6   :  { %361 = vmatprep.subr.bf16.mxu1 %v510_v12  ;;  %v516_v16 = vld [vmem:[%s742_s1 + $0x24] ss:$8 sps:$4 sm:$0xff]   ;;  %v518_v17 = vld [vmem:[%s742_s1 + $0x20] ss:$8 sps:$4 sm:$0xff]   ;;  %v497_v18 = vld [vmem:[%s741_s3 + $0x50] ss:$8 sps:$4 sm:$0xff]  }
   0x7   :  { %241 = vmatpush1.bf16.msra.mxu0 %v485_v4  ;;  %v522_v19 = vld [vmem:[%s742_s1 + $0x34] ss:$8 sps:$4 sm:$0xff]   ;;  %v498_v20 = vld [vmem:[%s741_s3 + $0x64] ss:$8 sps:$4 sm:$0xff]   ;;  %v524_v21 = vld [vmem:[%s742_s1 + $0x30] ss:$8 sps:$4 sm:$0xff]  }
   0x8   :  { %242 = vmatprep.subr.bf16.mxu0 %v486_v5  ;;  %v500_v22 = vld [vmem:[%s741_s3 + $0x60] ss:$8 sps:$4 sm:$0xff]   ;;  %v528_v23 = vld [vmem:[%s742_s1 + $0x44] ss:$8 sps:$4 sm:$0xff]   ;;  %v501_v24 = vld [vmem:[%s741_s3 + $0x74] ss:$8 sps:$4 sm:$0xff]  }
   0x9   :  { %362 = vmatpush1.bf16.msra.mxu1 %v512_v13  ;;  %v530_v25 = vld [vmem:[%s742_s1 + $0x40] ss:$8 sps:$4 sm:$0xff]   ;;  %v503_v26 = vld [vmem:[%s741_s3 + $0x70] ss:$8 sps:$4 sm:$0xff]   ;;  %v534_v27 = vld [vmem:[%s742_s1 + $0x54] ss:$8 sps:$4 sm:$0xff]  }
   0xa   :  { %363 = vmatprep.subr.bf16.mxu1 %v516_v16  ;;  %v507_v28 = vld [vmem:[%s741_s3 + $0x84] ss:$8 sps:$4 sm:$0xff]   ;;  %v536_v29 = vld [vmem:[%s742_s1 + $0x50] ss:$8 sps:$4 sm:$0xff]   ;;  %v509_v30 = vld [vmem:[%s741_s3 + $0x80] ss:$8 sps:$4 sm:$0xff]  }
   0xb   :  { %243 = vmatpush1.bf16.msra.mxu0 %v488_v6  ;;  %v540_v31 = vld [vmem:[%s742_s1 + $0x64] ss:$8 sps:$4 sm:$0xff]   ;;  %v513_v32 = vld [vmem:[%s741_s3 + $0x94] ss:$8 sps:$4 sm:$0xff]   ;;  %v542_v35 = vld [vmem:[%s742_s1 + $0x60] ss:$8 sps:$4 sm:$0xff]  }
   0xc   :  { %244 = vmatprep.subr.bf16.mxu0 %v489_v7  ;;  %v38_v33 = vld [vmem:[%s743_s2] sm:$0xff]  ;;  %v515_v36 = vld [vmem:[%s741_s3 + $0x90] ss:$8 sps:$4 sm:$0xff]   ;;  %v546_v37 = vld [vmem:[%s742_s1 + $0x74] ss:$8 sps:$4 sm:$0xff]   ;;  %v403_v58 = vshrl.u32 %v402_v57, 7 }
   0xd   :  { %364 = vmatpush1.bf16.msra.mxu1 %v518_v17  ;;  %v428_v34 = vcombine.high %v38_v33, %v38_v33  ;;  %v519_v38 = vld [vmem:[%s741_s3 + $0xa4] ss:$8 sps:$4 sm:$0xff]   ;;  %v548_v39 = vld [vmem:[%s742_s1 + $0x70] ss:$8 sps:$4 sm:$0xff]   ;;  %v521_v40 = vld [vmem:[%s741_s3 + $0xa0] ss:$8 sps:$4 sm:$0xff]   ;;  %v427_v52 = vcombine.low %v38_v33, %v38_v33 }
   0xe   :  { %365 = vmatprep.subr.bf16.mxu1 %v522_v19  ;;  %v525_v41 = vld [vmem:[%s741_s3 + $0xb4] ss:$8 sps:$4 sm:$0xff]   ;;  %v21_v42 = vld [vmem:[%s744_s0] sm:$0xf]  ;;  %v527_v43 = vld [vmem:[%s741_s3 + $0xb0] ss:$8 sps:$4 sm:$0xff]  }
   0xf   :  { %245 = vmatpush1.bf16.msra.mxu0 %v491_v8  ;;  %270 = vmatprep.mubr.bf16.mxu0 %v428_v34  ;;  %v531_v44 = vld [vmem:[%s741_s3 + $0xc4] ss:$8 sps:$4 sm:$0xff]   ;;  %v533_v45 = vld [vmem:[%s741_s3 + $0xc0] ss:$8 sps:$4 sm:$0xff]   ;;  %v537_v46 = vld [vmem:[%s741_s3 + $0xd4] ss:$8 sps:$4 sm:$0xff]  }
  0x10   :  { %246 = vmatprep.subr.bf16.mxu0 %v492_v11  ;;  %v539_v47 = vld [vmem:[%s741_s3 + $0xd0] ss:$8 sps:$4 sm:$0xff]   ;;  %v543_v48 = vld [vmem:[%s741_s3 + $0xe4] ss:$8 sps:$4 sm:$0xff]   ;;  %v545_v49 = vld [vmem:[%s741_s3 + $0xe0] ss:$8 sps:$4 sm:$0xff]  }
  0x11   :  { %366 = vmatpush1.bf16.msra.mxu1 %v524_v21  ;;  %v549_v50 = vld [vmem:[%s741_s3 + $0xf4] ss:$8 sps:$4 sm:$0xff]   ;;  %v551_v51 = vld [vmem:[%s741_s3 + $0xf0] ss:$8 sps:$4 sm:$0xff]   ;;  %v404_v59 = vsub.s32 0, %v403_v58  ;;  %v408_v61 = vsub.s32 1, %v403_v58 }
  0x12   :  { %367 = vmatprep.subr.bf16.mxu1 %v528_v23  ;;  %v400_v60 = vld [vmem:[%s745_s4] sm:$0x3] }
  0x13   :  { %247 = vmatpush1.bf16.msra.mxu0 %v494_v14  ;;  %v405_v62 = vrot.slane %v400_v60, %v404_v59  ;;  %v409_v0 = vrot.slane %v400_v60, %v408_v61 }
  0x14   :  { %248 = vmatprep.subr.bf16.mxu0 %v495_v15 }
  0x15   :  { %368 = vmatpush1.bf16.msra.mxu1 %v530_v25 }
  0x16   :  { %369 = vmatprep.subr.bf16.mxu1 %v534_v27 }
  0x17   :  { %249 = vmatpush1.bf16.msra.mxu0 %v497_v18 }
  0x18   :  { %250 = vmatprep.subr.bf16.mxu0 %v498_v20 }
  0x19   :  { %370 = vmatpush1.bf16.msra.mxu1 %v536_v29 }
  0x1a   :  { %371 = vmatprep.subr.bf16.mxu1 %v540_v31 }
  0x1b   :  { %251 = vmatpush1.bf16.msra.mxu0 %v500_v22 }
  0x1c   :  { %252 = vmatprep.subr.bf16.mxu0 %v501_v24 }
  0x1d   :  { %372 = vmatpush1.bf16.msra.mxu1 %v542_v35 }
  0x1e   :  { %373 = vmatprep.subr.bf16.mxu1 %v546_v37 }
  0x1f   :  { %253 = vmatpush1.bf16.msra.mxu0 %v503_v26 }
  0x20   :  { %254 = vmatprep.subr.bf16.mxu0 %v507_v28 }
  0x21   :  { %374 = vmatpush1.bf16.msra.mxu1 %v548_v39 }
  0x23   :  { %255 = vmatpush1.bf16.msra.mxu0 %v509_v30 }
  0x24   :  { %256 = vmatprep.subr.bf16.mxu0 %v513_v32  ;;  %392 = vmatmul.mubr.bf16.vlgmr.msra.gmra.mrb[0].mxu1 %v21_v42 }
  0x27   :  { %257 = vmatpush1.bf16.msra.mxu0 %v515_v36 }
  0x28   :  { %258 = vmatprep.subr.bf16.mxu0 %v519_v38 }
  0x2b   :  { %259 = vmatpush1.bf16.msra.mxu0 %v521_v40 }
  0x2c   :  { %260 = vmatprep.subr.bf16.mxu0 %v525_v41 }
  0x2f   :  { %261 = vmatpush1.bf16.msra.mxu0 %v527_v43 }
  0x30   :  { %262 = vmatprep.subr.bf16.mxu0 %v531_v44 }
  0x33   :  { %263 = vmatpush1.bf16.msra.mxu0 %v533_v45 }
  0x34   :  { %264 = vmatprep.subr.bf16.mxu0 %v537_v46 }
  0x37   :  { %265 = vmatpush1.bf16.msra.mxu0 %v539_v47 }
  0x38   :  { %266 = vmatprep.subr.bf16.mxu0 %v543_v48 }
  0x3b   :  { %267 = vmatpush1.bf16.msra.mxu0 %v545_v49 }
  0x3c   :  { %268 = vmatprep.subr.bf16.mxu0 %v549_v50 }
  0x3f   :  { %269 = vmatpush1.bf16.msra.mxu0 %v551_v51 }
  0x42   :  { %271 = vmatmul.mubr.bf16.vlgmr.msra.gmra.mrb[0].mxu0 %v427_v52 }
  0xf7   :  { %v393_v53 = vpop.f32.mrb[0].mxu1 }
  0xf8   :  { %v395_v54 = vpop.f32.mrb[1].mxu1 }
  0xf9   :  { %v397_v55 = vpop.f32.mrb[2].mxu1 }
  0xfa   :  { %v398_v56 = vpop.f32.mrb[3].mxu1 }
 0x115   :  { %v272_v63 = vpop.f32.mrb[0].mxu0 }
 0x116   :  { %v394_v1 = vadd.f32 %v393_v53, %v272_v63  ;;  %v274_v2 = vpop.f32.mrb[1].mxu0 }
 0x117   :  { %v396_v3 = vadd.f32 %v395_v54, %v274_v2  ;;  %v276_v4 = vpop.f32.mrb[2].mxu0 }
 0x118   :  { %v412_v5 = vadd.f32 %v405_v62, %v394_v1  ;;  %v277_v6 = vpop.f32.mrb[3].mxu0 }
 0x119   :  { %v413_v7 = vadd.f32 %v409_v0, %v396_v3 }
 0x11b   :  { %v478_v8 = vpack.c.bf16 %v413_v7, %v412_v5 }
 0x11d   :  { %422 = vst [vmem:[%s746_s5] sm:$0xff] %v478_v8 }

// kernel: promptir_baseline_forward.13
= control target key start
LH: loop header
LB: loop body
LE: loop exit
PB: predicated region body
PF: predicated region fallthrough
CT: control target
= control target key end

     0   :  { %vm196_vm0 = vcmask 523264   ;;  %s482_s3 = inlined_call_operand.vmem [shape: bf16[128,128], index: 3, kind: input, shape index: {}]   ;;  %s483_s1 = inlined_call_operand.vmem [shape: bf16[64,128], index: 1, kind: input, shape index: {}]   ;;  %s484_s0 = inlined_call_operand.vmem [shape: bf16[32,64], index: 0, kind: input, shape index: {}]   ;;  %s485_s2 = inlined_call_operand.vmem [shape: bf16[32,128], index: 2, kind: input, shape index: {}]   ;;  %s486_s4 = inlined_call_operand.vmem [shape: f32[1,128], index: 4, kind: input, shape index: {}]   ;;  %s487_s5 = inlined_call_operand.vmem [shape: bf16[32,128], index: 5, kind: output, shape index: {}]  }
   0x1   :  { %v377_v0 = vld [vmem:[%s482_s3] sm:$0xff]   ;;  %v378_v1 = vld [vmem:[%s482_s3 + $0x8] sm:$0xff]   ;;  %v379_v2 = vld [vmem:[%s482_s3 + $0x10] sm:$0xff]  }
   0x2   :  { %341 = vmatprep.subr.bf16.mxu1 %v377_v0  ;;  %v381_v3 = vld [vmem:[%s483_s1] sm:$0xff]   ;;  %v383_v4 = vld [vmem:[%s483_s1 + $0x8] sm:$0xff]   ;;  %v380_v5 = vld [vmem:[%s482_s3 + $0x18] sm:$0xff]  }
   0x3   :  { %342 = vmatpush3.bf16.msra.mxu1 %v377_v0  ;;  %361 = vmatprep.subr.bf16.mxu0 %v381_v3  ;;  %v385_v6 = vld [vmem:[%s483_s1 + $0x10] sm:$0xff]   ;;  %v382_v7 = vld [vmem:[%s482_s3 + $0x20] sm:$0xff]   ;;  %v387_v8 = vld [vmem:[%s483_s1 + $0x18] sm:$0xff]  }
   0x4   :  { %343 = vmatprep.subr.bf16.mxu1 %v378_v1  ;;  %362 = vmatpush3.bf16.msra.mxu0 %v381_v3  ;;  %v389_v9 = vld [vmem:[%s484_s0] sm:$0xff]   ;;  %v384_v11 = vld [vmem:[%s482_s3 + $0x28] sm:$0xff]   ;;  %v386_v13 = vld [vmem:[%s482_s3 + $0x30] sm:$0xff]  }
   0x5   :  { %363 = vmatprep.subr.bf16.mxu0 %v383_v4  ;;  %369 = vmatprep.mubr.msk.bf16.mxu0 %vm196_vm0, %v389_v9  ;;  %v391_v10 = vld [vmem:[%s485_s2] sm:$0xff]   ;;  %v390_v12 = vld [vmem:[%s484_s0 + $0x8] sm:$0xff]   ;;  %v388_v14 = vld [vmem:[%s482_s3 + $0x38] sm:$0xff]  }
   0x6   :  { %357 = vmatprep.mubr.bf16.mxu1 %v391_v10  ;;  %v392_v15 = vld [vmem:[%s485_s2 + $0x8] sm:$0xff]   ;;  %v305_v23 = vld [vmem:[%s486_s4] ss:$0 sm:$0xff] }
   0x7   :  { %344 = vmatpush3.bf16.msra.mxu1 %v378_v1 }
   0x8   :  { %345 = vmatprep.subr.bf16.mxu1 %v379_v2  ;;  %364 = vmatpush3.bf16.msra.mxu0 %v383_v4 }
   0x9   :  { %365 = vmatprep.subr.bf16.mxu0 %v385_v6 }
   0xb   :  { %346 = vmatpush3.bf16.msra.mxu1 %v379_v2 }
   0xc   :  { %347 = vmatprep.subr.bf16.mxu1 %v380_v5  ;;  %366 = vmatpush3.bf16.msra.mxu0 %v385_v6 }
   0xd   :  { %367 = vmatprep.subr.bf16.mxu0 %v387_v8 }
   0xf   :  { %348 = vmatpush3.bf16.msra.mxu1 %v380_v5 }
  0x10   :  { %349 = vmatprep.subr.bf16.mxu1 %v382_v7  ;;  %368 = vmatpush3.bf16.msra.mxu0 %v387_v8 }
  0x13   :  { %350 = vmatpush3.bf16.msra.mxu1 %v382_v7  ;;  %370 = vmatmul.mubr.msk.bf16.vlgmr.msra.gmra.mrb[0].mxu0 %vm196_vm0, %v390_v12 }
  0x14   :  { %351 = vmatprep.subr.bf16.mxu1 %v384_v11 }
  0x17   :  { %352 = vmatpush3.bf16.msra.mxu1 %v384_v11 }
  0x18   :  { %353 = vmatprep.subr.bf16.mxu1 %v386_v13 }
  0x1b   :  { %354 = vmatpush3.bf16.msra.mxu1 %v386_v13 }
  0x1c   :  { %355 = vmatprep.subr.bf16.mxu1 %v388_v14 }
  0x1f   :  { %356 = vmatpush3.bf16.msra.mxu1 %v388_v14 }
  0x22   :  { %358 = vmatmul.mubr.bf16.vlgmr.msra.gmra.mrb[0].mxu1 %v392_v15 }
  0xe6   :  { %v371_v16 = vpop.f32.mrb[0].mxu0 }
  0xe7   :  { %v237_v17 = vpop.f32.mrb[1].mxu0 }
  0xe8   :  { %v372_v18 = vpop.f32.mrb[2].mxu0 }
  0xe9   :  { %v240_v19 = vpop.f32.mrb[3].mxu0 }
  0xf5   :  { %v359_v20 = vpop.f32.mrb[0].mxu1 }
  0xf6   :  { %v246_v21 = vadd.f32 %v371_v16, %v359_v20  ;;  %v147_v22 = vpop.f32.mrb[1].mxu1 }
  0xf7   :  { %v238_v24 = vadd.f32 %v237_v17, %v147_v22  ;;  %v360_v25 = vpop.f32.mrb[2].mxu1 }
  0xf8   :  { %v249_v26 = vadd.f32 %v372_v18, %v360_v25  ;;  %v150_v27 = vpop.f32.mrb[3].mxu1  ;;  %v261_v29 = vadd.f32 %v305_v23, %v246_v21 }
  0xf9   :  { %v241_v28 = vadd.f32 %v240_v19, %v150_v27  ;;  %v259_v31 = vadd.f32 %v305_v23, %v238_v24 }
  0xfa   :  { %v262_v30 = vadd.f32 %v305_v23, %v249_v26 }
  0xfb   :  { %v260_v32 = vadd.f32 %v305_v23, %v241_v28 }
  0xfc   :  { %v322_v33 = vpack.c.bf16 %v262_v30, %v261_v29 }
  0xfd   :  { %v317_v34 = vpack.c.bf16 %v260_v32, %v259_v31 }
  0xfe   :  { %324 = vst [vmem:[%s487_s5 + $0x8] sm:$0xff] %v322_v33  }
  0xff   :  { %318 = vst [vmem:[%s487_s5] sm:$0xff] %v317_v34  }

// kernel: promptir_baseline_forward.14
= control target key start
LH: loop header
LB: loop body
LE: loop exit
PB: predicated region body
PF: predicated region fallthrough
CT: control target
= control target key end

     0   :  { %vm303_vm0 = vcmask 261120   ;;  %vm129_vm1 = vcmask 523264   ;;  %vm512_vm2 = vcmask 519168   ;;  %s905_s3 = inlined_call_operand.vmem [shape: bf16[64,64], index: 3, kind: input, shape index: {}]   ;;  %s906_s1 = inlined_call_operand.vmem [shape: bf16[32,64], index: 1, kind: input, shape index: {}]   ;;  %s907_s0 = inlined_call_operand.vmem [shape: bf16[128,32], index: 0, kind: input, shape index: {}]   ;;  %s908_s2 = inlined_call_operand.vmem [shape: bf16[128,64], index: 2, kind: input, shape index: {}]   ;;  %s909_s4 = inlined_call_operand.vmem [shape: f32[1,64], index: 4, kind: input, shape index: {}]   ;;  %s910_s5 = inlined_call_operand.vmem [shape: bf16[128,64], index: 5, kind: output, shape index: {}]  }
   0x1   :  { %v686_v0 = vld [vmem:[%s905_s3] sm:$0xff]   ;;  %v687_v1 = vld [vmem:[%s905_s3 + $0x8] sm:$0xff]   ;;  %v689_v3 = vld [vmem:[%s905_s3 + $0x10] sm:$0xff]  }
   0x2   :  { %626 = vmatprep.subr.bf16.mxu1 %v686_v0  ;;  %v688_v2 = vld [vmem:[%s906_s1] sm:$0xff]   ;;  %v690_v4 = vld [vmem:[%s906_s1 + $0x8] sm:$0xff]   ;;  %v691_v5 = vld [vmem:[%s905_s3 + $0x18] sm:$0xff]  }
   0x3   :  { %627 = vmatpush3.bf16.msra.mxu1 %v686_v0  ;;  %650 = vmatprep.subr.bf16.mxu0 %v688_v2  ;;  %v692_v6 = vld [vmem:[%s907_s0] sm:$0xff]   ;;  %v693_v7 = vld [vmem:[%s907_s0 + $0x8] sm:$0xff]   ;;  %v696_v9 = vld [vmem:[%s907_s0 + $0x10] sm:$0xff]  }
   0x4   :  { %628 = vmatprep.subr.bf16.mxu1 %v687_v1  ;;  %651 = vmatpush3.bf16.msra.mxu0 %v688_v2  ;;  %v694_v8 = vld [vmem:[%s908_s2] sm:$0xff]   ;;  %v695_v10 = vld [vmem:[%s908_s2 + $0x8] sm:$0xff]   ;;  %v698_v11 = vld [vmem:[%s908_s2 + $0x10] sm:$0xff]  }
   0x5   :  { %652 = vmatprep.subr.bf16.mxu0 %v690_v4  ;;  %654 = vmatprep.mubr.msk.bf16.mxu0 %vm303_vm0, %v692_v6  ;;  %v697_v12 = vld [vmem:[%s907_s0 + $0x18] sm:$0xff]   ;;  %v700_v13 = vld [vmem:[%s907_s0 + $0x20] sm:$0xff]   ;;  %v701_v16 = vld [vmem:[%s907_s0 + $0x28] sm:$0xff]  }
   0x6   :  { %634 = vmatprep.mubr.msk.bf16.mxu1 %vm129_vm1, %v694_v8  ;;  %v699_v14 = vld [vmem:[%s908_s2 + $0x18] sm:$0xff]   ;;  %v702_v15 = vld [vmem:[%s908_s2 + $0x20] sm:$0xff]   ;;  %v704_v17 = vld [vmem:[%s907_s0 + $0x30] sm:$0xff]  }
   0x7   :  { %629 = vmatpush3.bf16.msra.mxu1 %v687_v1  ;;  %v703_v18 = vld [vmem:[%s908_s2 + $0x28] sm:$0xff]   ;;  %v706_v19 = vld [vmem:[%s908_s2 + $0x30] sm:$0xff]   ;;  %v705_v20 = vld [vmem:[%s907_s0 + $0x38] sm:$0xff]  }
   0x8   :  { %630 = vmatprep.subr.bf16.mxu1 %v689_v3  ;;  %653 = vmatpush3.bf16.msra.mxu0 %v690_v4  ;;  %v707_v21 = vld [vmem:[%s908_s2 + $0x38] sm:$0xff]   ;;  %v823_v27 = vld [vmem:[%s909_s4] ss:$0 sm:$0xff] }
   0xb   :  { %631 = vmatpush3.bf16.msra.mxu1 %v689_v3  ;;  %655 = vmatmul.mubr.msk.bf16.vlgmr.msra.gmra.mrb[0].mxu0 %vm303_vm0, %v693_v7 }
   0xc   :  { %632 = vmatprep.subr.bf16.mxu1 %v691_v5  ;;  %658 = vmatprep.mubr.msk.bf16.mxu0 %vm303_vm0, %v696_v9 }
   0xf   :  { %633 = vmatpush3.bf16.msra.mxu1 %v691_v5 }
  0x12   :  { %635 = vmatmul.mubr.msk.bf16.vlgmr.msra.gmra.mrb[0].mxu1 %vm129_vm1, %v695_v10 }
  0x13   :  { %638 = vmatprep.mubr.msk.bf16.mxu1 %vm129_vm1, %v698_v11  ;;  %659 = vmatmul.mubr.msk.bf16.gmra.mrb[4].mxu0 %vm303_vm0, %v697_v12 }
  0x14   :  { %662 = vmatprep.mubr.msk.bf16.mxu0 %vm303_vm0, %v700_v13 }
  0x1a   :  { %639 = vmatmul.mubr.msk.bf16.gmra.mrb[4].mxu1 %vm129_vm1, %v699_v14 }
  0x1b   :  { %642 = vmatprep.mubr.msk.bf16.mxu1 %vm129_vm1, %v702_v15  ;;  %663 = vmatmul.mubr.msk.bf16.gmra.mrb[8].mxu0 %vm303_vm0, %v701_v16 }
  0x1c   :  { %666 = vmatprep.mubr.msk.bf16.mxu0 %vm303_vm0, %v704_v17 }
  0x22   :  { %643 = vmatmul.mubr.msk.bf16.gmra.mrb[8].mxu1 %vm129_vm1, %v703_v18 }
  0x23   :  { %646 = vmatprep.mubr.msk.bf16.mxu1 %vm129_vm1, %v706_v19  ;;  %667 = vmatmul.mubr.msk.bf16.gmra.mrb[12].mxu0 %vm303_vm0, %v705_v20 }
  0x2a   :  { %647 = vmatmul.mubr.msk.bf16.gmra.mrb[12].mxu1 %vm129_vm1, %v707_v21 }
  0xde   :  { %v656_v22 = vpop.f32.mrb[0].mxu0 }
  0xdf   :  { %v362_v23 = vpop.f32.mrb[1].mxu0 }
  0xe0   :  { %v657_v24 = vpop.f32.mrb[2].mxu0 }
  0xe1   :  { %v365_v25 = vpop.f32.mrb[3].mxu0 }
  0xe5   :  { %v636_v26 = vpop.f32.mrb[0].mxu1 }
  0xe6   :  { %v371_v28 = vadd.f32 %v656_v22, %v636_v26  ;;  %v188_v29 = vpop.f32.mrb[1].mxu1  ;;  %v660_v32 = vpop.f32.mrb[4].mxu0 }
  0xe7   :  { %v363_v30 = vadd.f32 %v362_v23, %v188_v29  ;;  %v637_v31 = vpop.f32.mrb[2].mxu1  ;;  %v378_v36 = vpop.f32.mrb[5].mxu0 }
  0xe8   :  { %v434_v33 = vadd.f32 %v823_v27, %v371_v28  ;;  %v374_v34 = vadd.f32 %v657_v24, %v637_v31  ;;  %v191_v35 = vpop.f32.mrb[3].mxu1  ;;  %v661_v39 = vpop.f32.mrb[6].mxu0 }
  0xe9   :  { %v432_v37 = vadd.f32 %v823_v27, %v363_v30  ;;  %v366_v38 = vadd.f32 %v365_v25, %v191_v35  ;;  %v381_v42 = vpop.f32.mrb[7].mxu0 }
  0xea   :  { %v590_v40 = vpack.c.bf16 %v434_v33, %v434_v33  ;;  %v435_v41 = vadd.f32 %v823_v27, %v374_v34 }
  0xeb   :  { %v588_v43 = vpack.c.bf16 %v432_v37, %v432_v37  ;;  %v433_v44 = vadd.f32 %v823_v27, %v366_v38 }
  0xec   :  { %515 = vst.msk [vmem:[%s910_s5 + $0x8] sm:$0xf] %vm512_vm2, %v590_v40  ;;  %v591_v45 = vpack.c.bf16 %v435_v41, %v435_v41 }
  0xed   :  { %513 = vst.msk [vmem:[%s910_s5] sm:$0xf] %vm512_vm2, %v588_v43  ;;  %v589_v46 = vpack.c.bf16 %v433_v44, %v433_v44  ;;  %v640_v47 = vpop.f32.mrb[4].mxu1 }
  0xee   :  { %516 = vst.msk [vmem:[%s910_s5 + $0xc] sm:$0xf] %vm512_vm2, %v591_v45  ;;  %v387_v48 = vadd.f32 %v660_v32, %v640_v47  ;;  %v204_v49 = vpop.f32.mrb[5].mxu1  ;;  %v664_v52 = vpop.f32.mrb[8].mxu0 }
  0xef   :  { %514 = vst.msk [vmem:[%s910_s5 + $0x4] sm:$0xf] %vm512_vm2, %v589_v46  ;;  %v379_v50 = vadd.f32 %v378_v36, %v204_v49  ;;  %v641_v51 = vpop.f32.mrb[6].mxu1  ;;  %v394_v56 = vpop.f32.mrb[9].mxu0 }
  0xf0   :  { %v438_v53 = vadd.f32 %v823_v27, %v387_v48  ;;  %v390_v54 = vadd.f32 %v661_v39, %v641_v51  ;;  %v207_v55 = vpop.f32.mrb[7].mxu1  ;;  %v665_v59 = vpop.f32.mrb[10].mxu0 }
  0xf1   :  { %v436_v57 = vadd.f32 %v823_v27, %v379_v50  ;;  %v382_v58 = vadd.f32 %v381_v42, %v207_v55  ;;  %v397_v62 = vpop.f32.mrb[11].mxu0 }
  0xf2   :  { %v594_v60 = vpack.c.bf16 %v438_v53, %v438_v53  ;;  %v439_v61 = vadd.f32 %v823_v27, %v390_v54 }
  0xf3   :  { %v592_v63 = vpack.c.bf16 %v436_v57, %v436_v57  ;;  %v437_v0 = vadd.f32 %v823_v27, %v382_v58 }
  0xf4   :  { %519 = vst.msk [vmem:[%s910_s5 + $0x18] sm:$0xf] %vm512_vm2, %v594_v60  ;;  %v595_v1 = vpack.c.bf16 %v439_v61, %v439_v61 }
  0xf5   :  { %517 = vst.msk [vmem:[%s910_s5 + $0x10] sm:$0xf] %vm512_vm2, %v592_v63  ;;  %v593_v2 = vpack.c.bf16 %v437_v0, %v437_v0  ;;  %v644_v3 = vpop.f32.mrb[8].mxu1 }
  0xf6   :  { %520 = vst.msk [vmem:[%s910_s5 + $0x1c] sm:$0xf] %vm512_vm2, %v595_v1  ;;  %v403_v4 = vadd.f32 %v664_v52, %v644_v3  ;;  %v220_v5 = vpop.f32.mrb[9].mxu1  ;;  %v668_v8 = vpop.f32.mrb[12].mxu0 }
  0xf7   :  { %518 = vst.msk [vmem:[%s910_s5 + $0x14] sm:$0xf] %vm512_vm2, %v593_v2  ;;  %v395_v6 = vadd.f32 %v394_v56, %v220_v5  ;;  %v645_v7 = vpop.f32.mrb[10].mxu1  ;;  %v410_v12 = vpop.f32.mrb[13].mxu0 }
  0xf8   :  { %v442_v9 = vadd.f32 %v823_v27, %v403_v4  ;;  %v406_v10 = vadd.f32 %v665_v59, %v645_v7  ;;  %v223_v11 = vpop.f32.mrb[11].mxu1  ;;  %v669_v15 = vpop.f32.mrb[14].mxu0 }
  0xf9   :  { %v440_v13 = vadd.f32 %v823_v27, %v395_v6  ;;  %v398_v14 = vadd.f32 %v397_v62, %v223_v11  ;;  %v413_v18 = vpop.f32.mrb[15].mxu0 }
  0xfa   :  { %v598_v16 = vpack.c.bf16 %v442_v9, %v442_v9  ;;  %v443_v17 = vadd.f32 %v823_v27, %v406_v10 }
  0xfb   :  { %v596_v19 = vpack.c.bf16 %v440_v13, %v440_v13  ;;  %v441_v20 = vadd.f32 %v823_v27, %v398_v14 }
  0xfc   :  { %523 = vst.msk [vmem:[%s910_s5 + $0x28] sm:$0xf] %vm512_vm2, %v598_v16  ;;  %v599_v21 = vpack.c.bf16 %v443_v17, %v443_v17 }
  0xfd   :  { %521 = vst.msk [vmem:[%s910_s5 + $0x20] sm:$0xf] %vm512_vm2, %v596_v19  ;;  %v597_v22 = vpack.c.bf16 %v441_v20, %v441_v20  ;;  %v648_v23 = vpop.f32.mrb[12].mxu1 }
  0xfe   :  { %524 = vst.msk [vmem:[%s910_s5 + $0x2c] sm:$0xf] %vm512_vm2, %v599_v21  ;;  %v419_v24 = vadd.f32 %v668_v8, %v648_v23  ;;  %v236_v25 = vpop.f32.mrb[13].mxu1 }
  0xff   :  { %522 = vst.msk [vmem:[%s910_s5 + $0x24] sm:$0xf] %vm512_vm2, %v597_v22  ;;  %v411_v26 = vadd.f32 %v410_v12, %v236_v25  ;;  %v649_v28 = vpop.f32.mrb[14].mxu1 }
 0x100   :  { %v446_v29 = vadd.f32 %v823_v27, %v419_v24  ;;  %v422_v30 = vadd.f32 %v669_v15, %v649_v28  ;;  %v239_v31 = vpop.f32.mrb[15].mxu1 }
 0x101   :  { %v444_v32 = vadd.f32 %v823_v27, %v411_v26  ;;  %v414_v33 = vadd.f32 %v413_v18, %v239_v31 }
 0x102   :  { %v602_v34 = vpack.c.bf16 %v446_v29, %v446_v29  ;;  %v447_v35 = vadd.f32 %v823_v27, %v422_v30 }
 0x103   :  { %v600_v36 = vpack.c.bf16 %v444_v32, %v444_v32  ;;  %v445_v37 = vadd.f32 %v823_v27, %v414_v33 }
 0x104   :  { %527 = vst.msk [vmem:[%s910_s5 + $0x38] sm:$0xf] %vm512_vm2, %v602_v34  ;;  %v603_v38 = vpack.c.bf16 %v447_v35, %v447_v35 }
 0x105   :  { %525 = vst.msk [vmem:[%s910_s5 + $0x30] sm:$0xf] %vm512_vm2, %v600_v36  ;;  %v601_v39 = vpack.c.bf16 %v445_v37, %v445_v37 }
 0x106   :  { %528 = vst.msk [vmem:[%s910_s5 + $0x3c] sm:$0xf] %vm512_vm2, %v603_v38 }
 0x107   :  { %526 = vst.msk [vmem:[%s910_s5 + $0x34] sm:$0xf] %vm512_vm2, %v601_v39 }

// kernel: promptir_baseline_forward.15
= control target key start
LH: loop header
LB: loop body
LE: loop exit
PB: predicated region body
PF: predicated region fallthrough
CT: control target
= control target key end

     0   :  { %v1515_v0 = vmov 0   ;;  %vm446_vm0 = vcmask 130048   ;;  %vm1088_vm1 = vcmask 19456   ;;  %s2112_s1 = inlined_call_operand.vmem [shape: bf16[144,3], index: 1, kind: input, shape index: {}]   ;;  %s2113_s0 = inlined_call_operand.vmem [shape: bf16[512,144], index: 0, kind: input, shape index: {}]   ;;  %s2114_s2 = inlined_call_operand.vmem [shape: f32[1,3], index: 2, kind: input, shape index: {}]   ;;  %s2115_s3 = inlined_call_operand.vmem [shape: bf16[512,3], index: 3, kind: output, shape index: {}]  }
   0x1   :  { %543 = vmatprep.subr.bf16.mxu0 %v1515_v0  ;;  %1391 = vmatprep.subr.bf16.mxu1 %v1515_v0  ;;  %v1410_v1 = vld [vmem:[%s2112_s1] sm:$0xff]   ;;  %v1411_v2 = vld [vmem:[%s2112_s1 + $0x8] sm:$0xff]   ;;  %v1412_v3 = vld [vmem:[%s2112_s1 + $0x10] sm:$0xff]  }
   0x2   :  { %544 = vmatpush1.bf16.msra.mxu0 %v1410_v1  ;;  %1400 = vmatpush1.bf16.msra.mxu1 %v1410_v1  ;;  %v1413_v4 = vld [vmem:[%s2112_s1 + $0x18] sm:$0xff]   ;;  %v1421_v5 = vld [vmem:[%s2113_s0 + $0x4] ss:$8 sps:$4 sm:$0xff]   ;;  %v1416_v9 = vld [vmem:[%s2112_s1 + $0x30] sm:$0xff]  }
   0x3   :  { %545 = vmatprep.subr.bf16.mxu0 %v1515_v0  ;;  %1392 = vmatprep.subr.bf16.mxu1 %v1515_v0  ;;  %v1424_v6 = vld [vmem:[%s2113_s0 + $0x104] ss:$8 sps:$4 sm:$0xff]   ;;  %v1417_v10 = vld [vmem:[%s2112_s1 + $0x38] sm:$0xff]   ;;  %v1419_v12 = vld [vmem:[%s2113_s0] ss:$8 sps:$4 sm:$0xff]  }
   0x4   :  { %1231 = vmatprep.mubr.msk.bf16.mxu0 %vm446_vm0, %v1421_v5  ;;  %1247 = vmatprep.mubr.msk.bf16.mxu1 %vm446_vm0, %v1424_v6  ;;  %v1414_v7 = vld [vmem:[%s2112_s1 + $0x20] sm:$0xff]   ;;  %v1415_v8 = vld [vmem:[%s2112_s1 + $0x28] sm:$0xff]   ;;  %v1425_v14 = vld [vmem:[%s2113_s0 + $0x14] ss:$8 sps:$4 sm:$0xff]  }
   0x5   :  { %v1418_v11 = vld [vmem:[%s2112_s1 + $0x40] sm:$0xff]   ;;  %v1427_v15 = vld [vmem:[%s2113_s0 + $0x114] ss:$8 sps:$4 sm:$0xff]   ;;  %v1429_v16 = vld [vmem:[%s2113_s0 + $0x10] ss:$8 sps:$4 sm:$0xff]  }
   0x6   :  { %546 = vmatpush1.bf16.msra.mxu0 %v1411_v2  ;;  %1401 = vmatpush1.bf16.msra.mxu1 %v1411_v2  ;;  %v1422_v13 = vld [vmem:[%s2113_s0 + $0x100] ss:$8 sps:$4 sm:$0xff]   ;;  %v1430_v17 = vld [vmem:[%s2113_s0 + $0x110] ss:$8 sps:$4 sm:$0xff]   ;;  %v1431_v18 = vld [vmem:[%s2113_s0 + $0x24] ss:$8 sps:$4 sm:$0xff]  }
   0x7   :  { %547 = vmatprep.subr.bf16.mxu0 %v1515_v0  ;;  %1393 = vmatprep.subr.bf16.mxu1 %v1515_v0  ;;  %v1433_v19 = vld [vmem:[%s2113_s0 + $0x124] ss:$8 sps:$4 sm:$0xff]   ;;  %v1435_v20 = vld [vmem:[%s2113_s0 + $0x20] ss:$8 sps:$4 sm:$0xff]   ;;  %v1437_v22 = vld [vmem:[%s2113_s0 + $0x34] ss:$8 sps:$4 sm:$0xff]  }
   0x8   :  { %v1436_v21 = vld [vmem:[%s2113_s0 + $0x120] ss:$8 sps:$4 sm:$0xff]   ;;  %v1439_v23 = vld [vmem:[%s2113_s0 + $0x134] ss:$8 sps:$4 sm:$0xff]   ;;  %v1441_v24 = vld [vmem:[%s2113_s0 + $0x30] ss:$8 sps:$4 sm:$0xff]  }
   0x9   :  { %v1442_v25 = vld [vmem:[%s2113_s0 + $0x130] ss:$8 sps:$4 sm:$0xff]   ;;  %v1443_v26 = vld [vmem:[%s2113_s0 + $0x44] ss:$8 sps:$4 sm:$0xff]   ;;  %v1447_v28 = vld [vmem:[%s2113_s0 + $0x40] ss:$8 sps:$4 sm:$0xff]  }
   0xa   :  { %548 = vmatpush1.bf16.msra.mxu0 %v1412_v3  ;;  %1402 = vmatpush1.bf16.msra.mxu1 %v1412_v3  ;;  %v1445_v27 = vld [vmem:[%s2113_s0 + $0x144] ss:$8 sps:$4 sm:$0xff]   ;;  %v1448_v29 = vld [vmem:[%s2113_s0 + $0x140] ss:$8 sps:$4 sm:$0xff]   ;;  %v1449_v30 = vld [vmem:[%s2113_s0 + $0x54] ss:$8 sps:$4 sm:$0xff]  }
   0xb   :  { %549 = vmatprep.subr.bf16.mxu0 %v1515_v0  ;;  %1394 = vmatprep.subr.bf16.mxu1 %v1515_v0  ;;  %v1451_v31 = vld [vmem:[%s2113_s0 + $0x154] ss:$8 sps:$4 sm:$0xff]   ;;  %v1453_v32 = vld [vmem:[%s2113_s0 + $0x50] ss:$8 sps:$4 sm:$0xff]   ;;  %v1455_v34 = vld [vmem:[%s2113_s0 + $0x64] ss:$8 sps:$4 sm:$0xff]  }
   0xc   :  { %v1454_v33 = vld [vmem:[%s2113_s0 + $0x150] ss:$8 sps:$4 sm:$0xff]   ;;  %v1457_v35 = vld [vmem:[%s2113_s0 + $0x164] ss:$8 sps:$4 sm:$0xff]   ;;  %v1459_v36 = vld [vmem:[%s2113_s0 + $0x60] ss:$8 sps:$4 sm:$0xff]  }
   0xd   :  { %v1460_v37 = vld [vmem:[%s2113_s0 + $0x160] ss:$8 sps:$4 sm:$0xff]   ;;  %v1461_v38 = vld [vmem:[%s2113_s0 + $0x74] ss:$8 sps:$4 sm:$0xff]   ;;  %v1465_v40 = vld [vmem:[%s2113_s0 + $0x70] ss:$8 sps:$4 sm:$0xff]  }
   0xe   :  { %550 = vmatpush1.bf16.msra.mxu0 %v1413_v4  ;;  %1403 = vmatpush1.bf16.msra.mxu1 %v1413_v4  ;;  %v1463_v39 = vld [vmem:[%s2113_s0 + $0x174] ss:$8 sps:$4 sm:$0xff]   ;;  %v1466_v41 = vld [vmem:[%s2113_s0 + $0x170] ss:$8 sps:$4 sm:$0xff]   ;;  %v1467_v42 = vld [vmem:[%s2113_s0 + $0x84] ss:$8 sps:$4 sm:$0xff]  }
   0xf   :  { %551 = vmatprep.subr.bf16.mxu0 %v1515_v0  ;;  %1395 = vmatprep.subr.bf16.mxu1 %v1515_v0  ;;  %v1469_v43 = vld [vmem:[%s2113_s0 + $0x184] ss:$8 sps:$4 sm:$0xff]   ;;  %v1471_v44 = vld [vmem:[%s2113_s0 + $0x80] ss:$8 sps:$4 sm:$0xff]   ;;  %v1473_v46 = vld [vmem:[%s2113_s0 + $0x94] ss:$8 sps:$4 sm:$0xff]  }
  0x10   :  { %v1472_v45 = vld [vmem:[%s2113_s0 + $0x180] ss:$8 sps:$4 sm:$0xff]   ;;  %v1475_v47 = vld [vmem:[%s2113_s0 + $0x194] ss:$8 sps:$4 sm:$0xff]   ;;  %v1477_v48 = vld [vmem:[%s2113_s0 + $0x90] ss:$8 sps:$4 sm:$0xff]  }
  0x11   :  { %v1478_v49 = vld [vmem:[%s2113_s0 + $0x190] ss:$8 sps:$4 sm:$0xff]   ;;  %v1479_v50 = vld [vmem:[%s2113_s0 + $0xa4] ss:$8 sps:$4 sm:$0xff]   ;;  %v1483_v52 = vld [vmem:[%s2113_s0 + $0xa0] ss:$8 sps:$4 sm:$0xff]  }
  0x12   :  { %552 = vmatpush1.bf16.msra.mxu0 %v1414_v7  ;;  %1404 = vmatpush1.bf16.msra.mxu1 %v1414_v7  ;;  %v1481_v51 = vld [vmem:[%s2113_s0 + $0x1a4] ss:$8 sps:$4 sm:$0xff]   ;;  %v1484_v53 = vld [vmem:[%s2113_s0 + $0x1a0] ss:$8 sps:$4 sm:$0xff]   ;;  %v1485_v54 = vld [vmem:[%s2113_s0 + $0xb4] ss:$8 sps:$4 sm:$0xff]  }
  0x13   :  { %553 = vmatprep.subr.bf16.mxu0 %v1515_v0  ;;  %1396 = vmatprep.subr.bf16.mxu1 %v1515_v0  ;;  %v1487_v55 = vld [vmem:[%s2113_s0 + $0x1b4] ss:$8 sps:$4 sm:$0xff]   ;;  %v1489_v56 = vld [vmem:[%s2113_s0 + $0xb0] ss:$8 sps:$4 sm:$0xff]   ;;  %v1491_v58 = vld [vmem:[%s2113_s0 + $0xc4] ss:$8 sps:$4 sm:$0xff]  }
  0x14   :  { %v1490_v57 = vld [vmem:[%s2113_s0 + $0x1b0] ss:$8 sps:$4 sm:$0xff]   ;;  %v1493_v59 = vld [vmem:[%s2113_s0 + $0x1c4] ss:$8 sps:$4 sm:$0xff]   ;;  %v1495_v60 = vld [vmem:[%s2113_s0 + $0xc0] ss:$8 sps:$4 sm:$0xff]  }
  0x15   :  { %v1496_v61 = vld [vmem:[%s2113_s0 + $0x1c0] ss:$8 sps:$4 sm:$0xff]   ;;  %v1497_v62 = vld [vmem:[%s2113_s0 + $0xd4] ss:$8 sps:$4 sm:$0xff]   ;;  %v1502_v1 = vld [vmem:[%s2113_s0 + $0x1d0] ss:$8 sps:$4 sm:$0xff]  }
  0x16   :  { %554 = vmatpush1.bf16.msra.mxu0 %v1415_v8  ;;  %1405 = vmatpush1.bf16.msra.mxu1 %v1415_v8  ;;  %v1499_v63 = vld [vmem:[%s2113_s0 + $0x1d4] ss:$8 sps:$4 sm:$0xff]   ;;  %v1503_v2 = vld [vmem:[%s2113_s0 + $0xe4] ss:$8 sps:$4 sm:$0xff]   ;;  %v1507_v4 = vld [vmem:[%s2113_s0 + $0xe0] ss:$8 sps:$4 sm:$0xff]  }
  0x17   :  { %555 = vmatprep.subr.bf16.mxu0 %v1515_v0  ;;  %1397 = vmatprep.subr.bf16.mxu1 %v1515_v0  ;;  %v1505_v3 = vld [vmem:[%s2113_s0 + $0x1e4] ss:$8 sps:$4 sm:$0xff]   ;;  %v1508_v5 = vld [vmem:[%s2113_s0 + $0x1e0] ss:$8 sps:$4 sm:$0xff]   ;;  %v1509_v6 = vld [vmem:[%s2113_s0 + $0xf4] ss:$8 sps:$4 sm:$0xff]  }
  0x18   :  { %v1511_v7 = vld [vmem:[%s2113_s0 + $0x1f4] ss:$8 sps:$4 sm:$0xff]   ;;  %v1513_v8 = vld [vmem:[%s2113_s0 + $0xf0] ss:$8 sps:$4 sm:$0xff]  }
  0x1a   :  { %556 = vmatpush1.bf16.msra.mxu0 %v1416_v9  ;;  %1406 = vmatpush1.bf16.msra.mxu1 %v1416_v9  ;;  %v1514_v9 = vld [vmem:[%s2113_s0 + $0x1f0] ss:$8 sps:$4 sm:$0xff]  }
  0x1b   :  { %557 = vmatprep.subr.bf16.mxu0 %v1515_v0  ;;  %1398 = vmatprep.subr.bf16.mxu1 %v1515_v0 }
  0x1e   :  { %558 = vmatpush1.bf16.msra.mxu0 %v1417_v10  ;;  %1407 = vmatpush1.bf16.msra.mxu1 %v1417_v10  ;;  %v1790_v10 = vld [vmem:[%s2114_s2] ss:$0 sm:$0xff] }
  0x1f   :  { %559 = vmatprep.subr.bf16.mxu0 %v1515_v0  ;;  %1399 = vmatprep.subr.bf16.mxu1 %v1515_v0  ;;  %v1501_v0 = vld [vmem:[%s2113_s0 + $0xd0] ss:$8 sps:$4 sm:$0xff]  }
  0x22   :  { %560 = vmatpush1.bf16.msra.mxu0 %v1418_v11  ;;  %1408 = vmatpush1.bf16.msra.mxu1 %v1418_v11 }
  0x25   :  { %576 = vmatmul.mubr.bf16.vlgmr.msra.gmra.mrb[0].mxu0 %v1419_v12  ;;  %704 = vmatmul.mubr.bf16.vlgmr.msra.gmra.mrb[0].mxu1 %v1422_v13 }
  0x26   :  { %1232 = vmatprep.mubr.msk.bf16.mxu0 %vm446_vm0, %v1425_v14  ;;  %1248 = vmatprep.mubr.msk.bf16.mxu1 %vm446_vm0, %v1427_v15 }
  0x2d   :  { %584 = vmatmul.mubr.bf16.gmra.mrb[4].mxu0 %v1429_v16  ;;  %712 = vmatmul.mubr.bf16.gmra.mrb[4].mxu1 %v1430_v17 }
  0x2e   :  { %1233 = vmatprep.mubr.msk.bf16.mxu0 %vm446_vm0, %v1431_v18  ;;  %1249 = vmatprep.mubr.msk.bf16.mxu1 %vm446_vm0, %v1433_v19 }
  0x35   :  { %592 = vmatmul.mubr.bf16.gmra.mrb[8].mxu0 %v1435_v20  ;;  %720 = vmatmul.mubr.bf16.gmra.mrb[8].mxu1 %v1436_v21 }
  0x36   :  { %1234 = vmatprep.mubr.msk.bf16.mxu0 %vm446_vm0, %v1437_v22  ;;  %1250 = vmatprep.mubr.msk.bf16.mxu1 %vm446_vm0, %v1439_v23 }
  0x3d   :  { %600 = vmatmul.mubr.bf16.gmra.mrb[12].mxu0 %v1441_v24  ;;  %728 = vmatmul.mubr.bf16.gmra.mrb[12].mxu1 %v1442_v25 }
  0x3e   :  { %1235 = vmatprep.mubr.msk.bf16.mxu0 %vm446_vm0, %v1443_v26  ;;  %1251 = vmatprep.mubr.msk.bf16.mxu1 %vm446_vm0, %v1445_v27 }
  0x45   :  { %608 = vmatmul.mubr.bf16.gmra.mrb[16].mxu0 %v1447_v28  ;;  %736 = vmatmul.mubr.bf16.gmra.mrb[16].mxu1 %v1448_v29 }
  0x46   :  { %1236 = vmatprep.mubr.msk.bf16.mxu0 %vm446_vm0, %v1449_v30  ;;  %1252 = vmatprep.mubr.msk.bf16.mxu1 %vm446_vm0, %v1451_v31 }
  0x4d   :  { %616 = vmatmul.mubr.bf16.gmra.mrb[20].mxu0 %v1453_v32  ;;  %744 = vmatmul.mubr.bf16.gmra.mrb[20].mxu1 %v1454_v33 }
  0x4e   :  { %1237 = vmatprep.mubr.msk.bf16.mxu0 %vm446_vm0, %v1455_v34  ;;  %1253 = vmatprep.mubr.msk.bf16.mxu1 %vm446_vm0, %v1457_v35 }
  0x55   :  { %624 = vmatmul.mubr.bf16.gmra.mrb[24].mxu0 %v1459_v36  ;;  %752 = vmatmul.mubr.bf16.gmra.mrb[24].mxu1 %v1460_v37 }
  0x56   :  { %1238 = vmatprep.mubr.msk.bf16.mxu0 %vm446_vm0, %v1461_v38  ;;  %1254 = vmatprep.mubr.msk.bf16.mxu1 %vm446_vm0, %v1463_v39 }
  0x5d   :  { %632 = vmatmul.mubr.bf16.gmra.mrb[28].mxu0 %v1465_v40  ;;  %760 = vmatmul.mubr.bf16.gmra.mrb[28].mxu1 %v1466_v41 }
  0x5e   :  { %1239 = vmatprep.mubr.msk.bf16.mxu0 %vm446_vm0, %v1467_v42  ;;  %1255 = vmatprep.mubr.msk.bf16.mxu1 %vm446_vm0, %v1469_v43 }
  0x65   :  { %640 = vmatmul.mubr.bf16.gmra.mrb[32].mxu0 %v1471_v44  ;;  %768 = vmatmul.mubr.bf16.gmra.mrb[32].mxu1 %v1472_v45 }
  0x66   :  { %1240 = vmatprep.mubr.msk.bf16.mxu0 %vm446_vm0, %v1473_v46  ;;  %1256 = vmatprep.mubr.msk.bf16.mxu1 %vm446_vm0, %v1475_v47 }
  0x6d   :  { %648 = vmatmul.mubr.bf16.gmra.mrb[36].mxu0 %v1477_v48  ;;  %776 = vmatmul.mubr.bf16.gmra.mrb[36].mxu1 %v1478_v49 }
  0x6e   :  { %1241 = vmatprep.mubr.msk.bf16.mxu0 %vm446_vm0, %v1479_v50  ;;  %1257 = vmatprep.mubr.msk.bf16.mxu1 %vm446_vm0, %v1481_v51 }
  0x75   :  { %656 = vmatmul.mubr.bf16.gmra.mrb[40].mxu0 %v1483_v52  ;;  %784 = vmatmul.mubr.bf16.gmra.mrb[40].mxu1 %v1484_v53 }
  0x76   :  { %1242 = vmatprep.mubr.msk.bf16.mxu0 %vm446_vm0, %v1485_v54  ;;  %1258 = vmatprep.mubr.msk.bf16.mxu1 %vm446_vm0, %v1487_v55 }
  0x7d   :  { %664 = vmatmul.mubr.bf16.gmra.mrb[44].mxu0 %v1489_v56  ;;  %792 = vmatmul.mubr.bf16.gmra.mrb[44].mxu1 %v1490_v57 }
  0x7e   :  { %1243 = vmatprep.mubr.msk.bf16.mxu0 %vm446_vm0, %v1491_v58  ;;  %1259 = vmatprep.mubr.msk.bf16.mxu1 %vm446_vm0, %v1493_v59 }
  0x85   :  { %672 = vmatmul.mubr.bf16.gmra.mrb[48].mxu0 %v1495_v60  ;;  %800 = vmatmul.mubr.bf16.gmra.mrb[48].mxu1 %v1496_v61 }
  0x86   :  { %1244 = vmatprep.mubr.msk.bf16.mxu0 %vm446_vm0, %v1497_v62  ;;  %1260 = vmatprep.mubr.msk.bf16.mxu1 %vm446_vm0, %v1499_v63 }
  0x8d   :  { %680 = vmatmul.mubr.bf16.gmra.mrb[52].mxu0 %v1501_v0  ;;  %808 = vmatmul.mubr.bf16.gmra.mrb[52].mxu1 %v1502_v1 }
  0x8e   :  { %1245 = vmatprep.mubr.msk.bf16.mxu0 %vm446_vm0, %v1503_v2  ;;  %1261 = vmatprep.mubr.msk.bf16.mxu1 %vm446_vm0, %v1505_v3 }
  0x95   :  { %688 = vmatmul.mubr.bf16.gmra.mrb[56].mxu0 %v1507_v4  ;;  %816 = vmatmul.mubr.bf16.gmra.mrb[56].mxu1 %v1508_v5 }
  0x96   :  { %1246 = vmatprep.mubr.msk.bf16.mxu0 %vm446_vm0, %v1509_v6  ;;  %1262 = vmatprep.mubr.msk.bf16.mxu1 %vm446_vm0, %v1511_v7 }
  0x9d   :  { %696 = vmatmul.mubr.bf16.gmra.mrb[60].mxu0 %v1513_v8  ;;  %824 = vmatmul.mubr.bf16.gmra.mrb[60].mxu1 %v1514_v9 }
  0xf8   :  { %v577_v11 = vpop.f32.mrb[0].mxu0  ;;  %v705_v12 = vpop.f32.mrb[0].mxu1 }
  0xf9   :  { %v578_v13 = vadd.f32 %v1790_v10, %v577_v11  ;;  %v706_v14 = vadd.f32 %v1790_v10, %v705_v12  ;;  %v579_v15 = vpop.f32.mrb[1].mxu0  ;;  %v707_v16 = vpop.f32.mrb[1].mxu1 }
  0xfa   :  { %v580_v17 = vpop.f32.mrb[2].mxu0  ;;  %v708_v18 = vpop.f32.mrb[2].mxu1 }
  0xfb   :  { %v1327_v19 = vpack.c.bf16 %v578_v13, %v578_v13  ;;  %v1359_v20 = vpack.c.bf16 %v706_v14, %v706_v14  ;;  %v581_v21 = vadd.f32 %v1790_v10, %v580_v17  ;;  %v709_v22 = vadd.f32 %v1790_v10, %v708_v18  ;;  %v582_v23 = vpop.f32.mrb[3].mxu0  ;;  %v710_v24 = vpop.f32.mrb[3].mxu1 }
  0xfd   :  { %1089 = vst.msk [vmem:[%s2115_s3] sm:$0xf] %vm1088_vm1, %v1327_v19  ;;  %1121 = vst.msk [vmem:[%s2115_s3 + $0x80] sm:$0xf] %vm1088_vm1, %v1359_v20  ;;  %v1328_v25 = vpack.c.bf16 %v581_v21, %v581_v21  ;;  %v1360_v26 = vpack.c.bf16 %v709_v22, %v709_v22 }
  0xff   :  { %1090 = vst.msk [vmem:[%s2115_s3 + $0x4] sm:$0xf] %vm1088_vm1, %v1328_v25  ;;  %1122 = vst.msk [vmem:[%s2115_s3 + $0x84] sm:$0xf] %vm1088_vm1, %v1360_v26 }
 0x100   :  { %v585_v27 = vpop.f32.mrb[4].mxu0  ;;  %v713_v28 = vpop.f32.mrb[4].mxu1 }
 0x101   :  { %v586_v29 = vadd.f32 %v1790_v10, %v585_v27  ;;  %v714_v30 = vadd.f32 %v1790_v10, %v713_v28  ;;  %v587_v31 = vpop.f32.mrb[5].mxu0  ;;  %v715_v32 = vpop.f32.mrb[5].mxu1 }
 0x102   :  { %v588_v33 = vpop.f32.mrb[6].mxu0  ;;  %v716_v34 = vpop.f32.mrb[6].mxu1 }
 0x103   :  { %v1329_v35 = vpack.c.bf16 %v586_v29, %v586_v29  ;;  %v1361_v36 = vpack.c.bf16 %v714_v30, %v714_v30  ;;  %v589_v37 = vadd.f32 %v1790_v10, %v588_v33  ;;  %v717_v38 = vadd.f32 %v1790_v10, %v716_v34  ;;  %v590_v39 = vpop.f32.mrb[7].mxu0  ;;  %v718_v40 = vpop.f32.mrb[7].mxu1 }
 0x105   :  { %1091 = vst.msk [vmem:[%s2115_s3 + $0x8] sm:$0xf] %vm1088_vm1, %v1329_v35  ;;  %1123 = vst.msk [vmem:[%s2115_s3 + $0x88] sm:$0xf] %vm1088_vm1, %v1361_v36  ;;  %v1330_v41 = vpack.c.bf16 %v589_v37, %v589_v37  ;;  %v1362_v42 = vpack.c.bf16 %v717_v38, %v717_v38 }
 0x107   :  { %1092 = vst.msk [vmem:[%s2115_s3 + $0xc] sm:$0xf] %vm1088_vm1, %v1330_v41  ;;  %1124 = vst.msk [vmem:[%s2115_s3 + $0x8c] sm:$0xf] %vm1088_vm1, %v1362_v42 }
 0x108   :  { %v593_v43 = vpop.f32.mrb[8].mxu0  ;;  %v721_v44 = vpop.f32.mrb[8].mxu1 }
 0x109   :  { %v594_v45 = vadd.f32 %v1790_v10, %v593_v43  ;;  %v722_v46 = vadd.f32 %v1790_v10, %v721_v44  ;;  %v595_v47 = vpop.f32.mrb[9].mxu0  ;;  %v723_v48 = vpop.f32.mrb[9].mxu1 }
 0x10a   :  { %v596_v49 = vpop.f32.mrb[10].mxu0  ;;  %v724_v50 = vpop.f32.mrb[10].mxu1 }
 0x10b   :  { %v1331_v51 = vpack.c.bf16 %v594_v45, %v594_v45  ;;  %v1363_v52 = vpack.c.bf16 %v722_v46, %v722_v46  ;;  %v597_v53 = vadd.f32 %v1790_v10, %v596_v49  ;;  %v725_v54 = vadd.f32 %v1790_v10, %v724_v50  ;;  %v598_v55 = vpop.f32.mrb[11].mxu0  ;;  %v726_v56 = vpop.f32.mrb[11].mxu1 }
 0x10d   :  { %1093 = vst.msk [vmem:[%s2115_s3 + $0x10] sm:$0xf] %vm1088_vm1, %v1331_v51  ;;  %1125 = vst.msk [vmem:[%s2115_s3 + $0x90] sm:$0xf] %vm1088_vm1, %v1363_v52  ;;  %v1332_v57 = vpack.c.bf16 %v597_v53, %v597_v53  ;;  %v1364_v58 = vpack.c.bf16 %v725_v54, %v725_v54 }
 0x10f   :  { %1094 = vst.msk [vmem:[%s2115_s3 + $0x14] sm:$0xf] %vm1088_vm1, %v1332_v57  ;;  %1126 = vst.msk [vmem:[%s2115_s3 + $0x94] sm:$0xf] %vm1088_vm1, %v1364_v58 }
 0x110   :  { %v601_v59 = vpop.f32.mrb[12].mxu0  ;;  %v729_v60 = vpop.f32.mrb[12].mxu1 }
 0x111   :  { %v602_v61 = vadd.f32 %v1790_v10, %v601_v59  ;;  %v730_v62 = vadd.f32 %v1790_v10, %v729_v60  ;;  %v603_v63 = vpop.f32.mrb[13].mxu0  ;;  %v731_v0 = vpop.f32.mrb[13].mxu1 }
 0x112   :  { %v604_v1 = vpop.f32.mrb[14].mxu0  ;;  %v732_v2 = vpop.f32.mrb[14].mxu1 }
 0x113   :  { %v1333_v3 = vpack.c.bf16 %v602_v61, %v602_v61  ;;  %v1365_v4 = vpack.c.bf16 %v730_v62, %v730_v62  ;;  %v605_v5 = vadd.f32 %v1790_v10, %v604_v1  ;;  %v733_v6 = vadd.f32 %v1790_v10, %v732_v2  ;;  %v606_v7 = vpop.f32.mrb[15].mxu0  ;;  %v734_v8 = vpop.f32.mrb[15].mxu1 }
 0x115   :  { %1095 = vst.msk [vmem:[%s2115_s3 + $0x18] sm:$0xf] %vm1088_vm1, %v1333_v3  ;;  %1127 = vst.msk [vmem:[%s2115_s3 + $0x98] sm:$0xf] %vm1088_vm1, %v1365_v4  ;;  %v1334_v9 = vpack.c.bf16 %v605_v5, %v605_v5  ;;  %v1366_v11 = vpack.c.bf16 %v733_v6, %v733_v6 }
 0x117   :  { %1096 = vst.msk [vmem:[%s2115_s3 + $0x1c] sm:$0xf] %vm1088_vm1, %v1334_v9  ;;  %1128 = vst.msk [vmem:[%s2115_s3 + $0x9c] sm:$0xf] %vm1088_vm1, %v1366_v11 }
 0x118   :  { %v609_v12 = vpop.f32.mrb[16].mxu0  ;;  %v737_v13 = vpop.f32.mrb[16].mxu1 }
 0x119   :  { %v610_v14 = vadd.f32 %v1790_v10, %v609_v12  ;;  %v738_v15 = vadd.f32 %v1790_v10, %v737_v13  ;;  %v611_v16 = vpop.f32.mrb[17].mxu0  ;;  %v739_v17 = vpop.f32.mrb[17].mxu1 }
 0x11a   :  { %v612_v18 = vpop.f32.mrb[18].mxu0  ;;  %v740_v19 = vpop.f32.mrb[18].mxu1 }
 0x11b   :  { %v1335_v20 = vpack.c.bf16 %v610_v14, %v610_v14  ;;  %v1367_v21 = vpack.c.bf16 %v738_v15, %v738_v15  ;;  %v613_v22 = vadd.f32 %v1790_v10, %v612_v18  ;;  %v741_v23 = vadd.f32 %v1790_v10, %v740_v19  ;;  %v614_v24 = vpop.f32.mrb[19].mxu0  ;;  %v742_v25 = vpop.f32.mrb[19].mxu1 }
 0x11d   :  { %1097 = vst.msk [vmem:[%s2115_s3 + $0x20] sm:$0xf] %vm1088_vm1, %v1335_v20  ;;  %1129 = vst.msk [vmem:[%s2115_s3 + $0xa0] sm:$0xf] %vm1088_vm1, %v1367_v21  ;;  %v1336_v26 = vpack.c.bf16 %v613_v22, %v613_v22  ;;  %v1368_v27 = vpack.c.bf16 %v741_v23, %v741_v23 }
 0x11f   :  { %1098 = vst.msk [vmem:[%s2115_s3 + $0x24] sm:$0xf] %vm1088_vm1, %v1336_v26  ;;  %1130 = vst.msk [vmem:[%s2115_s3 + $0xa4] sm:$0xf] %vm1088_vm1, %v1368_v27 }
 0x120   :  { %v617_v28 = vpop.f32.mrb[20].mxu0  ;;  %v745_v29 = vpop.f32.mrb[20].mxu1 }
 0x121   :  { %v618_v30 = vadd.f32 %v1790_v10, %v617_v28  ;;  %v746_v31 = vadd.f32 %v1790_v10, %v745_v29  ;;  %v619_v32 = vpop.f32.mrb[21].mxu0  ;;  %v747_v33 = vpop.f32.mrb[21].mxu1 }
 0x122   :  { %v620_v34 = vpop.f32.mrb[22].mxu0  ;;  %v748_v35 = vpop.f32.mrb[22].mxu1 }
 0x123   :  { %v1337_v36 = vpack.c.bf16 %v618_v30, %v618_v30  ;;  %v1369_v37 = vpack.c.bf16 %v746_v31, %v746_v31  ;;  %v621_v38 = vadd.f32 %v1790_v10, %v620_v34  ;;  %v749_v39 = vadd.f32 %v1790_v10, %v748_v35  ;;  %v622_v40 = vpop.f32.mrb[23].mxu0  ;;  %v750_v41 = vpop.f32.mrb[23].mxu1 }
 0x125   :  { %1099 = vst.msk [vmem:[%s2115_s3 + $0x28] sm:$0xf] %vm1088_vm1, %v1337_v36  ;;  %1131 = vst.msk [vmem:[%s2115_s3 + $0xa8] sm:$0xf] %vm1088_vm1, %v1369_v37  ;;  %v1338_v42 = vpack.c.bf16 %v621_v38, %v621_v38  ;;  %v1370_v43 = vpack.c.bf16 %v749_v39, %v749_v39 }
 0x127   :  { %1100 = vst.msk [vmem:[%s2115_s3 + $0x2c] sm:$0xf] %vm1088_vm1, %v1338_v42  ;;  %1132 = vst.msk [vmem:[%s2115_s3 + $0xac] sm:$0xf] %vm1088_vm1, %v1370_v43 }
 0x128   :  { %v625_v44 = vpop.f32.mrb[24].mxu0  ;;  %v753_v45 = vpop.f32.mrb[24].mxu1 }
 0x129   :  { %v626_v46 = vadd.f32 %v1790_v10, %v625_v44  ;;  %v754_v47 = vadd.f32 %v1790_v10, %v753_v45  ;;  %v627_v48 = vpop.f32.mrb[25].mxu0  ;;  %v755_v49 = vpop.f32.mrb[25].mxu1 }
 0x12a   :  { %v628_v50 = vpop.f32.mrb[26].mxu0  ;;  %v756_v51 = vpop.f32.mrb[26].mxu1 }
 0x12b   :  { %v1339_v52 = vpack.c.bf16 %v626_v46, %v626_v46  ;;  %v1371_v53 = vpack.c.bf16 %v754_v47, %v754_v47  ;;  %v629_v54 = vadd.f32 %v1790_v10, %v628_v50  ;;  %v757_v55 = vadd.f32 %v1790_v10, %v756_v51  ;;  %v630_v56 = vpop.f32.mrb[27].mxu0  ;;  %v758_v57 = vpop.f32.mrb[27].mxu1 }
 0x12d   :  { %1101 = vst.msk [vmem:[%s2115_s3 + $0x30] sm:$0xf] %vm1088_vm1, %v1339_v52  ;;  %1133 = vst.msk [vmem:[%s2115_s3 + $0xb0] sm:$0xf] %vm1088_vm1, %v1371_v53  ;;  %v1340_v58 = vpack.c.bf16 %v629_v54, %v629_v54  ;;  %v1372_v59 = vpack.c.bf16 %v757_v55, %v757_v55 }
 0x12f   :  { %1102 = vst.msk [vmem:[%s2115_s3 + $0x34] sm:$0xf] %vm1088_vm1, %v1340_v58  ;;  %1134 = vst.msk [vmem:[%s2115_s3 + $0xb4] sm:$0xf] %vm1088_vm1, %v1372_v59 }
 0x130   :  { %v633_v60 = vpop.f32.mrb[28].mxu0  ;;  %v761_v61 = vpop.f32.mrb[28].mxu1 }
 0x131   :  { %v634_v62 = vadd.f32 %v1790_v10, %v633_v60  ;;  %v762_v63 = vadd.f32 %v1790_v10, %v761_v61  ;;  %v635_v0 = vpop.f32.mrb[29].mxu0  ;;  %v763_v1 = vpop.f32.mrb[29].mxu1 }
 0x132   :  { %v636_v2 = vpop.f32.mrb[30].mxu0  ;;  %v764_v3 = vpop.f32.mrb[30].mxu1 }
 0x133   :  { %v1341_v4 = vpack.c.bf16 %v634_v62, %v634_v62  ;;  %v1373_v5 = vpack.c.bf16 %v762_v63, %v762_v63  ;;  %v637_v6 = vadd.f32 %v1790_v10, %v636_v2  ;;  %v765_v7 = vadd.f32 %v1790_v10, %v764_v3  ;;  %v638_v8 = vpop.f32.mrb[31].mxu0  ;;  %v766_v9 = vpop.f32.mrb[31].mxu1 }
 0x135   :  { %1103 = vst.msk [vmem:[%s2115_s3 + $0x38] sm:$0xf] %vm1088_vm1, %v1341_v4  ;;  %1135 = vst.msk [vmem:[%s2115_s3 + $0xb8] sm:$0xf] %vm1088_vm1, %v1373_v5  ;;  %v1342_v11 = vpack.c.bf16 %v637_v6, %v637_v6  ;;  %v1374_v12 = vpack.c.bf16 %v765_v7, %v765_v7 }
 0x137   :  { %1104 = vst.msk [vmem:[%s2115_s3 + $0x3c] sm:$0xf] %vm1088_vm1, %v1342_v11  ;;  %1136 = vst.msk [vmem:[%s2115_s3 + $0xbc] sm:$0xf] %vm1088_vm1, %v1374_v12 }
 0x138   :  { %v641_v13 = vpop.f32.mrb[32].mxu0  ;;  %v769_v14 = vpop.f32.mrb[32].mxu1 }
 0x139   :  { %v642_v15 = vadd.f32 %v1790_v10, %v641_v13  ;;  %v770_v16 = vadd.f32 %v1790_v10, %v769_v14  ;;  %v643_v17 = vpop.f32.mrb[33].mxu0  ;;  %v771_v18 = vpop.f32.mrb[33].mxu1 }
 0x13a   :  { %v644_v19 = vpop.f32.mrb[34].mxu0  ;;  %v772_v20 = vpop.f32.mrb[34].mxu1 }
 0x13b   :  { %v1343_v21 = vpack.c.bf16 %v642_v15, %v642_v15  ;;  %v1375_v22 = vpack.c.bf16 %v770_v16, %v770_v16  ;;  %v645_v23 = vadd.f32 %v1790_v10, %v644_v19  ;;  %v773_v24 = vadd.f32 %v1790_v10, %v772_v20  ;;  %v646_v25 = vpop.f32.mrb[35].mxu0  ;;  %v774_v26 = vpop.f32.mrb[35].mxu1 }
 0x13d   :  { %1105 = vst.msk [vmem:[%s2115_s3 + $0x40] sm:$0xf] %vm1088_vm1, %v1343_v21  ;;  %1137 = vst.msk [vmem:[%s2115_s3 + $0xc0] sm:$0xf] %vm1088_vm1, %v1375_v22  ;;  %v1344_v27 = vpack.c.bf16 %v645_v23, %v645_v23  ;;  %v1376_v28 = vpack.c.bf16 %v773_v24, %v773_v24 }
 0x13f   :  { %1106 = vst.msk [vmem:[%s2115_s3 + $0x44] sm:$0xf] %vm1088_vm1, %v1344_v27  ;;  %1138 = vst.msk [vmem:[%s2115_s3 + $0xc4] sm:$0xf] %vm1088_vm1, %v1376_v28 }
 0x140   :  { %v649_v29 = vpop.f32.mrb[36].mxu0  ;;  %v777_v30 = vpop.f32.mrb[36].mxu1 }
 0x141   :  { %v650_v31 = vadd.f32 %v1790_v10, %v649_v29  ;;  %v778_v32 = vadd.f32 %v1790_v10, %v777_v30  ;;  %v651_v33 = vpop.f32.mrb[37].mxu0  ;;  %v779_v34 = vpop.f32.mrb[37].mxu1 }
 0x142   :  { %v652_v35 = vpop.f32.mrb[38].mxu0  ;;  %v780_v36 = vpop.f32.mrb[38].mxu1 }
 0x143   :  { %v1345_v37 = vpack.c.bf16 %v650_v31, %v650_v31  ;;  %v1377_v38 = vpack.c.bf16 %v778_v32, %v778_v32  ;;  %v653_v39 = vadd.f32 %v1790_v10, %v652_v35  ;;  %v781_v40 = vadd.f32 %v1790_v10, %v780_v36  ;;  %v654_v41 = vpop.f32.mrb[39].mxu0  ;;  %v782_v42 = vpop.f32.mrb[39].mxu1 }
 0x145   :  { %1107 = vst.msk [vmem:[%s2115_s3 + $0x48] sm:$0xf] %vm1088_vm1, %v1345_v37  ;;  %1139 = vst.msk [vmem:[%s2115_s3 + $0xc8] sm:$0xf] %vm1088_vm1, %v1377_v38  ;;  %v1346_v43 = vpack.c.bf16 %v653_v39, %v653_v39  ;;  %v1378_v44 = vpack.c.bf16 %v781_v40, %v781_v40 }
 0x147   :  { %1108 = vst.msk [vmem:[%s2115_s3 + $0x4c] sm:$0xf] %vm1088_vm1, %v1346_v43  ;;  %1140 = vst.msk [vmem:[%s2115_s3 + $0xcc] sm:$0xf] %vm1088_vm1, %v1378_v44 }
 0x148   :  { %v657_v45 = vpop.f32.mrb[40].mxu0  ;;  %v785_v46 = vpop.f32.mrb[40].mxu1 }
 0x149   :  { %v658_v47 = vadd.f32 %v1790_v10, %v657_v45  ;;  %v786_v48 = vadd.f32 %v1790_v10, %v785_v46  ;;  %v659_v49 = vpop.f32.mrb[41].mxu0  ;;  %v787_v50 = vpop.f32.mrb[41].mxu1 }
 0x14a   :  { %v660_v51 = vpop.f32.mrb[42].mxu0  ;;  %v788_v52 = vpop.f32.mrb[42].mxu1 }
 0x14b   :  { %v1347_v53 = vpack.c.bf16 %v658_v47, %v658_v47  ;;  %v1379_v54 = vpack.c.bf16 %v786_v48, %v786_v48  ;;  %v661_v55 = vadd.f32 %v1790_v10, %v660_v51  ;;  %v789_v56 = vadd.f32 %v1790_v10, %v788_v52  ;;  %v662_v57 = vpop.f32.mrb[43].mxu0  ;;  %v790_v58 = vpop.f32.mrb[43].mxu1 }
 0x14d   :  { %1109 = vst.msk [vmem:[%s2115_s3 + $0x50] sm:$0xf] %vm1088_vm1, %v1347_v53  ;;  %1141 = vst.msk [vmem:[%s2115_s3 + $0xd0] sm:$0xf] %vm1088_vm1, %v1379_v54  ;;  %v1348_v59 = vpack.c.bf16 %v661_v55, %v661_v55  ;;  %v1380_v60 = vpack.c.bf16 %v789_v56, %v789_v56 }
 0x14f   :  { %1110 = vst.msk [vmem:[%s2115_s3 + $0x54] sm:$0xf] %vm1088_vm1, %v1348_v59  ;;  %1142 = vst.msk [vmem:[%s2115_s3 + $0xd4] sm:$0xf] %vm1088_vm1, %v1380_v60 }
 0x150   :  { %v665_v61 = vpop.f32.mrb[44].mxu0  ;;  %v793_v62 = vpop.f32.mrb[44].mxu1 }
 0x151   :  { %v666_v63 = vadd.f32 %v1790_v10, %v665_v61  ;;  %v794_v0 = vadd.f32 %v1790_v10, %v793_v62  ;;  %v667_v1 = vpop.f32.mrb[45].mxu0  ;;  %v795_v2 = vpop.f32.mrb[45].mxu1 }
 0x152   :  { %v668_v3 = vpop.f32.mrb[46].mxu0  ;;  %v796_v4 = vpop.f32.mrb[46].mxu1 }
 0x153   :  { %v1349_v5 = vpack.c.bf16 %v666_v63, %v666_v63  ;;  %v1381_v6 = vpack.c.bf16 %v794_v0, %v794_v0  ;;  %v669_v7 = vadd.f32 %v1790_v10, %v668_v3  ;;  %v797_v8 = vadd.f32 %v1790_v10, %v796_v4  ;;  %v670_v9 = vpop.f32.mrb[47].mxu0  ;;  %v798_v11 = vpop.f32.mrb[47].mxu1 }
 0x155   :  { %1111 = vst.msk [vmem:[%s2115_s3 + $0x58] sm:$0xf] %vm1088_vm1, %v1349_v5  ;;  %1143 = vst.msk [vmem:[%s2115_s3 + $0xd8] sm:$0xf] %vm1088_vm1, %v1381_v6  ;;  %v1350_v12 = vpack.c.bf16 %v669_v7, %v669_v7  ;;  %v1382_v13 = vpack.c.bf16 %v797_v8, %v797_v8 }
 0x157   :  { %1112 = vst.msk [vmem:[%s2115_s3 + $0x5c] sm:$0xf] %vm1088_vm1, %v1350_v12  ;;  %1144 = vst.msk [vmem:[%s2115_s3 + $0xdc] sm:$0xf] %vm1088_vm1, %v1382_v13 }
 0x158   :  { %v673_v14 = vpop.f32.mrb[48].mxu0  ;;  %v801_v15 = vpop.f32.mrb[48].mxu1 }
 0x159   :  { %v674_v16 = vadd.f32 %v1790_v10, %v673_v14  ;;  %v802_v17 = vadd.f32 %v1790_v10, %v801_v15  ;;  %v675_v18 = vpop.f32.mrb[49].mxu0  ;;  %v803_v19 = vpop.f32.mrb[49].mxu1 }
 0x15a   :  { %v676_v20 = vpop.f32.mrb[50].mxu0  ;;  %v804_v21 = vpop.f32.mrb[50].mxu1 }
 0x15b   :  { %v1351_v22 = vpack.c.bf16 %v674_v16, %v674_v16  ;;  %v1383_v23 = vpack.c.bf16 %v802_v17, %v802_v17  ;;  %v677_v24 = vadd.f32 %v1790_v10, %v676_v20  ;;  %v805_v25 = vadd.f32 %v1790_v10, %v804_v21  ;;  %v678_v26 = vpop.f32.mrb[51].mxu0  ;;  %v806_v27 = vpop.f32.mrb[51].mxu1 }
 0x15d   :  { %1113 = vst.msk [vmem:[%s2115_s3 + $0x60] sm:$0xf] %vm1088_vm1, %v1351_v22  ;;  %1145 = vst.msk [vmem:[%s2115_s3 + $0xe0] sm:$0xf] %vm1088_vm1, %v1383_v23  ;;  %v1352_v28 = vpack.c.bf16 %v677_v24, %v677_v24  ;;  %v1384_v29 = vpack.c.bf16 %v805_v25, %v805_v25 }
 0x15f   :  { %1114 = vst.msk [vmem:[%s2115_s3 + $0x64] sm:$0xf] %vm1088_vm1, %v1352_v28  ;;  %1146 = vst.msk [vmem:[%s2115_s3 + $0xe4] sm:$0xf] %vm1088_vm1, %v1384_v29 }
 0x160   :  { %v681_v30 = vpop.f32.mrb[52].mxu0  ;;  %v809_v31 = vpop.f32.mrb[52].mxu1 }
 0x161   :  { %v682_v32 = vadd.f32 %v1790_v10, %v681_v30  ;;  %v810_v33 = vadd.f32 %v1790_v10, %v809_v31  ;;  %v683_v34 = vpop.f32.mrb[53].mxu0  ;;  %v811_v35 = vpop.f32.mrb[53].mxu1 }
 0x162   :  { %v684_v36 = vpop.f32.mrb[54].mxu0  ;;  %v812_v37 = vpop.f32.mrb[54].mxu1 }
 0x163   :  { %v1353_v38 = vpack.c.bf16 %v682_v32, %v682_v32  ;;  %v1385_v39 = vpack.c.bf16 %v810_v33, %v810_v33  ;;  %v685_v40 = vadd.f32 %v1790_v10, %v684_v36  ;;  %v813_v41 = vadd.f32 %v1790_v10, %v812_v37  ;;  %v686_v42 = vpop.f32.mrb[55].mxu0  ;;  %v814_v43 = vpop.f32.mrb[55].mxu1 }
 0x165   :  { %1115 = vst.msk [vmem:[%s2115_s3 + $0x68] sm:$0xf] %vm1088_vm1, %v1353_v38  ;;  %1147 = vst.msk [vmem:[%s2115_s3 + $0xe8] sm:$0xf] %vm1088_vm1, %v1385_v39  ;;  %v1354_v44 = vpack.c.bf16 %v685_v40, %v685_v40  ;;  %v1386_v45 = vpack.c.bf16 %v813_v41, %v813_v41 }
 0x167   :  { %1116 = vst.msk [vmem:[%s2115_s3 + $0x6c] sm:$0xf] %vm1088_vm1, %v1354_v44  ;;  %1148 = vst.msk [vmem:[%s2115_s3 + $0xec] sm:$0xf] %vm1088_vm1, %v1386_v45 }
 0x168   :  { %v689_v46 = vpop.f32.mrb[56].mxu0  ;;  %v817_v47 = vpop.f32.mrb[56].mxu1 }
 0x169   :  { %v690_v48 = vadd.f32 %v1790_v10, %v689_v46  ;;  %v818_v49 = vadd.f32 %v1790_v10, %v817_v47  ;;  %v691_v50 = vpop.f32.mrb[57].mxu0  ;;  %v819_v51 = vpop.f32.mrb[57].mxu1 }
 0x16a   :  { %v692_v52 = vpop.f32.mrb[58].mxu0  ;;  %v820_v53 = vpop.f32.mrb[58].mxu1 }
 0x16b   :  { %v1355_v54 = vpack.c.bf16 %v690_v48, %v690_v48  ;;  %v1387_v55 = vpack.c.bf16 %v818_v49, %v818_v49  ;;  %v693_v56 = vadd.f32 %v1790_v10, %v692_v52  ;;  %v821_v57 = vadd.f32 %v1790_v10, %v820_v53  ;;  %v694_v58 = vpop.f32.mrb[59].mxu0  ;;  %v822_v59 = vpop.f32.mrb[59].mxu1 }
 0x16d   :  { %1117 = vst.msk [vmem:[%s2115_s3 + $0x70] sm:$0xf] %vm1088_vm1, %v1355_v54  ;;  %1149 = vst.msk [vmem:[%s2115_s3 + $0xf0] sm:$0xf] %vm1088_vm1, %v1387_v55  ;;  %v1356_v60 = vpack.c.bf16 %v693_v56, %v693_v56  ;;  %v1388_v61 = vpack.c.bf16 %v821_v57, %v821_v57 }
 0x16f   :  { %1118 = vst.msk [vmem:[%s2115_s3 + $0x74] sm:$0xf] %vm1088_vm1, %v1356_v60  ;;  %1150 = vst.msk [vmem:[%s2115_s3 + $0xf4] sm:$0xf] %vm1088_vm1, %v1388_v61 }
 0x170   :  { %v697_v62 = vpop.f32.mrb[60].mxu0  ;;  %v825_v63 = vpop.f32.mrb[60].mxu1 }
 0x171   :  { %v698_v0 = vadd.f32 %v1790_v10, %v697_v62  ;;  %v826_v1 = vadd.f32 %v1790_v10, %v825_v63  ;;  %v699_v2 = vpop.f32.mrb[61].mxu0  ;;  %v827_v3 = vpop.f32.mrb[61].mxu1 }
 0x172   :  { %v700_v4 = vpop.f32.mrb[62].mxu0  ;;  %v828_v5 = vpop.f32.mrb[62].mxu1 }
 0x173   :  { %v1357_v6 = vpack.c.bf16 %v698_v0, %v698_v0  ;;  %v1389_v7 = vpack.c.bf16 %v826_v1, %v826_v1  ;;  %v701_v8 = vadd.f32 %v1790_v10, %v700_v4  ;;  %v829_v9 = vadd.f32 %v1790_v10, %v828_v5  ;;  %v702_v11 = vpop.f32.mrb[63].mxu0  ;;  %v830_v12 = vpop.f32.mrb[63].mxu1 }
 0x175   :  { %1119 = vst.msk [vmem:[%s2115_s3 + $0x78] sm:$0xf] %vm1088_vm1, %v1357_v6  ;;  %1151 = vst.msk [vmem:[%s2115_s3 + $0xf8] sm:$0xf] %vm1088_vm1, %v1389_v7  ;;  %v1358_v13 = vpack.c.bf16 %v701_v8, %v701_v8  ;;  %v1390_v14 = vpack.c.bf16 %v829_v9, %v829_v9 }
 0x177   :  { %1120 = vst.msk [vmem:[%s2115_s3 + $0x7c] sm:$0xf] %vm1088_vm1, %v1358_v13  ;;  %1152 = vst.msk [vmem:[%s2115_s3 + $0xfc] sm:$0xf] %vm1088_vm1, %v1390_v14 }

</bundles_post_ra>
